<compile_context>
chip_gen: v6e
topology: v6e:2x2x1
jax: 0.10.0
libtpu: 0.0.40
codegen_flags: <defaults>
</compile_context>

<pallas_src>
import functools

import jax
import jax.numpy as jnp
from jax.experimental import pallas as pl
from jax.experimental.pallas import tpu as pltpu


def _mix32(v):
    """lowbias32-style avalanche mix on uint32."""
    v = v ^ (v >> jnp.uint32(16))
    v = v * jnp.uint32(0x7FEB352D)
    v = v ^ (v >> jnp.uint32(15))
    v = v * jnp.uint32(0x846CA68B)
    v = v ^ (v >> jnp.uint32(16))
    return v


def _noise_kernel(seed_ref, x_ref, o_ref, *, mean, std, sp_prob, n_knuth,
                  total_t, tile_t):
    x = x_ref[...].astype(jnp.float32)
    B, Tt = x.shape  # static block shape

    # ----- per-element 32-bit counter (unique across the whole array) --------
    seed_u = seed_ref[0].astype(jnp.uint32)
    col_off = (pl.program_id(0) * tile_t).astype(jnp.uint32)
    row = jax.lax.broadcasted_iota(jnp.uint32, (B, Tt), 0)
    col = jax.lax.broadcasted_iota(jnp.uint32, (B, Tt), 1) + col_off
    idx = row * jnp.uint32(total_t) + col

    def random_bits(index, salt_u32):
        return _mix32(index * jnp.uint32(0x9E3779B1) + salt_u32)

    def uniform(index, salt_u32):
        # uniform in (0, 1): safe for log()
        b = random_bits(index, salt_u32) >> jnp.uint32(8)
        return (b.astype(jnp.float32) + jnp.float32(0.5)) * jnp.float32(1.0 / (1 << 24))

    salt_base = seed_u * jnp.uint32(0x85EBCA77)

    # ----- 'gaussian': randn_like(x) * std + mean ----------------------------
    # Paired Box-Muller: draw u1,u2 on half the tile, use both cos and sin
    # branches -> halves the draws / log / sqrt relative to the naive version.
    half = Tt // 2
    idx_h = idx[:, :half]
    u1 = uniform(idx_h, salt_base + jnp.uint32(0x1000193))
    u2 = uniform(idx_h, salt_base + jnp.uint32(0x2000193))
    r = jnp.sqrt(jnp.float32(-2.0) * jnp.log(u1))
    theta = jnp.float32(2.0 * 3.14159265358979) * u2
    z = jnp.concatenate([r * jnp.cos(theta), r * jnp.sin(theta)], axis=-1)
    acc = x + (z * jnp.float32(std) + jnp.float32(mean))

    # ----- 'poisson': torch.poisson(x), rate = x ------------------------------
    # Knuth's algorithm, truncated at n_knuth iterations (exact for the small,
    # non-negative rates produced by audio-scale inputs in [0, ~1)).
    # TODO(synk): exact torch.poisson for large rates (transformed rejection);
    # the truncated Knuth loop clips the tail when lambda >~ 3.
    thresh = jnp.exp(-jnp.maximum(x, jnp.float32(0.0)))
    salt_pois = salt_base + jnp.uint32(0x3000193)

    def knuth_body(k, carry):
        prod, pois = carry
        u = uniform(idx, salt_pois + k.astype(jnp.uint32) * jnp.uint32(0xC2B2AE3D))
        prod = prod * u
        pois = pois + (prod > thresh).astype(jnp.float32)
        return prod, pois

    _, pois = jax.lax.fori_loop(
        0, n_knuth, knuth_body,
        (jnp.ones_like(x), jnp.zeros_like(x)),
        unroll=True)
    acc = acc + pois

    # ----- 'salt_and_pepper': F.dropout(x, p, training=True) ------------------
    # Keep decision done directly in the integer domain (no uniform conversion).
    drop_bits = random_bits(idx, salt_base + jnp.uint32(0x4000193))
    thr = jnp.uint32(min(int(round(sp_prob * 4294967296.0)), 4294967295))
    keep_scale = jnp.float32(1.0 / (1.0 - sp_prob)) if sp_prob < 1.0 else jnp.float32(0.0)
    sp = jnp.where(drop_bits >= thr, x * keep_scale, jnp.float32(0.0))
    acc = acc + sp

    o_ref[...] = acc.astype(o_ref.dtype)


def add_various_noises(waveforms, seed, *, mean=0.0, std=0.1, sp_prob=0.05,
                       n_knuth=8, tile_t=1024):
    """waveforms: [batch, time] or [batch, time, channels], non-negative float.

    Notes:
      * torch.poisson would raise on negative rates; here negatives are clamped
        to 0 for the Poisson rate only (gaussian / dropout still see raw x).
      * Knuth sampling is truncated at `n_knuth`; exact for rates < ~1.
    """
    orig_shape = waveforms.shape
    if waveforms.ndim == 3:
        b, t, c = orig_shape
        x2 = waveforms.reshape(b, t * c)          # elementwise -> fold channels into time
    elif waveforms.ndim == 2:
        x2 = waveforms
    else:
        raise ValueError("expected [batch, time] or [batch, time, channels]")

    B, T = x2.shape
    tile_t = min(tile_t, T)
    assert T % tile_t == 0, "time (xchannels) must be divisible by tile_t"
    assert tile_t == T or tile_t % 128 == 0, "tile_t must be lane-aligned (x128) or full"
    assert tile_t % 2 == 0, "tile_t must be even (paired Box-Muller)"

    kernel = functools.partial(
        _noise_kernel, mean=float(mean), std=float(std), sp_prob=float(sp_prob),
        n_knuth=int(n_knuth), total_t=T, tile_t=tile_t)

    seed_arr = jnp.asarray([seed], dtype=jnp.int32)
    out = pl.pallas_call(
        kernel,
        out_shape=jax.ShapeDtypeStruct((B, T), x2.dtype),
        grid_spec=pltpu.PrefetchScalarGridSpec(
            num_scalar_prefetch=1,
            grid=(T // tile_t,),
            in_specs=[pl.BlockSpec((B, tile_t), lambda t, seed_ref: (0, t))],
            out_specs=pl.BlockSpec((B, tile_t), lambda t, seed_ref: (0, t)),
        ),
        # Counter-based PRNG is order-independent -> safe to shard across
        # TensorCores (2x on v7x, neutral on v5e/v6e).
        compiler_params=pltpu.CompilerParams(
            dimension_semantics=("parallel",)),
    )(seed_arr, x2)
    return out.reshape(orig_shape)


if __name__ == "__main__":
    key = jax.random.PRNGKey(0)
    # Small [batch, time] waveform; values in [0, 1) so Poisson rates are valid.
    B, T = 8, 2048
    waveforms = jax.random.uniform(key, (B, T), dtype=jnp.float32)

    out = add_various_noises(waveforms, seed=1234)
    out = jax.block_until_ready(out)

    assert out.shape == waveforms.shape and out.dtype == waveforms.dtype
    assert bool(jnp.all(jnp.isfinite(out)))
    # Loose statistical sanity: E[out] = E[x] + mean_gauss + E[x] (poisson) + E[x] (dropout)
    expected_mean = 3.0 * float(jnp.mean(waveforms)) + 0.0
    assert abs(float(jnp.mean(out)) - expected_mean) < 0.2
    print("KERNEL_OK")
</pallas_src>

<mosaic_0001>
module attributes {stable_mosaic.version = 11 : i64} {
  func.func @_noise_kernel(%arg0: i32, %arg1: memref<1xi32, #tpu.memory_space<smem>>, %arg2: memref<8x1024xf32, #tpu.memory_space<vmem>>, %arg3: memref<8x1024xf32, #tpu.memory_space<vmem>>) attributes {dimension_semantics = [#tpu.dimension_semantics<parallel>], iteration_bounds = array<i64: 2>, scalar_prefetch = 1 : i64, scratch_operands = 0 : i64, tpu.core_type = #tpu.core_type<tc>, window_params = [{transform_indices = @transform_0, window_bounds = array<i64: 8, 1024>}, {transform_indices = @transform_1, window_bounds = array<i64: 8, 1024>}]} {
    %c0 = arith.constant 0 : index
    %c0_0 = arith.constant 0 : index
    %0 = vector.load %arg2[%c0, %c0_0] : memref<8x1024xf32, #tpu.memory_space<vmem>>, vector<8x1024xf32>
    %c0_1 = arith.constant 0 : index
    %1 = memref.load %arg1[%c0_1] : memref<1xi32, #tpu.memory_space<smem>>
    %c1024_i32 = arith.constant 1024 : i32
    %2 = arith.muli %arg0, %c1024_i32 : i32
    %3 = tpu.iota {dimensions = array<i32: 0>} : vector<8x1024xi32>
    %4 = tpu.iota {dimensions = array<i32: 1>} : vector<8x1024xi32>
    %5 = vector.broadcast %2 : i32 to vector<8x1024xi32>
    %6 = arith.addi %4, %5 : vector<8x1024xi32>
    %c2048_i32 = arith.constant 2048 : i32
    %7 = vector.broadcast %c2048_i32 : i32 to vector<8x1024xi32>
    %8 = arith.muli %3, %7 : vector<8x1024xi32>
    %9 = arith.addi %8, %6 : vector<8x1024xi32>
    %c-2048144777_i32 = arith.constant -2048144777 : i32
    %10 = arith.muli %1, %c-2048144777_i32 : i32
    %11 = vector.extract_strided_slice %9 {offsets = [0, 0], sizes = [8, 512], strides = [1, 1]} : vector<8x1024xi32> to vector<8x512xi32>
    %c16777619_i32 = arith.constant 16777619 : i32
    %12 = arith.addi %10, %c16777619_i32 : i32
    %c-1640531535_i32 = arith.constant -1640531535 : i32
    %13 = vector.broadcast %c-1640531535_i32 : i32 to vector<8x512xi32>
    %14 = arith.muli %11, %13 : vector<8x512xi32>
    %15 = vector.broadcast %12 : i32 to vector<8x512xi32>
    %16 = arith.addi %14, %15 : vector<8x512xi32>
    %c16_i32 = arith.constant 16 : i32
    %17 = vector.broadcast %c16_i32 : i32 to vector<8x512xi32>
    %18 = arith.shrui %16, %17 : vector<8x512xi32>
    %19 = arith.xori %16, %18 : vector<8x512xi32>
    %c2146121005_i32 = arith.constant 2146121005 : i32
    %20 = vector.broadcast %c2146121005_i32 : i32 to vector<8x512xi32>
    %21 = arith.muli %19, %20 : vector<8x512xi32>
    %c15_i32 = arith.constant 15 : i32
    %22 = vector.broadcast %c15_i32 : i32 to vector<8x512xi32>
    %23 = arith.shrui %21, %22 : vector<8x512xi32>
    %24 = arith.xori %21, %23 : vector<8x512xi32>
    %c-2073254261_i32 = arith.constant -2073254261 : i32
    %25 = vector.broadcast %c-2073254261_i32 : i32 to vector<8x512xi32>
    %26 = arith.muli %24, %25 : vector<8x512xi32>
    %c16_i32_2 = arith.constant 16 : i32
    %27 = vector.broadcast %c16_i32_2 : i32 to vector<8x512xi32>
    %28 = arith.shrui %26, %27 : vector<8x512xi32>
    %29 = arith.xori %26, %28 : vector<8x512xi32>
    %c8_i32 = arith.constant 8 : i32
    %30 = vector.broadcast %c8_i32 : i32 to vector<8x512xi32>
    %31 = arith.shrui %29, %30 : vector<8x512xi32>
    %32 = arith.uitofp %31 : vector<8x512xi32> to vector<8x512xf32>
    %cst = arith.constant 5.000000e-01 : f32
    %33 = vector.broadcast %cst : f32 to vector<8x512xf32>
    %34 = arith.addf %32, %33 : vector<8x512xf32>
    %cst_3 = arith.constant 5.96046448E-8 : f32
    %35 = vector.broadcast %cst_3 : f32 to vector<8x512xf32>
    %36 = arith.mulf %34, %35 : vector<8x512xf32>
    %c33554835_i32 = arith.constant 33554835 : i32
    %37 = arith.addi %10, %c33554835_i32 : i32
    %c-1640531535_i32_4 = arith.constant -1640531535 : i32
    %38 = vector.broadcast %c-1640531535_i32_4 : i32 to vector<8x512xi32>
    %39 = arith.muli %11, %38 : vector<8x512xi32>
    %40 = vector.broadcast %37 : i32 to vector<8x512xi32>
    %41 = arith.addi %39, %40 : vector<8x512xi32>
    %c16_i32_5 = arith.constant 16 : i32
    %42 = vector.broadcast %c16_i32_5 : i32 to vector<8x512xi32>
    %43 = arith.shrui %41, %42 : vector<8x512xi32>
    %44 = arith.xori %41, %43 : vector<8x512xi32>
    %c2146121005_i32_6 = arith.constant 2146121005 : i32
    %45 = vector.broadcast %c2146121005_i32_6 : i32 to vector<8x512xi32>
    %46 = arith.muli %44, %45 : vector<8x512xi32>
    %c15_i32_7 = arith.constant 15 : i32
    %47 = vector.broadcast %c15_i32_7 : i32 to vector<8x512xi32>
    %48 = arith.shrui %46, %47 : vector<8x512xi32>
    %49 = arith.xori %46, %48 : vector<8x512xi32>
    %c-2073254261_i32_8 = arith.constant -2073254261 : i32
    %50 = vector.broadcast %c-2073254261_i32_8 : i32 to vector<8x512xi32>
    %51 = arith.muli %49, %50 : vector<8x512xi32>
    %c16_i32_9 = arith.constant 16 : i32
    %52 = vector.broadcast %c16_i32_9 : i32 to vector<8x512xi32>
    %53 = arith.shrui %51, %52 : vector<8x512xi32>
    %54 = arith.xori %51, %53 : vector<8x512xi32>
    %c8_i32_10 = arith.constant 8 : i32
    %55 = vector.broadcast %c8_i32_10 : i32 to vector<8x512xi32>
    %56 = arith.shrui %54, %55 : vector<8x512xi32>
    %57 = arith.uitofp %56 : vector<8x512xi32> to vector<8x512xf32>
    %cst_11 = arith.constant 5.000000e-01 : f32
    %58 = vector.broadcast %cst_11 : f32 to vector<8x512xf32>
    %59 = arith.addf %57, %58 : vector<8x512xf32>
    %cst_12 = arith.constant 5.96046448E-8 : f32
    %60 = vector.broadcast %cst_12 : f32 to vector<8x512xf32>
    %61 = arith.mulf %59, %60 : vector<8x512xf32>
    %62 = math.log %36 : vector<8x512xf32>
    %cst_13 = arith.constant -2.000000e+00 : f32
    %63 = vector.broadcast %cst_13 : f32 to vector<8x512xf32>
    %64 = arith.mulf %63, %62 : vector<8x512xf32>
    %65 = math.sqrt %64 : vector<8x512xf32>
    %cst_14 = arith.constant 6.28318548 : f32
    %66 = vector.broadcast %cst_14 : f32 to vector<8x512xf32>
    %67 = arith.mulf %66, %61 : vector<8x512xf32>
    %68 = math.cos %67 : vector<8x512xf32>
    %69 = arith.mulf %65, %68 : vector<8x512xf32>
    %70 = math.sin %67 : vector<8x512xf32>
    %71 = arith.mulf %65, %70 : vector<8x512xf32>
    %72 = tpu.concatenate %69, %71 in 1 : vector<8x512xf32>, vector<8x512xf32> -> vector<8x1024xf32>
    %cst_15 = arith.constant 1.000000e-01 : f32
    %73 = vector.broadcast %cst_15 : f32 to vector<8x1024xf32>
    %74 = arith.mulf %72, %73 : vector<8x1024xf32>
    %cst_16 = arith.constant 0.000000e+00 : f32
    %75 = vector.broadcast %cst_16 : f32 to vector<8x1024xf32>
    %76 = arith.addf %74, %75 : vector<8x1024xf32>
    %77 = arith.addf %0, %76 : vector<8x1024xf32>
    %cst_17 = arith.constant 0.000000e+00 : f32
    %78 = vector.broadcast %cst_17 : f32 to vector<8x1024xf32>
    %79 = arith.maximumf %0, %78 : vector<8x1024xf32>
    %cst_18 = arith.constant 0.000000e+00 : f32
    %80 = vector.broadcast %cst_18 : f32 to vector<8x1024xf32>
    %81 = arith.subf %80, %79 : vector<8x1024xf32>
    %82 = math.exp %81 : vector<8x1024xf32>
    %c50332051_i32 = arith.constant 50332051 : i32
    %83 = arith.addi %10, %c50332051_i32 : i32
    %cst_19 = arith.constant 1.000000e+00 : f32
    %84 = vector.broadcast %cst_19 : f32 to vector<8x1024xf32>
    %cst_20 = arith.constant 0.000000e+00 : f32
    %85 = vector.broadcast %cst_20 : f32 to vector<8x1024xf32>
    %c0_i32 = arith.constant 0 : i32
    %c-1028477379_i32 = arith.constant -1028477379 : i32
    %86 = arith.muli %c0_i32, %c-1028477379_i32 : i32
    %87 = arith.addi %83, %86 : i32
    %c-1640531535_i32_21 = arith.constant -1640531535 : i32
    %88 = vector.broadcast %c-1640531535_i32_21 : i32 to vector<8x1024xi32>
    %89 = arith.muli %9, %88 : vector<8x1024xi32>
    %90 = vector.broadcast %87 : i32 to vector<8x1024xi32>
    %91 = arith.addi %89, %90 : vector<8x1024xi32>
    %c16_i32_22 = arith.constant 16 : i32
    %92 = vector.broadcast %c16_i32_22 : i32 to vector<8x1024xi32>
    %93 = arith.shrui %91, %92 : vector<8x1024xi32>
    %94 = arith.xori %91, %93 : vector<8x1024xi32>
    %c2146121005_i32_23 = arith.constant 2146121005 : i32
    %95 = vector.broadcast %c2146121005_i32_23 : i32 to vector<8x1024xi32>
    %96 = arith.muli %94, %95 : vector<8x1024xi32>
    %c15_i32_24 = arith.constant 15 : i32
    %97 = vector.broadcast %c15_i32_24 : i32 to vector<8x1024xi32>
    %98 = arith.shrui %96, %97 : vector<8x1024xi32>
    %99 = arith.xori %96, %98 : vector<8x1024xi32>
    %c-2073254261_i32_25 = arith.constant -2073254261 : i32
    %100 = vector.broadcast %c-2073254261_i32_25 : i32 to vector<8x1024xi32>
    %101 = arith.muli %99, %100 : vector<8x1024xi32>
    %c16_i32_26 = arith.constant 16 : i32
    %102 = vector.broadcast %c16_i32_26 : i32 to vector<8x1024xi32>
    %103 = arith.shrui %101, %102 : vector<8x1024xi32>
    %104 = arith.xori %101, %103 : vector<8x1024xi32>
    %c8_i32_27 = arith.constant 8 : i32
    %105 = vector.broadcast %c8_i32_27 : i32 to vector<8x1024xi32>
    %106 = arith.shrui %104, %105 : vector<8x1024xi32>
    %107 = arith.uitofp %106 : vector<8x1024xi32> to vector<8x1024xf32>
    %cst_28 = arith.constant 5.000000e-01 : f32
    %108 = vector.broadcast %cst_28 : f32 to vector<8x1024xf32>
    %109 = arith.addf %107, %108 : vector<8x1024xf32>
    %cst_29 = arith.constant 5.96046448E-8 : f32
    %110 = vector.broadcast %cst_29 : f32 to vector<8x1024xf32>
    %111 = arith.mulf %109, %110 : vector<8x1024xf32>
    %112 = arith.mulf %84, %111 : vector<8x1024xf32>
    %113 = arith.cmpf ogt, %112, %82 : vector<8x1024xf32>
    %114 = arith.extui %113 : vector<8x1024xi1> to vector<8x1024xi32>
    %115 = arith.sitofp %114 : vector<8x1024xi32> to vector<8x1024xf32>
    %116 = arith.addf %85, %115 : vector<8x1024xf32>
    %c1_i32 = arith.constant 1 : i32
    %c-1028477379_i32_30 = arith.constant -1028477379 : i32
    %117 = arith.muli %c1_i32, %c-1028477379_i32_30 : i32
    %118 = arith.addi %83, %117 : i32
    %c-1640531535_i32_31 = arith.constant -1640531535 : i32
    %119 = vector.broadcast %c-1640531535_i32_31 : i32 to vector<8x1024xi32>
    %120 = arith.muli %9, %119 : vector<8x1024xi32>
    %121 = vector.broadcast %118 : i32 to vector<8x1024xi32>
    %122 = arith.addi %120, %121 : vector<8x1024xi32>
    %c16_i32_32 = arith.constant 16 : i32
    %123 = vector.broadcast %c16_i32_32 : i32 to vector<8x1024xi32>
    %124 = arith.shrui %122, %123 : vector<8x1024xi32>
    %125 = arith.xori %122, %124 : vector<8x1024xi32>
    %c2146121005_i32_33 = arith.constant 2146121005 : i32
    %126 = vector.broadcast %c2146121005_i32_33 : i32 to vector<8x1024xi32>
    %127 = arith.muli %125, %126 : vector<8x1024xi32>
    %c15_i32_34 = arith.constant 15 : i32
    %128 = vector.broadcast %c15_i32_34 : i32 to vector<8x1024xi32>
    %129 = arith.shrui %127, %128 : vector<8x1024xi32>
    %130 = arith.xori %127, %129 : vector<8x1024xi32>
    %c-2073254261_i32_35 = arith.constant -2073254261 : i32
    %131 = vector.broadcast %c-2073254261_i32_35 : i32 to vector<8x1024xi32>
    %132 = arith.muli %130, %131 : vector<8x1024xi32>
    %c16_i32_36 = arith.constant 16 : i32
    %133 = vector.broadcast %c16_i32_36 : i32 to vector<8x1024xi32>
    %134 = arith.shrui %132, %133 : vector<8x1024xi32>
    %135 = arith.xori %132, %134 : vector<8x1024xi32>
    %c8_i32_37 = arith.constant 8 : i32
    %136 = vector.broadcast %c8_i32_37 : i32 to vector<8x1024xi32>
    %137 = arith.shrui %135, %136 : vector<8x1024xi32>
    %138 = arith.uitofp %137 : vector<8x1024xi32> to vector<8x1024xf32>
    %cst_38 = arith.constant 5.000000e-01 : f32
    %139 = vector.broadcast %cst_38 : f32 to vector<8x1024xf32>
    %140 = arith.addf %138, %139 : vector<8x1024xf32>
    %cst_39 = arith.constant 5.96046448E-8 : f32
    %141 = vector.broadcast %cst_39 : f32 to vector<8x1024xf32>
    %142 = arith.mulf %140, %141 : vector<8x1024xf32>
    %143 = arith.mulf %112, %142 : vector<8x1024xf32>
    %144 = arith.cmpf ogt, %143, %82 : vector<8x1024xf32>
    %145 = arith.extui %144 : vector<8x1024xi1> to vector<8x1024xi32>
    %146 = arith.sitofp %145 : vector<8x1024xi32> to vector<8x1024xf32>
    %147 = arith.addf %116, %146 : vector<8x1024xf32>
    %c2_i32 = arith.constant 2 : i32
    %c-1028477379_i32_40 = arith.constant -1028477379 : i32
    %148 = arith.muli %c2_i32, %c-1028477379_i32_40 : i32
    %149 = arith.addi %83, %148 : i32
    %c-1640531535_i32_41 = arith.constant -1640531535 : i32
    %150 = vector.broadcast %c-1640531535_i32_41 : i32 to vector<8x1024xi32>
    %151 = arith.muli %9, %150 : vector<8x1024xi32>
    %152 = vector.broadcast %149 : i32 to vector<8x1024xi32>
    %153 = arith.addi %151, %152 : vector<8x1024xi32>
    %c16_i32_42 = arith.constant 16 : i32
    %154 = vector.broadcast %c16_i32_42 : i32 to vector<8x1024xi32>
    %155 = arith.shrui %153, %154 : vector<8x1024xi32>
    %156 = arith.xori %153, %155 : vector<8x1024xi32>
    %c2146121005_i32_43 = arith.constant 2146121005 : i32
    %157 = vector.broadcast %c2146121005_i32_43 : i32 to vector<8x1024xi32>
    %158 = arith.muli %156, %157 : vector<8x1024xi32>
    %c15_i32_44 = arith.constant 15 : i32
    %159 = vector.broadcast %c15_i32_44 : i32 to vector<8x1024xi32>
    %160 = arith.shrui %158, %159 : vector<8x1024xi32>
    %161 = arith.xori %158, %160 : vector<8x1024xi32>
    %c-2073254261_i32_45 = arith.constant -2073254261 : i32
    %162 = vector.broadcast %c-2073254261_i32_45 : i32 to vector<8x1024xi32>
    %163 = arith.muli %161, %162 : vector<8x1024xi32>
    %c16_i32_46 = arith.constant 16 : i32
    %164 = vector.broadcast %c16_i32_46 : i32 to vector<8x1024xi32>
    %165 = arith.shrui %163, %164 : vector<8x1024xi32>
    %166 = arith.xori %163, %165 : vector<8x1024xi32>
    %c8_i32_47 = arith.constant 8 : i32
    %167 = vector.broadcast %c8_i32_47 : i32 to vector<8x1024xi32>
    %168 = arith.shrui %166, %167 : vector<8x1024xi32>
    %169 = arith.uitofp %168 : vector<8x1024xi32> to vector<8x1024xf32>
    %cst_48 = arith.constant 5.000000e-01 : f32
    %170 = vector.broadcast %cst_48 : f32 to vector<8x1024xf32>
    %171 = arith.addf %169, %170 : vector<8x1024xf32>
    %cst_49 = arith.constant 5.96046448E-8 : f32
    %172 = vector.broadcast %cst_49 : f32 to vector<8x1024xf32>
    %173 = arith.mulf %171, %172 : vector<8x1024xf32>
    %174 = arith.mulf %143, %173 : vector<8x1024xf32>
    %175 = arith.cmpf ogt, %174, %82 : vector<8x1024xf32>
    %176 = arith.extui %175 : vector<8x1024xi1> to vector<8x1024xi32>
    %177 = arith.sitofp %176 : vector<8x1024xi32> to vector<8x1024xf32>
    %178 = arith.addf %147, %177 : vector<8x1024xf32>
    %c3_i32 = arith.constant 3 : i32
    %c-1028477379_i32_50 = arith.constant -1028477379 : i32
    %179 = arith.muli %c3_i32, %c-1028477379_i32_50 : i32
    %180 = arith.addi %83, %179 : i32
    %c-1640531535_i32_51 = arith.constant -1640531535 : i32
    %181 = vector.broadcast %c-1640531535_i32_51 : i32 to vector<8x1024xi32>
    %182 = arith.muli %9, %181 : vector<8x1024xi32>
    %183 = vector.broadcast %180 : i32 to vector<8x1024xi32>
    %184 = arith.addi %182, %183 : vector<8x1024xi32>
    %c16_i32_52 = arith.constant 16 : i32
    %185 = vector.broadcast %c16_i32_52 : i32 to vector<8x1024xi32>
    %186 = arith.shrui %184, %185 : vector<8x1024xi32>
    %187 = arith.xori %184, %186 : vector<8x1024xi32>
    %c2146121005_i32_53 = arith.constant 2146121005 : i32
    %188 = vector.broadcast %c2146121005_i32_53 : i32 to vector<8x1024xi32>
    %189 = arith.muli %187, %188 : vector<8x1024xi32>
    %c15_i32_54 = arith.constant 15 : i32
    %190 = vector.broadcast %c15_i32_54 : i32 to vector<8x1024xi32>
    %191 = arith.shrui %189, %190 : vector<8x1024xi32>
    %192 = arith.xori %189, %191 : vector<8x1024xi32>
    %c-2073254261_i32_55 = arith.constant -2073254261 : i32
    %193 = vector.broadcast %c-2073254261_i32_55 : i32 to vector<8x1024xi32>
    %194 = arith.muli %192, %193 : vector<8x1024xi32>
    %c16_i32_56 = arith.constant 16 : i32
    %195 = vector.broadcast %c16_i32_56 : i32 to vector<8x1024xi32>
    %196 = arith.shrui %194, %195 : vector<8x1024xi32>
    %197 = arith.xori %194, %196 : vector<8x1024xi32>
    %c8_i32_57 = arith.constant 8 : i32
    %198 = vector.broadcast %c8_i32_57 : i32 to vector<8x1024xi32>
    %199 = arith.shrui %197, %198 : vector<8x1024xi32>
    %200 = arith.uitofp %199 : vector<8x1024xi32> to vector<8x1024xf32>
    %cst_58 = arith.constant 5.000000e-01 : f32
    %201 = vector.broadcast %cst_58 : f32 to vector<8x1024xf32>
    %202 = arith.addf %200, %201 : vector<8x1024xf32>
    %cst_59 = arith.constant 5.96046448E-8 : f32
    %203 = vector.broadcast %cst_59 : f32 to vector<8x1024xf32>
    %204 = arith.mulf %202, %203 : vector<8x1024xf32>
    %205 = arith.mulf %174, %204 : vector<8x1024xf32>
    %206 = arith.cmpf ogt, %205, %82 : vector<8x1024xf32>
    %207 = arith.extui %206 : vector<8x1024xi1> to vector<8x1024xi32>
    %208 = arith.sitofp %207 : vector<8x1024xi32> to vector<8x1024xf32>
    %209 = arith.addf %178, %208 : vector<8x1024xf32>
    %c4_i32 = arith.constant 4 : i32
    %c-1028477379_i32_60 = arith.constant -1028477379 : i32
    %210 = arith.muli %c4_i32, %c-1028477379_i32_60 : i32
    %211 = arith.addi %83, %210 : i32
    %c-1640531535_i32_61 = arith.constant -1640531535 : i32
    %212 = vector.broadcast %c-1640531535_i32_61 : i32 to vector<8x1024xi32>
    %213 = arith.muli %9, %212 : vector<8x1024xi32>
    %214 = vector.broadcast %211 : i32 to vector<8x1024xi32>
    %215 = arith.addi %213, %214 : vector<8x1024xi32>
    %c16_i32_62 = arith.constant 16 : i32
    %216 = vector.broadcast %c16_i32_62 : i32 to vector<8x1024xi32>
    %217 = arith.shrui %215, %216 : vector<8x1024xi32>
    %218 = arith.xori %215, %217 : vector<8x1024xi32>
    %c2146121005_i32_63 = arith.constant 2146121005 : i32
    %219 = vector.broadcast %c2146121005_i32_63 : i32 to vector<8x1024xi32>
    %220 = arith.muli %218, %219 : vector<8x1024xi32>
    %c15_i32_64 = arith.constant 15 : i32
    %221 = vector.broadcast %c15_i32_64 : i32 to vector<8x1024xi32>
    %222 = arith.shrui %220, %221 : vector<8x1024xi32>
    %223 = arith.xori %220, %222 : vector<8x1024xi32>
    %c-2073254261_i32_65 = arith.constant -2073254261 : i32
    %224 = vector.broadcast %c-2073254261_i32_65 : i32 to vector<8x1024xi32>
    %225 = arith.muli %223, %224 : vector<8x1024xi32>
    %c16_i32_66 = arith.constant 16 : i32
    %226 = vector.broadcast %c16_i32_66 : i32 to vector<8x1024xi32>
    %227 = arith.shrui %225, %226 : vector<8x1024xi32>
    %228 = arith.xori %225, %227 : vector<8x1024xi32>
    %c8_i32_67 = arith.constant 8 : i32
    %229 = vector.broadcast %c8_i32_67 : i32 to vector<8x1024xi32>
    %230 = arith.shrui %228, %229 : vector<8x1024xi32>
    %231 = arith.uitofp %230 : vector<8x1024xi32> to vector<8x1024xf32>
    %cst_68 = arith.constant 5.000000e-01 : f32
    %232 = vector.broadcast %cst_68 : f32 to vector<8x1024xf32>
    %233 = arith.addf %231, %232 : vector<8x1024xf32>
    %cst_69 = arith.constant 5.96046448E-8 : f32
    %234 = vector.broadcast %cst_69 : f32 to vector<8x1024xf32>
    %235 = arith.mulf %233, %234 : vector<8x1024xf32>
    %236 = arith.mulf %205, %235 : vector<8x1024xf32>
    %237 = arith.cmpf ogt, %236, %82 : vector<8x1024xf32>
    %238 = arith.extui %237 : vector<8x1024xi1> to vector<8x1024xi32>
    %239 = arith.sitofp %238 : vector<8x1024xi32> to vector<8x1024xf32>
    %240 = arith.addf %209, %239 : vector<8x1024xf32>
    %c5_i32 = arith.constant 5 : i32
    %c-1028477379_i32_70 = arith.constant -1028477379 : i32
    %241 = arith.muli %c5_i32, %c-1028477379_i32_70 : i32
    %242 = arith.addi %83, %241 : i32
    %c-1640531535_i32_71 = arith.constant -1640531535 : i32
    %243 = vector.broadcast %c-1640531535_i32_71 : i32 to vector<8x1024xi32>
    %244 = arith.muli %9, %243 : vector<8x1024xi32>
    %245 = vector.broadcast %242 : i32 to vector<8x1024xi32>
    %246 = arith.addi %244, %245 : vector<8x1024xi32>
    %c16_i32_72 = arith.constant 16 : i32
    %247 = vector.broadcast %c16_i32_72 : i32 to vector<8x1024xi32>
    %248 = arith.shrui %246, %247 : vector<8x1024xi32>
    %249 = arith.xori %246, %248 : vector<8x1024xi32>
    %c2146121005_i32_73 = arith.constant 2146121005 : i32
    %250 = vector.broadcast %c2146121005_i32_73 : i32 to vector<8x1024xi32>
    %251 = arith.muli %249, %250 : vector<8x1024xi32>
    %c15_i32_74 = arith.constant 15 : i32
    %252 = vector.broadcast %c15_i32_74 : i32 to vector<8x1024xi32>
    %253 = arith.shrui %251, %252 : vector<8x1024xi32>
    %254 = arith.xori %251, %253 : vector<8x1024xi32>
    %c-2073254261_i32_75 = arith.constant -2073254261 : i32
    %255 = vector.broadcast %c-2073254261_i32_75 : i32 to vector<8x1024xi32>
    %256 = arith.muli %254, %255 : vector<8x1024xi32>
    %c16_i32_76 = arith.constant 16 : i32
    %257 = vector.broadcast %c16_i32_76 : i32 to vector<8x1024xi32>
    %258 = arith.shrui %256, %257 : vector<8x1024xi32>
    %259 = arith.xori %256, %258 : vector<8x1024xi32>
    %c8_i32_77 = arith.constant 8 : i32
    %260 = vector.broadcast %c8_i32_77 : i32 to vector<8x1024xi32>
    %261 = arith.shrui %259, %260 : vector<8x1024xi32>
    %262 = arith.uitofp %261 : vector<8x1024xi32> to vector<8x1024xf32>
    %cst_78 = arith.constant 5.000000e-01 : f32
    %263 = vector.broadcast %cst_78 : f32 to vector<8x1024xf32>
    %264 = arith.addf %262, %263 : vector<8x1024xf32>
    %cst_79 = arith.constant 5.96046448E-8 : f32
    %265 = vector.broadcast %cst_79 : f32 to vector<8x1024xf32>
    %266 = arith.mulf %264, %265 : vector<8x1024xf32>
    %267 = arith.mulf %236, %266 : vector<8x1024xf32>
    %268 = arith.cmpf ogt, %267, %82 : vector<8x1024xf32>
    %269 = arith.extui %268 : vector<8x1024xi1> to vector<8x1024xi32>
    %270 = arith.sitofp %269 : vector<8x1024xi32> to vector<8x1024xf32>
    %271 = arith.addf %240, %270 : vector<8x1024xf32>
    %c6_i32 = arith.constant 6 : i32
    %c-1028477379_i32_80 = arith.constant -1028477379 : i32
    %272 = arith.muli %c6_i32, %c-1028477379_i32_80 : i32
    %273 = arith.addi %83, %272 : i32
    %c-1640531535_i32_81 = arith.constant -1640531535 : i32
    %274 = vector.broadcast %c-1640531535_i32_81 : i32 to vector<8x1024xi32>
    %275 = arith.muli %9, %274 : vector<8x1024xi32>
    %276 = vector.broadcast %273 : i32 to vector<8x1024xi32>
    %277 = arith.addi %275, %276 : vector<8x1024xi32>
    %c16_i32_82 = arith.constant 16 : i32
    %278 = vector.broadcast %c16_i32_82 : i32 to vector<8x1024xi32>
    %279 = arith.shrui %277, %278 : vector<8x1024xi32>
    %280 = arith.xori %277, %279 : vector<8x1024xi32>
    %c2146121005_i32_83 = arith.constant 2146121005 : i32
    %281 = vector.broadcast %c2146121005_i32_83 : i32 to vector<8x1024xi32>
    %282 = arith.muli %280, %281 : vector<8x1024xi32>
    %c15_i32_84 = arith.constant 15 : i32
    %283 = vector.broadcast %c15_i32_84 : i32 to vector<8x1024xi32>
    %284 = arith.shrui %282, %283 : vector<8x1024xi32>
    %285 = arith.xori %282, %284 : vector<8x1024xi32>
    %c-2073254261_i32_85 = arith.constant -2073254261 : i32
    %286 = vector.broadcast %c-2073254261_i32_85 : i32 to vector<8x1024xi32>
    %287 = arith.muli %285, %286 : vector<8x1024xi32>
    %c16_i32_86 = arith.constant 16 : i32
    %288 = vector.broadcast %c16_i32_86 : i32 to vector<8x1024xi32>
    %289 = arith.shrui %287, %288 : vector<8x1024xi32>
    %290 = arith.xori %287, %289 : vector<8x1024xi32>
    %c8_i32_87 = arith.constant 8 : i32
    %291 = vector.broadcast %c8_i32_87 : i32 to vector<8x1024xi32>
    %292 = arith.shrui %290, %291 : vector<8x1024xi32>
    %293 = arith.uitofp %292 : vector<8x1024xi32> to vector<8x1024xf32>
    %cst_88 = arith.constant 5.000000e-01 : f32
    %294 = vector.broadcast %cst_88 : f32 to vector<8x1024xf32>
    %295 = arith.addf %293, %294 : vector<8x1024xf32>
    %cst_89 = arith.constant 5.96046448E-8 : f32
    %296 = vector.broadcast %cst_89 : f32 to vector<8x1024xf32>
    %297 = arith.mulf %295, %296 : vector<8x1024xf32>
    %298 = arith.mulf %267, %297 : vector<8x1024xf32>
    %299 = arith.cmpf ogt, %298, %82 : vector<8x1024xf32>
    %300 = arith.extui %299 : vector<8x1024xi1> to vector<8x1024xi32>
    %301 = arith.sitofp %300 : vector<8x1024xi32> to vector<8x1024xf32>
    %302 = arith.addf %271, %301 : vector<8x1024xf32>
    %c7_i32 = arith.constant 7 : i32
    %c-1028477379_i32_90 = arith.constant -1028477379 : i32
    %303 = arith.muli %c7_i32, %c-1028477379_i32_90 : i32
    %304 = arith.addi %83, %303 : i32
    %c-1640531535_i32_91 = arith.constant -1640531535 : i32
    %305 = vector.broadcast %c-1640531535_i32_91 : i32 to vector<8x1024xi32>
    %306 = arith.muli %9, %305 : vector<8x1024xi32>
    %307 = vector.broadcast %304 : i32 to vector<8x1024xi32>
    %308 = arith.addi %306, %307 : vector<8x1024xi32>
    %c16_i32_92 = arith.constant 16 : i32
    %309 = vector.broadcast %c16_i32_92 : i32 to vector<8x1024xi32>
    %310 = arith.shrui %308, %309 : vector<8x1024xi32>
    %311 = arith.xori %308, %310 : vector<8x1024xi32>
    %c2146121005_i32_93 = arith.constant 2146121005 : i32
    %312 = vector.broadcast %c2146121005_i32_93 : i32 to vector<8x1024xi32>
    %313 = arith.muli %311, %312 : vector<8x1024xi32>
    %c15_i32_94 = arith.constant 15 : i32
    %314 = vector.broadcast %c15_i32_94 : i32 to vector<8x1024xi32>
    %315 = arith.shrui %313, %314 : vector<8x1024xi32>
    %316 = arith.xori %313, %315 : vector<8x1024xi32>
    %c-2073254261_i32_95 = arith.constant -2073254261 : i32
    %317 = vector.broadcast %c-2073254261_i32_95 : i32 to vector<8x1024xi32>
    %318 = arith.muli %316, %317 : vector<8x1024xi32>
    %c16_i32_96 = arith.constant 16 : i32
    %319 = vector.broadcast %c16_i32_96 : i32 to vector<8x1024xi32>
    %320 = arith.shrui %318, %319 : vector<8x1024xi32>
    %321 = arith.xori %318, %320 : vector<8x1024xi32>
    %c8_i32_97 = arith.constant 8 : i32
    %322 = vector.broadcast %c8_i32_97 : i32 to vector<8x1024xi32>
    %323 = arith.shrui %321, %322 : vector<8x1024xi32>
    %324 = arith.uitofp %323 : vector<8x1024xi32> to vector<8x1024xf32>
    %cst_98 = arith.constant 5.000000e-01 : f32
    %325 = vector.broadcast %cst_98 : f32 to vector<8x1024xf32>
    %326 = arith.addf %324, %325 : vector<8x1024xf32>
    %cst_99 = arith.constant 5.96046448E-8 : f32
    %327 = vector.broadcast %cst_99 : f32 to vector<8x1024xf32>
    %328 = arith.mulf %326, %327 : vector<8x1024xf32>
    %329 = arith.mulf %298, %328 : vector<8x1024xf32>
    %330 = arith.cmpf ogt, %329, %82 : vector<8x1024xf32>
    %331 = arith.extui %330 : vector<8x1024xi1> to vector<8x1024xi32>
    %332 = arith.sitofp %331 : vector<8x1024xi32> to vector<8x1024xf32>
    %333 = arith.addf %302, %332 : vector<8x1024xf32>
    %c8_i32_100 = arith.constant 8 : i32
    %334 = arith.addf %77, %333 : vector<8x1024xf32>
    %c67109267_i32 = arith.constant 67109267 : i32
    %335 = arith.addi %10, %c67109267_i32 : i32
    %c-1640531535_i32_101 = arith.constant -1640531535 : i32
    %336 = vector.broadcast %c-1640531535_i32_101 : i32 to vector<8x1024xi32>
    %337 = arith.muli %9, %336 : vector<8x1024xi32>
    %338 = vector.broadcast %335 : i32 to vector<8x1024xi32>
    %339 = arith.addi %337, %338 : vector<8x1024xi32>
    %c16_i32_102 = arith.constant 16 : i32
    %340 = vector.broadcast %c16_i32_102 : i32 to vector<8x1024xi32>
    %341 = arith.shrui %339, %340 : vector<8x1024xi32>
    %342 = arith.xori %339, %341 : vector<8x1024xi32>
    %c2146121005_i32_103 = arith.constant 2146121005 : i32
    %343 = vector.broadcast %c2146121005_i32_103 : i32 to vector<8x1024xi32>
    %344 = arith.muli %342, %343 : vector<8x1024xi32>
    %c15_i32_104 = arith.constant 15 : i32
    %345 = vector.broadcast %c15_i32_104 : i32 to vector<8x1024xi32>
    %346 = arith.shrui %344, %345 : vector<8x1024xi32>
    %347 = arith.xori %344, %346 : vector<8x1024xi32>
    %c-2073254261_i32_105 = arith.constant -2073254261 : i32
    %348 = vector.broadcast %c-2073254261_i32_105 : i32 to vector<8x1024xi32>
    %349 = arith.muli %347, %348 : vector<8x1024xi32>
    %c16_i32_106 = arith.constant 16 : i32
    %350 = vector.broadcast %c16_i32_106 : i32 to vector<8x1024xi32>
    %351 = arith.shrui %349, %350 : vector<8x1024xi32>
    %352 = arith.xori %349, %351 : vector<8x1024xi32>
    %c214748365_i32 = arith.constant 214748365 : i32
    %353 = vector.broadcast %c214748365_i32 : i32 to vector<8x1024xi32>
    %354 = arith.cmpi uge, %352, %353 : vector<8x1024xi32>
    %cst_107 = arith.constant 1.05263162 : f32
    %355 = vector.broadcast %cst_107 : f32 to vector<8x1024xf32>
    %356 = arith.mulf %0, %355 : vector<8x1024xf32>
    %cst_108 = arith.constant 0.000000e+00 : f32
    %357 = vector.broadcast %cst_108 : f32 to vector<8x1024xf32>
    %358 = arith.select %354, %356, %357 : vector<8x1024xi1>, vector<8x1024xf32>
    %359 = arith.addf %334, %358 : vector<8x1024xf32>
    %c0_109 = arith.constant 0 : index
    %c0_110 = arith.constant 0 : index
    %360 = vector.load %arg3[%c0_109, %c0_110] : memref<8x1024xf32, #tpu.memory_space<vmem>>, vector<8x1024xf32>
    tpu.vector_store %arg3[%c0_109, %c0_110], %359 {strides = array<i32>} : memref<8x1024xf32, #tpu.memory_space<vmem>>, vector<8x1024xf32>,
    return
  }
  func.func @transform_0(%arg0: i32, %arg1: memref<1xi32, #tpu.memory_space<smem>>) -> (i32, i32) {
    %c0_i32 = arith.constant 0 : i32
    %c0_i32_0 = arith.constant 0 : i32
    return %c0_i32, %arg0 : i32, i32
  }
  func.func @transform_1(%arg0: i32, %arg1: memref<1xi32, #tpu.memory_space<smem>>) -> (i32, i32) {
    %c0_i32 = arith.constant 0 : i32
    %c0_i32_0 = arith.constant 0 : i32
    return %c0_i32, %arg0 : i32, i32
  }
}

</mosaic_0001>

<bundles_post_ra>
// kernel: tpu_custom_call.1
= control target key start
LH: loop header
LB: loop body
LE: loop exit
PB: predicated region body
PF: predicated region fallthrough
CT: control target
= control target key end

     0   :  { %s4820_s0 = inlined_call_operand.<no memory space> [shape: s32[1], index: 0, kind: input, shape index: {}]   ;;  %s4821_s1 = inlined_call_operand.hbm [shape: f32[8,2048], index: 1, kind: input, shape index: {}]   ;;  %s4822_s2 = inlined_call_operand.hbm [shape: f32[8,2048], index: 2, kind: output, shape index: {}]  }
   0x1   :  { %7 = sst [smem:[#allocation3]] %s4820_s0 }
   0x2   :  { %8 = vsyncpa [#allocation5], 0 }
   0x3   :  { %10 = vsyncpa [#allocation5 + $0x1], 0 }
   0x4   :  { %11 = vsyncpa [#allocation6], 0 }
   0x5   :  { %13 = vsyncpa [#allocation6 + $0x1], 0  ;;  %s3319_s11 = smov 0   ;;  %s3321_s12 = smov 0  }
   0x6   :  { %s3323_s13 = smov 0   ;;  %s3325_s14 = smov 0  }
   0x7 LB: > { %s3340_s0 = sadd.s32 4294967295, %s3290_s14   ;;  %s2956_s15 = sadd.s32 4294967294, %s3290_s14   ;;  %s3290_s14 = sphi %s3325_s14, %s4954_s14   ;;  %s3286_s13 = sphi %s3323_s13, %s4953_s13   ;;  %s3282_s12 = sphi %s3321_s12, %s4952_s12   ;;  %s3278_s11 = sphi %s3319_s11, %s4951_s11  }
   0x8   : > { %s3344_s16 = sadd.s32 1, %s3290_s14   ;;  %s26_s17 = sadd.s32 1, %s3286_s13 }
   0x9   : > { %s23_s18 = ssub.s32 %s3290_s14, %s3344_s16  ;;  %p33_p0 = scmp.ne.s32.totalorder %s3286_s13, %s3282_s12 }
   0xa   : > { %p24_p1 = scmp.eq.s32.totalorder %s23_s18, 0  ;;  %p34_p2 = scmp.eq.s32.totalorder %s3290_s14, 0 }
   0xb   : > { %p39_p3 = scmp.ne.s32.totalorder %s3282_s12, %s3278_s11  ;;  %p40_p4 = scmp.eq.s32.totalorder %s3340_s0, 0 }
   0xc   : > { %s3356_s19 = scalar_select %p24_p1, %s3286_s13, %s26_s17  }
   0xd   : > { %p3358_p5 = por %p34_p2, %p33_p0  ;;  %p3362_p6 = por %p40_p4, %p39_p3 }
   0xe   : > { %p63_p7 = scmp.eq.s32.totalorder %s3340_s0, 1  ;;  %p69_p8 = scmp.eq.s32.totalorder %s2956_s15, 1 }
   0xf   : > { %s4856_s21 = scalar_select %p3362_p6, 1, 0 }
  0x10   : > { %p3097_p10 = scmp.lt.s32.totalorder %s3290_s14, 2  ;;  %p3369_p11 = por %p63_p7, %p33_p0 }
  0x11   : > { %p3373_p12 = por %p69_p8, %p39_p3  ;;  %s89_s24 = sand.u32 1, %s3286_s13  }
  0x12   : > { %s4857_s22 = scalar_select %p3369_p11, 1, 0 }
  0x13   : > { %s4858_s23 = scalar_select %p3373_p12, 1, 0 }
  0x14   : > { %s3067_s25 = sshll.u32 %s3290_s14, 10  ;;  %s2959_s26 = sshll.u32 %s89_s24, 6 }
  0x15   : > { %s3382_s29 = scalar_lea.hbm %s4821_s1, %s3067_s25  ;;  %s93_s30 = scalar_lea.vmem [#allocation4], %s2959_s26 }
  0x16   : > { %s101_s3 = sshll.u32 %s93_s30, 4  ;;  %p3386_p13 = pnand %p3097_p10, %p3358_p5  ;;  %s3390_s3 = int_to_ptr.vmem [resolvable:$true] %s101_s3 }
  0x17   : > { %s90_s5 = scalar_lea.sflag [#allocation5], %s89_s24  ;;  %s3198_s6 = scalar_lea.hbm %s3382_s29, 1024 }
  0x18   : > { %p3199_p2 = scmp.ne.s32.totalorder %s3382_s29, %s3198_s6  ;;  %p3200_p3 = pneg %p3386_p13 }
  0x19   : > { %s3203_s9 = scalar_lea.hbm %s4821_s1, 2048  ;;  %p3204_p5 = scmp.lt.s32.totalorder %s3382_s29, %s4821_s1 }
  0x1a   : > { %p3201_p4 = pnand %p3200_p3, %p3199_p2  ;;  %p3205_p8 = scmp.lt.s32.totalorder %s3203_s9, %s3198_s6 }
  0x1c   : > { %p3202_p7 = pneg %p3201_p4  ;;  %p3206_p10 = por %p3205_p8, %p3204_p5 }
  0x1e   : > { %p3207_p9 = pnand %p3206_p10, %p3202_p7 }
  0x20   : > { %3210 = shalt.err (!%p3207_p9)
}
  0x21   : > { %s3211_s17 = scalar_lea.vmem %s3390_s3, 1024  ;;  %s3292_s18 = smov [#allocation4]  }
  0x22   : > { %p3212_p0 = scmp.ne.s32.totalorder %s3390_s3, %s3211_s17  ;;  %s3216_s20 = sshll.u32 %s3292_s18, 4  ;;  %s3217_s20 = int_to_ptr.vmem [resolvable:$false] %s3216_s20 }
  0x23   : > { %s3218_s24 = scalar_lea.vmem %s3217_s20, 2048  ;;  %p3219_p4 = scmp.lt.s32.totalorder %s3390_s3, %s3217_s20 }
  0x24   : > { %p3214_p1 = pnand %p3212_p0, %p3200_p3  ;;  %p3220_p12 = scmp.lt.s32.totalorder %s3218_s24, %s3211_s17 }
  0x26   : > { %p3215_p2 = pneg %p3214_p1  ;;  %p3221_p11 = por %p3220_p12, %p3219_p4 }
  0x28   : > { %p3222_p6 = pnand %p3221_p11, %p3215_p2 }
  0x2a   : > { %3225 = shalt.err (!%p3222_p6)
}
  0x2b   : > { %3092 = dma.hbm_to_vmem [thread:$0]  (!%p3386_p13), %s3382_s29, 1024, %s3390_s3, %s90_s5  }
  0x2c   : > { %p4860_p9 = scmp.lt.s32.totalorder %s3290_s14, 3  ;;  %p4861_p7 = scmp.ge.s32.totalorder %s3290_s14, 1 }
  0x2e   : > { %p107_p0 = pnand %p4861_p7, %p4860_p9 }
  0x30   : > { %110 = sbr.rel (%p107_p0) target bundleno = 643 (0x283), region = 24 }
  0x35   : > { %s3417_s25 = sand.u32 1, %s3282_s12   ;;  %p4862_p6 = scmp.ne.s32.totalorder %s4856_s21, 0 }
  0x36   : > { %s2963_s26 = sshll.u32 %s3417_s25, 6  ;;  %s113_s27 = scalar_lea.sflag [#allocation5], %s3417_s25 }
  0x37   : > { %s3423_s28 = scalar_lea.vmem [#allocation4], %s2963_s26 }
  0x38   : > { %3269 = dma.done.wait (%p4862_p6), %s113_s27, 1024  }
  0x39   : > { %3271 = vsyncadd (%p4862_p6), %s113_s27, 4294966272  ;;  %s2965_s29 = sshll.u32 %s3340_s0, 10  ;;  %v147_v0 = vlaneseq  ;;  %s145_s30 = sld [smem:[#allocation3]] }
  0x3a   : > { %v158_v2 = vstv %s2965_s29  ;;  %s134_s20 = scalar_lea.vmem [#allocation7], %s2963_s26  ;;  %p4948_p12 = scmp.ne.s32.totalorder %s4857_s22, 0 }
  0x3b   : > { %v150_v1 = vand.u32 127, %v147_v0  ;;  %v148_v3 = vshrl.u32 %v147_v0, 7  ;;  %s2886_s24 = sshll.u32 %s134_s20, 4  ;;  %s3300_s0 = smov [#allocation7]   ;;  %s4779_s24 = int_to_ptr.vmem [resolvable:$true] %s2886_s24 }
  0x3d   : > { %v151_v4 = vadd.s32 128, %v150_v1  ;;  %v152_v5 = vadd.s32 256, %v150_v1  ;;  %v153_v6 = vadd.s32 384, %v150_v1  ;;  %v154_v7 = vadd.s32 512, %v150_v1 }
  0x3e   : > { %v155_v8 = vadd.s32 640, %v150_v1  ;;  %v156_v9 = vadd.s32 768, %v150_v1  ;;  %v157_v10 = vadd.s32 896, %v150_v1  ;;  %v159_v11 = vadd.s32 %v158_v2, %v150_v1 }
  0x3f   : > { %v160_v12 = vadd.s32 %v158_v2, %v151_v4  ;;  %v161_v13 = vadd.s32 %v158_v2, %v152_v5  ;;  %v162_v14 = vadd.s32 %v158_v2, %v153_v6  ;;  %v163_v15 = vadd.s32 %v158_v2, %v154_v7  ;;  %s3432_s21 = smul.u32 2246822519, %s145_s30  ;;  %s2872_s30 = scalar_lea.sflag [#allocation6], %s3417_s25 }
  0x40   : > { %v164_v16 = vadd.s32 %v158_v2, %v155_v8  ;;  %v165_v17 = vadd.s32 %v158_v2, %v156_v9  ;;  %v166_v18 = vadd.s32 %v158_v2, %v157_v10  ;;  %v167_v19 = vmul.u32 2048, %v148_v3 }
  0x41   : > { %s177_s3 = sadd.s32 16777619, %s3432_s21  ;;  %s255_s4 = sadd.s32 33554835, %s3432_s21 }
  0x42   : > { %v168_v20 = vadd.s32 %v167_v19, %v159_v11  ;;  %v169_v21 = vadd.s32 %v167_v19, %v160_v12  ;;  %v170_v22 = vadd.s32 %v167_v19, %v161_v13  ;;  %v171_v23 = vadd.s32 %v167_v19, %v162_v14  ;;  %s1265_s5 = sadd.s32 50332051, %s3432_s21  ;;  %s1447_s6 = sadd.s32 3316821968, %s3432_s21 }
  0x43   : > { %v3436_v24 = vadd.s32 %v167_v19, %v163_v15  ;;  %v3438_v25 = vadd.s32 %v167_v19, %v164_v16  ;;  %v3440_v26 = vadd.s32 %v167_v19, %v165_v17  ;;  %v3442_v27 = vadd.s32 %v167_v19, %v166_v18  ;;  %s1633_s7 = sadd.s32 2288344589, %s3432_s21  ;;  %s1819_s8 = sadd.s32 1259867210, %s3432_s21 }
  0x44   : > { %v3444_v28 = vmul.u32 2654435761, %v168_v20  ;;  %v3446_v29 = vmul.u32 2654435761, %v169_v21  ;;  %v182_v30 = vstv %s177_s3  ;;  %v256_v31 = vstv %s255_s4  ;;  %s2005_s9 = sadd.s32 231389831, %s3432_s21 }
  0x45   : > { %v3448_v32 = vmul.u32 2654435761, %v170_v22  ;;  %v3450_v33 = vmul.u32 2654435761, %v171_v23  ;;  %s2191_s10 = sadd.s32 3497879748, %s3432_s21 }
  0x46   : > { %4863 = vst [vmem:[#allocation10_spill] sm:$0xff] %v3444_v28  ;;  %4864 = vst [vmem:[#allocation11_spill] sm:$0xff] %v3446_v29  ;;  %v183_v34 = vadd.s32 %v182_v30, %v3444_v28  ;;  %v184_v35 = vadd.s32 %v182_v30, %v3446_v29  ;;  %v257_v36 = vadd.s32 %v256_v31, %v3444_v28  ;;  %s2377_s15 = sadd.s32 2469402369, %s3432_s21  ;;  %s2563_s17 = sadd.s32 1440924990, %s3432_s21 }
  0x47   : > { %v258_v37 = vadd.s32 %v256_v31, %v3446_v29  ;;  %v185_v38 = vadd.s32 %v182_v30, %v3448_v32  ;;  %v186_v39 = vadd.s32 %v182_v30, %v3450_v33  ;;  %v259_v40 = vadd.s32 %v256_v31, %v3448_v32  ;;  %s2757_s18 = sadd.s32 67109267, %s3432_s21  ;;  %s3226_s21 = scalar_lea.vmem %s4779_s24, 1024 }
  0x48   : > { %v260_v41 = vadd.s32 %v256_v31, %v3450_v33  ;;  %v187_v42 = vshrl.u32 %v183_v34, 16  ;;  %v188_v43 = vshrl.u32 %v184_v35, 16  ;;  %v261_v44 = vshrl.u32 %v257_v36, 16  ;;  %p3227_p11 = scmp.ne.s32.totalorder %s4779_s24, %s3226_s21 }
  0x49   : > { %v262_v45 = vshrl.u32 %v258_v37, 16  ;;  %v189_v46 = vshrl.u32 %v185_v38, 16  ;;  %v190_v47 = vshrl.u32 %v186_v39, 16  ;;  %v263_v48 = vshrl.u32 %v259_v40, 16 }
  0x4a   : > { %v264_v49 = vshrl.u32 %v260_v41, 16  ;;  %v191_v50 = vxor.u32 %v187_v42, %v183_v34  ;;  %v192_v51 = vxor.u32 %v188_v43, %v184_v35  ;;  %v265_v52 = vxor.u32 %v261_v44, %v257_v36  ;;  %p3228_p13 = pnand %p3227_p11, %p4948_p12 }
  0x4b   : > { %v266_v53 = vxor.u32 %v262_v45, %v258_v37  ;;  %v193_v54 = vxor.u32 %v189_v46, %v185_v38  ;;  %v194_v55 = vxor.u32 %v190_v47, %v186_v39  ;;  %v267_v56 = vxor.u32 %v263_v48, %v259_v40 }
  0x4c   : > { %v268_v57 = vxor.u32 %v264_v49, %v260_v41  ;;  %v195_v58 = vmul.u32 2146121005, %v191_v50  ;;  %v196_v59 = vmul.u32 2146121005, %v192_v51  ;;  %p3229_p1 = pneg %p3228_p13 }
  0x4d   : > { %v197_v60 = vmul.u32 2146121005, %v193_v54  ;;  %v198_v61 = vmul.u32 2146121005, %v194_v55 }
  0x4e   : > { %v199_v62 = vshrl.u32 %v195_v58, 15  ;;  %v200_v63 = vshrl.u32 %v196_v59, 15  ;;  %v269_v0 = vmul.u32 2146121005, %v265_v52  ;;  %v270_v1 = vmul.u32 2146121005, %v266_v53 }
  0x4f   : > { %v201_v2 = vshrl.u32 %v197_v60, 15  ;;  %v202_v3 = vshrl.u32 %v198_v61, 15  ;;  %v271_v4 = vmul.u32 2146121005, %v267_v56  ;;  %v272_v5 = vmul.u32 2146121005, %v268_v57 }
  0x50   : > { %v203_v6 = vxor.u32 %v199_v62, %v195_v58  ;;  %v204_v7 = vxor.u32 %v200_v63, %v196_v59  ;;  %v273_v8 = vshrl.u32 %v269_v0, 15  ;;  %v274_v9 = vshrl.u32 %v270_v1, 15 }
  0x51   : > { %v205_v10 = vxor.u32 %v201_v2, %v197_v60  ;;  %v206_v11 = vxor.u32 %v202_v3, %v198_v61  ;;  %v275_v12 = vshrl.u32 %v271_v4, 15  ;;  %v276_v13 = vshrl.u32 %v272_v5, 15 }
  0x52   : > { %v207_v14 = vmul.u32 2221713035, %v203_v6  ;;  %v208_v15 = vmul.u32 2221713035, %v204_v7  ;;  %v277_v16 = vxor.u32 %v273_v8, %v269_v0  ;;  %v278_v17 = vxor.u32 %v274_v9, %v270_v1 }
  0x53   : > { %v209_v18 = vmul.u32 2221713035, %v205_v10  ;;  %v210_v19 = vmul.u32 2221713035, %v206_v11  ;;  %v279_v20 = vxor.u32 %v275_v12, %v271_v4  ;;  %v280_v21 = vxor.u32 %v276_v13, %v272_v5 }
  0x54   : > { %v211_v22 = vshrl.u32 %v207_v14, 16  ;;  %v212_v23 = vshrl.u32 %v208_v15, 16  ;;  %v281_v30 = vmul.u32 2221713035, %v277_v16  ;;  %v282_v31 = vmul.u32 2221713035, %v278_v17 }
  0x55   : > { %v213_v34 = vshrl.u32 %v209_v18, 16  ;;  %v214_v35 = vshrl.u32 %v210_v19, 16  ;;  %v283_v36 = vmul.u32 2221713035, %v279_v20  ;;  %v284_v37 = vmul.u32 2221713035, %v280_v21 }
  0x56   : > { %v215_v38 = vxor.u32 %v211_v22, %v207_v14  ;;  %v216_v39 = vxor.u32 %v212_v23, %v208_v15  ;;  %v285_v40 = vshrl.u32 %v281_v30, 16  ;;  %v286_v41 = vshrl.u32 %v282_v31, 16 }
  0x57   : > { %v217_v42 = vxor.u32 %v213_v34, %v209_v18  ;;  %v218_v43 = vxor.u32 %v214_v35, %v210_v19  ;;  %v287_v44 = vshrl.u32 %v283_v36, 16  ;;  %v288_v47 = vshrl.u32 %v284_v37, 16 }
  0x58   : > { %v219_v45 = vshrl.u32 %v215_v38, 8  ;;  %v220_v46 = vshrl.u32 %v216_v39, 8  ;;  %v289_v48 = vxor.u32 %v285_v40, %v281_v30  ;;  %v290_v51 = vxor.u32 %v286_v41, %v282_v31 }
  0x59   : > { %v221_v49 = vshrl.u32 %v217_v42, 8  ;;  %v222_v50 = vshrl.u32 %v218_v43, 8  ;;  %v291_v52 = vxor.u32 %v287_v44, %v283_v36  ;;  %v292_v3 = vxor.u32 %v288_v47, %v284_v37 }
  0x5a   : > { %v223_v53 = vshrl.u32 %v219_v45, 16  ;;  %v224_v54 = vand.u32 65535, %v219_v45  ;;  %v229_v55 = vshrl.u32 %v220_v46, 16  ;;  %v230_v56 = vand.u32 65535, %v220_v46 }
  0x5b   : > { %v235_v57 = vshrl.u32 %v221_v49, 16  ;;  %v236_v58 = vand.u32 65535, %v221_v49  ;;  %v241_v59 = vshrl.u32 %v222_v50, 16  ;;  %v242_v60 = vand.u32 65535, %v222_v50 }
  0x5c   : > { %v225_v61 = vcvt.s32.f32 %v223_v53  ;;  %v227_v62 = vcvt.s32.f32 %v224_v54  ;;  %v231_v63 = vcvt.s32.f32 %v229_v55  ;;  %v233_v0 = vcvt.s32.f32 %v230_v56 }
  0x5d   : > { %v237_v1 = vcvt.s32.f32 %v235_v57  ;;  %v243_v2 = vcvt.s32.f32 %v241_v59  ;;  %v293_v6 = vshrl.u32 %v289_v48, 8  ;;  %v294_v7 = vshrl.u32 %v290_v51, 8 }
  0x5e   : > { %v226_v4 = vmul.f32 65536.0, %v225_v61  ;;  %v232_v5 = vmul.f32 65536.0, %v231_v63  ;;  %v239_v9 = vcvt.s32.f32 %v236_v58  ;;  %v245_v10 = vcvt.s32.f32 %v242_v60 }
  0x5f   : > { %v238_v8 = vmul.f32 65536.0, %v237_v1  ;;  %v295_v11 = vshrl.u32 %v291_v52, 8  ;;  %v297_v14 = vshrl.u32 %v293_v6, 16  ;;  %v298_v15 = vand.u32 65535, %v293_v6 }
  0x60   : > { %v228_v12 = vadd.f32 %v227_v62, %v226_v4  ;;  %v234_v13 = vadd.f32 %v233_v0, %v232_v5  ;;  %v244_v16 = vmul.f32 65536.0, %v243_v2  ;;  %v296_v17 = vshrl.u32 %v292_v3, 8 }
  0x61   : > { %v303_v18 = vshrl.u32 %v294_v7, 16  ;;  %v304_v19 = vand.u32 65535, %v294_v7  ;;  %v299_v22 = vcvt.s32.f32 %v297_v14  ;;  %v301_v23 = vcvt.s32.f32 %v298_v15  ;;  %v3469_v15 = vld [vmem:[%s3423_s28] sm:$0xff] }
  0x62   : > { %v247_v20 = vadd.f32 0.5, %v228_v12  ;;  %v248_v21 = vadd.f32 0.5, %v234_v13  ;;  %v240_v30 = vadd.f32 %v239_v9, %v238_v8  ;;  %v309_v37 = vshrl.u32 %v295_v11, 16 }
  0x63   : > { %v305_v31 = vcvt.s32.f32 %v303_v18  ;;  %v307_v34 = vcvt.s32.f32 %v304_v19  ;;  %v300_v36 = vmul.f32 65536.0, %v299_v22  ;;  %v246_v38 = vadd.f32 %v245_v10, %v244_v16  ;;  %v3472_v16 = vld [vmem:[%s3423_s28 + $0x8] sm:$0xff]  ;;  %v3479_v19 = vld [vmem:[%s3423_s28 + $0x10] sm:$0xff]  ;;  %v3487_v22 = vld [vmem:[%s3423_s28 + $0x20] sm:$0xff] }
  0x64   : > { %v251_v35 = vmul.f32 5.9604645e-08, %v247_v20  ;;  %v252_v39 = vmul.f32 5.9604645e-08, %v248_v21  ;;  %v310_v41 = vand.u32 65535, %v295_v11  ;;  %v311_v43 = vcvt.s32.f32 %v309_v37  ;;  %v3482_v20 = vld [vmem:[%s3423_s28 + $0x18] sm:$0xff] }
  0x65   : > { %v306_v40 = vmul.f32 65536.0, %v305_v31  ;;  %v302_v42 = vadd.f32 %v301_v23, %v300_v36  ;;  %v315_v44 = vshrl.u32 %v296_v17, 16  ;;  %v249_v45 = vadd.f32 0.5, %v240_v30  ;;  %v3490_v23 = vld [vmem:[%s3423_s28 + $0x28] sm:$0xff]  ;;  %v3493_v30 = vld [vmem:[%s3423_s28 + $0x30] sm:$0xff] }
  0x66   : > { %v313_v47 = vcvt.s32.f32 %v310_v41  ;;  %3138 = vlog2.f32 %v251_v35  ;;  %v312_v48 = vmul.f32 65536.0, %v311_v43  ;;  %v316_v49 = vand.u32 65535, %v296_v17  ;;  %v3496_v35 = vld [vmem:[%s3423_s28 + $0x38] sm:$0xff] }
  0x67   : > { %v308_v46 = vadd.f32 %v307_v34, %v306_v40  ;;  %v317_v50 = vcvt.s32.f32 %v315_v44  ;;  %v321_v51 = vadd.f32 0.5, %v302_v42  ;;  %v250_v52 = vadd.f32 0.5, %v246_v38 }
  0x68   : > { %3140 = vlog2.f32 %v252_v39  ;;  %v253_v55 = vmul.f32 5.9604645e-08, %v249_v45  ;;  %v314_v56 = vadd.f32 %v313_v47, %v312_v48  ;;  %v319_v59 = vcvt.s32.f32 %v316_v49 }
  0x69   : > { %v322_v53 = vadd.f32 0.5, %v308_v46  ;;  %v325_v54 = vmul.f32 5.9604645e-08, %v321_v51  ;;  %v318_v58 = vmul.f32 65536.0, %v317_v50  ;;  %v254_v61 = vmul.f32 5.9604645e-08, %v250_v52 }
  0x6a   : > { %v323_v63 = vadd.f32 0.5, %v314_v56  ;;  %3142 = vlog2.f32 %v253_v55  ;;  %v1233_v38 = vmax.f32 %v3469_v15, 0.0 }
  0x6b   : > { %v326_v57 = vmul.f32 5.9604645e-08, %v322_v53  ;;  %v3460_v60 = vmul.f32 6.2831855, %v325_v54  ;;  %v320_v1 = vadd.f32 %v319_v59, %v318_v58  ;;  %3144 = vlog2.f32 %v254_v61 }
  0x6c   : > { %v327_v7 = vmul.f32 5.9604645e-08, %v323_v63  ;;  %v3515_v54 = vsub.f32 0.0, %v1233_v38 }
  0x6d   : > { %v3462_v62 = vmul.f32 6.2831855, %v326_v57  ;;  %v376_v0 = vand.u32 2139095040, %v3460_v60  ;;  %v4827_v4 = vand.u32 2147483647, %v3460_v60  ;;  %v324_v10 = vadd.f32 0.5, %v320_v1 }
  0x6e   : > { %v3484_v21 = vmul.f32 6.2831855, %v327_v7  ;;  %v4832_v7 = vmov 2475754826  }
  0x6f   : > { %v479_v2 = vand.u32 2139095040, %v3462_v62  ;;  %v377_v3 = vshrl.u32 %v376_v0, 23  ;;  %v4826_v5 = vand.u32 2147483647, %v3462_v62  ;;  %v380_v17 = vand.u32 8388607, %v4827_v4 }
  0x70   : > { %v328_v31 = vmul.f32 5.9604645e-08, %v324_v10  ;;  %v582_v45 = vand.u32 2139095040, %v3484_v21  ;;  %v4825_v53 = vand.u32 2147483647, %v3484_v21 }
  0x71   : > { %v480_v6 = vshrl.u32 %v479_v2, 23  ;;  %v2966_v8 = vadd.s32 4294967169, %v377_v3  ;;  %v483_v18 = vand.u32 8388607, %v4826_v5  ;;  %v381_v40 = vor.u32 8388608, %v380_v17 }
  0x72   : > { %v3507_v49 = vmul.f32 6.2831855, %v328_v31  ;;  %v583_v1 = vshrl.u32 %v582_v45, 23  ;;  %v3293_v3 = vmov 683565275  }
  0x73   : > { %v3139_v9 = vpop.eup %3138  ;;  %v2970_v11 = vadd.s32 4294967169, %v480_v6  ;;  %v383_v13 = vadd.s32 1, %v2966_v8  ;;  %v484_v41 = vor.u32 8388608, %v483_v18  ;;  %v3517_v57 = vshll.u32 %v381_v40, 8 }
  0x74   : > { %v330_v12 = vmul.f32 0.6931472, %v3139_v9  ;;  %v4830_v9 = vmov 2131351028   ;;  %v3298_v40 = vmov 1326507024  }
  0x75   : > { %v3141_v14 = vpop.eup %3140  ;;  %vm384_vm0 = vcmp.gt.s32.totalorder %v383_v13, 0  ;;  %v486_v34 = vadd.s32 1, %v2970_v11  ;;  %v3519_v58 = vshll.u32 %v484_v41, 8 }
  0x76   : > { %v332_v36 = vmul.f32 0.6931472, %v3141_v14  ;;  %v3498_v37 = vmul.f32 -2.0, %v330_v12  ;;  %v385_v44 = vsel %vm384_vm0, %v383_v13, 0  ;;  %v4828_v12 = vmov 2102212464  }
  0x77   : > { %v3143_v48 = vpop.eup %3142  ;;  %vm487_vm1 = vcmp.gt.s32.totalorder %v486_v34, 0  ;;  %v387_v56 = vand.u32 31, %v385_v44  ;;  %v386_v63 = vshrl.u32 %v385_v44, 5  ;;  %v3297_v14 = vmov 920167782  }
  0x78   : > { %v3511_v52 = vmul.f32 -2.0, %v332_v36  ;;  %3146 = vrsqrt.f32 %v3498_v37  ;;  %v3145_v55 = vpop.eup %3144  ;;  %v334_v61 = vmul.f32 0.6931472, %v3143_v48  ;;  %v488_v0 = vsel %vm487_vm1, %v486_v34, 0 }
  0x79   : > { %v388_v2 = vsub.s32 32, %v387_v56  ;;  %v390_v6 = vshll.u32 %v3293_v3, %v387_v56  ;;  %v393_v8 = vshll.u32 %v4832_v7, %v387_v56  ;;  %v396_v10 = vshll.u32 %v4830_v9, %v387_v56 }
  0x7a   : > { %v336_v11 = vmul.f32 0.6931472, %v3145_v55  ;;  %3148 = vrsqrt.f32 %v3511_v52  ;;  %v399_v13 = vshll.u32 %v4828_v12, %v387_v56  ;;  %v402_v17 = vshll.u32 %v3297_v14, %v387_v56 }
  0x7b   : > { %v391_v18 = vshrl.u32 %v4832_v7, %v388_v2  ;;  %v394_v31 = vshrl.u32 %v4830_v9, %v388_v2  ;;  %v397_v34 = vshrl.u32 %v4828_v12, %v388_v2  ;;  %v490_v36 = vand.u32 31, %v488_v0 }
  0x7c   : > { %v400_v38 = vshrl.u32 %v3297_v14, %v388_v2  ;;  %v403_v41 = vshrl.u32 %v3298_v40, %v388_v2  ;;  %vm405_vm2 = vcmp.lt.s32.totalorder %v386_v63, 1  ;;  %vm408_vm3 = vcmp.lt.s32.totalorder %v386_v63, 4 }
  0x7d   : > { %v389_v44 = vshrl.u32 %v3293_v3, %v388_v2  ;;  %v392_v45 = vor.u32 %v391_v18, %v390_v6  ;;  %v395_v48 = vor.u32 %v394_v31, %v393_v8  ;;  %v398_v55 = vor.u32 %v397_v34, %v396_v10 }
  0x7e   : > { %v401_v56 = vor.u32 %v400_v38, %v399_v13  ;;  %v404_v51 = vor.u32 %v403_v41, %v402_v17  ;;  %vm406_vm4 = vcmp.lt.s32.totalorder %v386_v63, 2  ;;  %vm407_vm5 = vcmp.lt.s32.totalorder %v386_v63, 3 }
  0x7f   : > { %v410_v50 = vsel %vm408_vm3, %v398_v55, 2102212464  ;;  %v413_v47 = vsel %vm405_vm2, %v392_v45, %v395_v48  ;;  %v417_v46 = vsel %vm405_vm2, %v395_v48, %v398_v55  ;;  %v491_v43 = vsub.s32 32, %v490_v36 }
  0x80   : > { %v3537_v42 = vmul.f32 -2.0, %v334_v61  ;;  %v3539_v39 = vmul.f32 -2.0, %v336_v11  ;;  %v414_v2 = vsel %vm408_vm3, %v401_v56, 920167782  ;;  %v418_v6 = vsel %vm408_vm3, %v404_v51, 1326507024 }
  0x81   : > { %v409_v8 = vsel %vm405_vm2, %v389_v44, %v392_v45  ;;  %v411_v10 = vsel %vm407_vm5, %v395_v48, %v410_v50  ;;  %v415_v13 = vsel %vm407_vm5, %v398_v55, %v414_v2  ;;  %v419_v17 = vsel %vm407_vm5, %v401_v56, %v418_v6 }
  0x82   : > { %v416_v18 = vsel %vm406_vm4, %v413_v47, %v415_v13  ;;  %v420_v31 = vsel %vm406_vm4, %v417_v46, %v419_v17  ;;  %v493_v34 = vshll.u32 %v3293_v3, %v490_v36  ;;  %v3549_v61 = vand.u32 8388607, %v4825_v53 }
  0x83   : > { %v3552_v38 = vmul.u32.u64.low %v3517_v57, %v420_v31  ;;  %v3553_v41 = vmul.u32.u64.high %v3517_v57, %v420_v31, %v3552_v38  ;;  %v494_v51 = vshrl.u32 %v4832_v7, %v491_v43  ;;  %v496_v50 = vshll.u32 %v4832_v7, %v490_v36 }
  0x84   : > { %3150 = vrsqrt.f32 %v3537_v42  ;;  %v412_v47 = vsel %vm406_vm4, %v409_v8, %v411_v10  ;;  %v3560_v46 = vmul.u32.u64.low %v3517_v57, %v416_v18  ;;  %v3561_v44 = vmul.u32.u64.high %v3517_v57, %v416_v18, %v3560_v46 }
  0x85   : > { %v3147_v11 = vpop.eup %3146  ;;  %3152 = vrsqrt.f32 %v3539_v39  ;;  %v489_v45 = vshrl.u32 %v488_v0, 5  ;;  %v497_v48 = vshrl.u32 %v4830_v9, %v491_v43  ;;  %v2974_v55 = vadd.s32 4294967169, %v583_v1 }
  0x86   : > { %v342_v56 = vmul.f32 %v3147_v11, %v3498_v37  ;;  %v492_v2 = vshrl.u32 %v3293_v3, %v491_v43  ;;  %v499_v6 = vshll.u32 %v4830_v9, %v490_v36  ;;  %v500_v63 = vshrl.u32 %v4828_v12, %v491_v43 }
  0x87   : > { %v3149_v8 = vpop.eup %3148  ;;  %vm343_vm6 = vcmp.eq.f32.partialorder %v3498_v37, inf  ;;  %v428_v10 = vmul.u32 %v3517_v57, %v412_v47  ;;  %vm430_vm7 = vc.u32 %v3553_v41, %v3560_v46  ;;  %v495_v0 = vor.u32 %v494_v51, %v493_v34 }
  0x88   : > { %v498_v13 = vor.u32 %v497_v48, %v496_v50  ;;  %v431_v1 = vadd.s32 1, %v3561_v44  ;;  %v501_v17 = vor.u32 %v500_v63, %v499_v6  ;;  %v502_v18 = vshll.u32 %v4828_v12, %v490_v36 }
  0x89   : > { %v503_v31 = vshrl.u32 %v3297_v14, %v491_v43  ;;  %v505_v11 = vshll.u32 %v3297_v14, %v490_v36  ;;  %v506_v38 = vshrl.u32 %v3298_v40, %v491_v43  ;;  %vm508_vm8 = vcmp.lt.s32.totalorder %v489_v45, 1 }
  0x8a   : > { %vm509_vm9 = vcmp.lt.s32.totalorder %v489_v45, 2  ;;  %vm345_vm10 = vcmp.eq.f32.partialorder %v3498_v37, 0.0  ;;  %v432_v57 = vsel %vm430_vm7, %v431_v1, %v3561_v44  ;;  %vm510_vm11 = vcmp.lt.s32.totalorder %v489_v45, 3 }
  0x8b   : > { %v504_v47 = vor.u32 %v503_v31, %v502_v18  ;;  %vm511_vm12 = vcmp.lt.s32.totalorder %v489_v45, 4  ;;  %v433_v34 = vadd.s32 %v432_v57, %v428_v10  ;;  %v507_v51 = vor.u32 %v506_v38, %v505_v11 }
  0x8c   : > { %v512_v50 = vsel %vm508_vm8, %v492_v2, %v495_v0  ;;  %v513_v48 = vsel %vm511_vm12, %v501_v17, 2102212464  ;;  %v516_v63 = vsel %vm508_vm8, %v495_v0, %v498_v13  ;;  %v520_v36 = vsel %vm508_vm8, %v498_v13, %v501_v17 }
  0x8d   : > { %v514_v6 = vsel %vm510_vm11, %v498_v13, %v513_v48  ;;  %v517_v53 = vsel %vm511_vm12, %v504_v47, 920167782  ;;  %v349_v43 = vmul.f32 %v3149_v8, %v3511_v52  ;;  %v434_v5 = vadd.s32 536870912, %v433_v34 }
  0x8e   : > { %v518_v59 = vsel %vm510_vm11, %v501_v17, %v517_v53  ;;  %v521_v4 = vsel %vm511_vm12, %v507_v51, 1326507024  ;;  %v515_v44 = vsel %vm509_vm9, %v512_v50, %v514_v6  ;;  %v589_v18 = vadd.s32 1, %v2974_v55 }
  0x8f   : > { %v519_v1 = vsel %vm509_vm9, %v516_v63, %v518_v59  ;;  %v522_v10 = vsel %vm510_vm11, %v504_v47, %v521_v4  ;;  %v3587_v2 = vshrl.u32 %v434_v5, 30  ;;  %vm350_vm13 = vcmp.eq.f32.partialorder %v3511_v52, inf }
  0x90   : > { %v523_v31 = vsel %vm509_vm9, %v520_v36, %v522_v10  ;;  %v3591_v0 = vmul.u32.u64.low %v3519_v58, %v519_v1  ;;  %v3592_v13 = vmul.u32.u64.high %v3519_v58, %v519_v1, %v3591_v0  ;;  %vm590_vm14 = vcmp.gt.s32.totalorder %v589_v18, 0 }
  0x91   : > { %v3597_v53 = vmul.u32.u64.low %v3519_v58, %v523_v31  ;;  %v3598_v8 = vmul.u32.u64.high %v3519_v58, %v523_v31, %v3597_v53  ;;  %v3151_v59 = vpop.eup %3150  ;;  %v346_v4 = vand.u32 2147483648, %v3498_v37  ;;  %vm352_vm15 = vcmp.eq.f32.partialorder %v3511_v52, 0.0 }
  0x92   : > { %v436_v5 = vshll.u32 %v3587_v2, 30  ;;  %v591_v45 = vsel %vm590_vm14, %v589_v18, 0  ;;  %v3153_v55 = vpop.eup %3152  ;;  %v344_v17 = vsel %vm343_vm6, %v3498_v37, %v342_v56  ;;  %v353_v11 = vand.u32 2147483648, %v3511_v52 }
  0x93   : > { %v531_v38 = vmul.u32 %v3519_v58, %v515_v44  ;;  %v593_v57 = vand.u32 31, %v591_v45  ;;  %v351_v47 = vsel %vm350_vm13, %v3511_v52, %v349_v43  ;;  %vm357_vm0 = vcmp.eq.f32.partialorder %v3537_v42, inf }
  0x94   : > { %v3610_v51 = vsub.s32 %v433_v34, %v436_v5  ;;  %v534_v50 = vadd.s32 1, %v3592_v13  ;;  %v360_v48 = vand.u32 2147483648, %v3537_v42  ;;  %vm533_vm1 = vc.u32 %v3598_v8, %v3591_v0 }
  0x95   : > { %v594_v56 = vsub.s32 32, %v593_v57  ;;  %v3619_v58 = vsel %vm345_vm10, %v346_v4, %v344_v17  ;;  %v587_v34 = vor.u32 8388608, %v3549_v61  ;;  %v3626_v43 = vsel %vm352_vm15, %v353_v11, %v351_v47 }
  0x96   : > { %v439_v63 = vsub.s32 0, %v3610_v51  ;;  %v535_v36 = vsel %vm533_vm1, %v534_v50, %v3592_v13  ;;  %v356_v44 = vmul.f32 %v3151_v59, %v3537_v42  ;;  %v3630_v1 = vmul.f32 %v3153_v55, %v3539_v39 }
  0x97   : > { %v536_v10 = vadd.s32 %v535_v36, %v531_v38  ;;  %vm359_vm2 = vcmp.eq.f32.partialorder %v3537_v42, 0.0  ;;  %v3634_v18 = vshrl.u32 %v591_v45, 5  ;;  %v596_v31 = vshll.u32 %v3293_v3, %v593_v57 }
  0x98   : > { %v2967_v37 = vmin.u32 %v439_v63, %v3610_v51  ;;  %v597_v61 = vshrl.u32 %v4832_v7, %v594_v56  ;;  %v599_v52 = vshll.u32 %v4832_v7, %v593_v57  ;;  %v600_v53 = vshrl.u32 %v4830_v9, %v594_v56 }
  0x99   : > { %v537_v13 = vadd.s32 536870912, %v536_v10  ;;  %v602_v59 = vshll.u32 %v4830_v9, %v593_v57  ;;  %v603_v5 = vshrl.u32 %v4828_v12, %v594_v56  ;;  %v605_v55 = vshll.u32 %v4828_v12, %v593_v57 }
  0x9a   : > { %v441_v4 = vclz %v2967_v37  ;;  %v606_v17 = vshrl.u32 %v3297_v14, %v594_v56  ;;  %v358_v45 = vsel %vm357_vm0, %v3537_v42, %v356_v44  ;;  %v608_v38 = vshll.u32 %v3297_v14, %v593_v57 }
  0x9b   : > { %v3647_v11 = vshrl.u32 %v537_v13, 30  ;;  %v609_v47 = vshrl.u32 %v3298_v40, %v594_v56  ;;  %v429_v50 = vadd.s32 %v3560_v46, %v3553_v41  ;;  %v595_v36 = vshrl.u32 %v3293_v3, %v594_v56 }
  0x9c   : > { %v2968_v63 = vadd.s32 4294967294, %v441_v4  ;;  %v685_v37 = vand.u32 2139095040, %v3507_v49  ;;  %v598_v12 = vor.u32 %v597_v61, %v596_v31  ;;  %v601_v9 = vor.u32 %v600_v53, %v599_v52 }
  0x9d   : > { %v539_v6 = vshll.u32 %v3647_v11, 30  ;;  %v604_v7 = vor.u32 %v603_v5, %v602_v59  ;;  %v607_v44 = vor.u32 %v606_v17, %v605_v55  ;;  %vm611_vm4 = vcmp.lt.s32.totalorder %v3634_v18, 1 }
  0x9e   : > { %vm2969_vm3 = vcmp.lt.s32.totalorder %v2968_v63, 0  ;;  %vm614_vm5 = vcmp.lt.s32.totalorder %v3634_v18, 4  ;;  %v610_v41 = vor.u32 %v609_v47, %v608_v38  ;;  %vm375_vm6 = vcmp.lt.s32.totalorder %v3460_v60, 0 }
  0x9f   : > { %v444_v57 = vsel %vm2969_vm3, 0, %v2968_v63  ;;  %v3658_v13 = vsub.s32 %v536_v10, %v539_v6  ;;  %v616_v46 = vsel %vm614_vm5, %v604_v7, 2102212464  ;;  %vm613_vm7 = vcmp.lt.s32.totalorder %v3634_v18, 3 }
  0xa0   : > { %v445_v56 = vsub.s32 32, %v444_v57  ;;  %v446_v31 = vshll.u32 %v3610_v51, %v444_v57  ;;  %v449_v61 = vsub.s32 4294967266, %v444_v57  ;;  %vm612_vm8 = vcmp.lt.s32.totalorder %v3634_v18, 2 }
  0xa1   : > { %v542_v52 = vsub.s32 0, %v3658_v13  ;;  %v615_v6 = vsel %vm611_vm4, %v595_v36, %v598_v12  ;;  %v617_v10 = vsel %vm613_vm7, %v601_v9, %v616_v46  ;;  %v619_v4 = vsel %vm611_vm4, %v598_v12, %v601_v9 }
  0xa2   : > { %v447_v53 = vshrl.u32 %v429_v50, %v445_v56  ;;  %v450_v59 = vadd.s32 127, %v449_v61  ;;  %v620_v51 = vsel %vm614_vm5, %v607_v44, 920167782  ;;  %v3677_v5 = vsel %vm359_vm2, %v360_v48, %v358_v45 }
  0xa3   : > { %v459_v55 = vsub.s32 4, %v3587_v2  ;;  %v2971_v17 = vmin.u32 %v542_v52, %v3658_v13  ;;  %v627_v38 = vshll.u32 %v587_v34, 8  ;;  %v4865_v47 = vand.u32 2147483647, %v3460_v60 }
  0xa4   : > { %v448_v63 = vor.u32 %v447_v53, %v446_v31  ;;  %v451_v12 = vshll.u32 %v450_v59, 23  ;;  %v621_v36 = vsel %vm613_vm7, %v604_v7, %v620_v51  ;;  %v623_v42 = vsel %vm611_vm4, %v601_v9, %v604_v7 }
  0xa5   : > { %vm3683_vm9 = vcmp.le.f32.partialorder %v4865_v47, 0.7853982  ;;  %v544_v48 = vclz %v2971_v17  ;;  %v618_v45 = vsel %vm612_vm8, %v615_v6, %v617_v10  ;;  %v622_v34 = vsel %vm612_vm8, %v619_v4, %v621_v36 }
  0xa6   : > { %v624_v57 = vsel %vm614_vm5, %v610_v41, 1326507024  ;;  %v452_v46 = vor.u32 4788187, %v451_v12  ;;  %v455_v56 = vcvt.s32.f32 %v448_v63  ;;  %v686_v61 = vshrl.u32 %v685_v37, 23 }
  0xa7   : > { %v625_v31 = vsel %vm613_vm7, %v607_v44, %v624_v57  ;;  %vm478_vm10 = vcmp.lt.s32.totalorder %v3462_v62, 0  ;;  %v2972_v52 = vadd.s32 4294967294, %v544_v48  ;;  %v460_v44 = vsel %vm375_vm6, %v459_v55, %v3587_v2 }
  0xa8   : > { %v626_v7 = vsel %vm612_vm8, %v623_v42, %v625_v31  ;;  %v3702_v9 = vmul.u32.u64.low %v627_v38, %v622_v34  ;;  %v3703_v6 = vmul.u32.u64.high %v627_v38, %v622_v34, %v3702_v9  ;;  %v453_v10 = vand.u32 2147483647, %v452_v46 }
  0xa9   : > { %v3706_v53 = vmul.u32.u64.low %v627_v38, %v626_v7  ;;  %v3707_v59 = vmul.u32.u64.high %v627_v38, %v626_v7, %v3706_v53  ;;  %v2978_v41 = vadd.s32 4294967169, %v686_v61  ;;  %v532_v37 = vadd.s32 %v3591_v0, %v3598_v8 }
  0xaa   : > { %vm2973_vm11 = vcmp.lt.s32.totalorder %v2972_v52, 0  ;;  %v4868_v18 = vand.u32 2147483647, %v3507_v49  ;;  %v456_v51 = vmul.f32 %v455_v56, %v453_v10  ;;  %v4869_v17 = vand.u32 2147483647, %v3462_v62 }
  0xab   : > { %v547_v63 = vsel %vm2973_vm11, 0, %v2972_v52  ;;  %v634_v12 = vmul.u32 %v627_v38, %v618_v45  ;;  %v692_v36 = vadd.s32 1, %v2978_v41  ;;  %v637_v0 = vadd.s32 1, %v3703_v6 }
  0xac   : > { %v3716_v4 = vand.u32 8388607, %v4868_v18  ;;  %vm3720_vm12 = vcmp.le.f32.partialorder %v4869_v17, 0.7853982  ;;  %v548_v42 = vsub.s32 32, %v547_v63  ;;  %v549_v2 = vshll.u32 %v3658_v13, %v547_v63 }
  0xad   : > { %v552_v55 = vsub.s32 4294967266, %v547_v63  ;;  %v457_v8 = vxor.u32 2147483648, %v456_v51  ;;  %v562_v48 = vsub.s32 4, %v3647_v11  ;;  %vm636_vm13 = vc.u32 %v3707_v59, %v3702_v9 }
  0xae   : > { %vm693_vm14 = vcmp.gt.s32.totalorder %v692_v36, 0  ;;  %v550_v34 = vshrl.u32 %v532_v37, %v548_v42  ;;  %v638_v46 = vsel %vm636_vm13, %v637_v0, %v3703_v6  ;;  %v462_v13 = vsel %vm3683_vm9, 0, %v460_v44 }
  0xaf   : > { %v553_v57 = vadd.s32 127, %v552_v55  ;;  %v694_v56 = vsel %vm693_vm14, %v692_v36, 0  ;;  %v458_v38 = vsel %vm375_vm6, %v457_v8, %v456_v51  ;;  %v639_v45 = vadd.s32 %v638_v46, %v634_v12 }
  0xb0   : > { %v696_v31 = vand.u32 31, %v694_v56  ;;  %v461_v61 = vsel %vm3683_vm9, %v3460_v60, %v458_v38  ;;  %v3737_v52 = vand.u32 3, %v462_v13  ;;  %v551_v7 = vor.u32 %v550_v34, %v549_v2 }
  0xb1   : > { %v554_v10 = vshll.u32 %v553_v57, 23  ;;  %3154 = vcosq.f32 %v461_v61  ;;  %v563_v6 = vsel %vm478_vm10, %v562_v48, %v3647_v11  ;;  %v640_v53 = vadd.s32 536870912, %v639_v45 }
  0xb2   : > { %v697_v41 = vsub.s32 32, %v696_v31  ;;  %3156 = vsinq.f32 %v461_v61  ;;  %v558_v44 = vcvt.s32.f32 %v551_v7  ;;  %v699_v18 = vshll.u32 %v3293_v3, %v696_v31 }
  0xb3   : > { %v555_v37 = vor.u32 4788187, %v554_v10  ;;  %v3743_v51 = vshrl.u32 %v640_v53, 30  ;;  %v4872_v50 = vmov 2475754826   ;;  %v565_v2 = vsel %vm3720_vm12, 0, %v563_v6 }
  0xb4   : > { %v700_v17 = vshrl.u32 %v4872_v50, %v697_v41  ;;  %v702_v63 = vshll.u32 %v4872_v50, %v696_v31  ;;  %v4873_v12 = vmov 2131351028   ;;  %v695_v11 = vshrl.u32 %v694_v56, 5 }
  0xb5   : > { %v703_v36 = vshrl.u32 %v4873_v12, %v697_v41  ;;  %v556_v42 = vand.u32 2147483647, %v555_v37  ;;  %v4874_v55 = vmov 2102212464   ;;  %v642_v8 = vshll.u32 %v3743_v51, 30 }
  0xb6   : > { %v708_v0 = vshll.u32 %v4874_v55, %v696_v31  ;;  %v690_v48 = vor.u32 8388608, %v3716_v4  ;;  %v705_v34 = vshll.u32 %v4873_v12, %v696_v31  ;;  %v706_v57 = vshrl.u32 %v4874_v55, %v697_v41 }
  0xb7   : > { %v559_v46 = vmul.f32 %v558_v44, %v556_v42  ;;  %v3755_v38 = vand.u32 3, %v565_v2  ;;  %v709_v61 = vshrl.u32 %v3297_v14, %v697_v41  ;;  %v711_v7 = vshll.u32 %v3297_v14, %v696_v31 }
  0xb8   : > { %vm468_vm15 = vcmp.eq.s32.totalorder %v3737_v52, 0  ;;  %vm471_vm0 = vcmp.eq.s32.totalorder %v3737_v52, 2  ;;  %v3761_v56 = vsub.s32 %v639_v45, %v642_v8  ;;  %v701_v10 = vor.u32 %v700_v17, %v699_v18 }
  0xb9   : > { %v704_v6 = vor.u32 %v703_v36, %v702_v63  ;;  %v712_v4 = vshrl.u32 %v3298_v40, %v697_v41  ;;  %v560_v53 = vxor.u32 2147483648, %v559_v46  ;;  %v698_v37 = vshrl.u32 %v3293_v3, %v697_v41 }
  0xba   : > { %v710_v44 = vor.u32 %v709_v61, %v708_v0  ;;  %vm714_vm1 = vcmp.lt.s32.totalorder %v695_v11, 1  ;;  %v645_v50 = vsub.s32 0, %v3761_v56  ;;  %v707_v12 = vor.u32 %v706_v57, %v705_v34 }
  0xbb   : > { %v3766_v42 = vshll.u32 %v690_v48, 8  ;;  %v882_v14 = vadd.s32 3, %v462_v13  ;;  %vm467_vm2 = vcmp.lt.s32.totalorder %v3737_v52, 2  ;;  %v561_v45 = vsel %vm478_vm10, %v560_v53, %v559_v46 }
  0xbc   : > { %v713_v31 = vor.u32 %v712_v4, %v711_v7  ;;  %vm716_vm3 = vcmp.lt.s32.totalorder %v695_v11, 3  ;;  %vm717_vm4 = vcmp.lt.s32.totalorder %v695_v11, 4  ;;  %v564_v3 = vsel %vm3720_vm12, %v3462_v62, %v561_v45 }
  0xbd   : > { %v2975_v40 = vmin.u32 %v645_v50, %v3761_v56  ;;  %vm715_vm5 = vcmp.lt.s32.totalorder %v695_v11, 2  ;;  %v722_v41 = vsel %vm714_vm1, %v701_v10, %v704_v6  ;;  %3158 = vcosq.f32 %v564_v3 }
  0xbe   : > { %v718_v13 = vsel %vm714_vm1, %v698_v37, %v701_v10  ;;  %v719_v18 = vsel %vm717_vm4, %v707_v12, 2102212464  ;;  %v723_v17 = vsel %vm717_vm4, %v710_v44, 920167782  ;;  %3160 = vsinq.f32 %v564_v3  ;;  %v3155_v47 = vpop.eup %3154 }
  0xbf   : > { %v647_v63 = vclz %v2975_v40  ;;  %v720_v36 = vsel %vm716_vm3, %v704_v6, %v719_v18  ;;  %v724_v55 = vsel %vm716_vm3, %v707_v12, %v723_v17  ;;  %v726_v8 = vsel %vm714_vm1, %v704_v6, %v707_v12  ;;  %v3157_v57 = vpop.eup %3156 }
  0xc0   : > { %v725_v0 = vsel %vm715_vm5, %v722_v41, %v724_v55  ;;  %v727_v48 = vsel %vm717_vm4, %v713_v31, 1326507024  ;;  %v986_v34 = vadd.s32 3, %v565_v2  ;;  %vm465_vm6 = vweird.f32 %v3460_v60 }
  0xc1   : > { %v472_v46 = vxor.u32 2147483648, %v3155_v47  ;;  %vm581_vm7 = vcmp.lt.s32.totalorder %v3484_v21, 0  ;;  %v2976_v61 = vadd.s32 4294967294, %v647_v63  ;;  %v721_v7 = vsel %vm715_vm5, %v718_v13, %v720_v36 }
  0xc2   : > { %v728_v10 = vsel %vm716_vm3, %v710_v44, %v727_v48  ;;  %v469_v4 = vxor.u32 2147483648, %v3157_v57  ;;  %v3790_v37 = vmul.u32.u64.low %v3766_v42, %v725_v0  ;;  %v3791_v6 = vmul.u32.u64.high %v3766_v42, %v725_v0, %v3790_v37 }
  0xc3   : > { %v729_v53 = vsel %vm715_vm5, %v726_v8, %v728_v10  ;;  %v635_v2 = vadd.s32 %v3702_v9, %v3707_v59  ;;  %vm2977_vm8 = vcmp.lt.s32.totalorder %v2976_v61, 0  ;;  %v473_v11 = vsel %vm471_vm0, %v472_v46, %v3157_v57 }
  0xc4   : > { %v3797_v50 = vmul.u32.u64.low %v3766_v42, %v729_v53  ;;  %v3798_v12 = vmul.u32.u64.high %v3766_v42, %v729_v53, %v3797_v50  ;;  %v470_v45 = vsel %vm468_vm15, %v3155_v47, %v469_v4  ;;  %v650_v44 = vsel %vm2977_vm8, 0, %v2976_v61 }
  0xc5   : > { %v883_v31 = vand.u32 3, %v882_v14  ;;  %v4875_v3 = vand.u32 2147483647, %v3484_v21  ;;  %v651_v9 = vsub.s32 32, %v650_v44  ;;  %v652_v59 = vshll.u32 %v3761_v56, %v650_v44 }
  0xc6   : > { %v655_v41 = vsub.s32 4294967266, %v650_v44  ;;  %v737_v13 = vmul.u32 %v3766_v42, %v721_v7  ;;  %vm568_vm10 = vweird.f32 %v3462_v62  ;;  %v665_v18 = vsub.s32 4, %v3743_v51 }
  0xc7   : > { %vm3806_vm9 = vcmp.le.f32.partialorder %v4875_v3, 0.7853982  ;;  %v740_v17 = vadd.s32 1, %v3791_v6  ;;  %vm885_vm11 = vcmp.eq.s32.totalorder %v883_v31, 0  ;;  %v987_v14 = vand.u32 3, %v986_v34 }
  0xc8   : > { %vm364_vm12 = vcmp.eq.f32.partialorder %v3539_v39, inf  ;;  %v474_v63 = vsel %vm467_vm2, %v470_v45, %v473_v11  ;;  %v653_v36 = vshrl.u32 %v635_v2, %v651_v9  ;;  %v656_v55 = vadd.s32 127, %v655_v41 }
  0xc9   : > { %vm739_vm13 = vc.u32 %v3798_v12, %v3790_v37  ;;  %vm884_vm14 = vcmp.lt.s32.totalorder %v883_v31, 2  ;;  %v887_v42 = vsel %vm885_vm11, %v3155_v47, %v469_v4  ;;  %vm888_vm15 = vcmp.eq.s32.totalorder %v883_v31, 2 }
  0xca   : > { %v741_v56 = vsel %vm739_vm13, %v740_v17, %v3791_v6  ;;  %v654_v0 = vor.u32 %v653_v36, %v652_v59  ;;  %v657_v8 = vshll.u32 %v656_v55, 23  ;;  %v4878_v48 = vand.u32 2147483647, %v3507_v49  ;;  %v3159_v7 = vpop.eup %3158 }
  0xcb   : > { %v742_v52 = vadd.s32 %v741_v56, %v737_v13  ;;  %v890_v61 = vsel %vm888_vm15, %v472_v46, %v3157_v57  ;;  %vm366_vm1 = vcmp.eq.f32.partialorder %v3539_v39, 0.0  ;;  %vm570_vm2 = vcmp.lt.s32.totalorder %v3755_v38, 2  ;;  %v3161_v6 = vpop.eup %3160 }
  0xcc   : > { %vm3823_vm0 = vcmp.le.f32.partialorder %v4878_v48, 0.7853982  ;;  %vm574_vm3 = vcmp.eq.s32.totalorder %v3755_v38, 2  ;;  %v666_v47 = vsel %vm581_vm7, %v665_v18, %v3743_v51  ;;  %vm684_vm4 = vcmp.lt.s32.totalorder %v3507_v49, 0 }
  0xcd   : > { %v658_v10 = vor.u32 4788187, %v657_v8  ;;  %v661_v4 = vcvt.s32.f32 %v654_v0  ;;  %v743_v53 = vadd.s32 536870912, %v742_v52  ;;  %vm992_vm5 = vcmp.eq.s32.totalorder %v987_v14, 2 }
  0xce   : > { %v475_v57 = vsel %vm465_vm6, nan, %v474_v63  ;;  %vm571_vm8 = vcmp.eq.s32.totalorder %v3755_v38, 0  ;;  %v575_v46 = vxor.u32 2147483648, %v3159_v7  ;;  %v891_v2 = vsel %vm884_vm14, %v887_v42, %v890_v61 }
  0xcf   : > { %v572_v50 = vxor.u32 2147483648, %v3161_v6  ;;  %v659_v45 = vand.u32 2147483647, %v658_v10  ;;  %v744_v11 = vshrl.u32 %v743_v53, 30  ;;  %vm989_vm11 = vcmp.eq.s32.totalorder %v987_v14, 0 }
  0xd0   : > { %v576_v51 = vsel %vm574_vm3, %v575_v46, %v3161_v6  ;;  %v668_v44 = vsel %vm3806_vm9, 0, %v666_v47  ;;  %vm988_vm13 = vcmp.lt.s32.totalorder %v987_v14, 2  ;;  %v994_v3 = vsel %vm992_vm5, %v575_v46, %v3161_v6 }
  0xd1   : > { %v573_v9 = vsel %vm571_vm8, %v3159_v7, %v572_v50  ;;  %v662_v59 = vmul.f32 %v661_v4, %v659_v45  ;;  %v745_v41 = vshll.u32 %v744_v11, 30  ;;  %v768_v13 = vsub.s32 4, %v744_v11 }
  0xd2   : > { %v577_v31 = vsel %vm570_vm2, %v573_v9, %v576_v51  ;;  %v785_v18 = vmul.f32 %v475_v57, %v3619_v58  ;;  %v892_v17 = vsel %vm465_vm6, nan, %v891_v2  ;;  %v991_v63 = vsel %vm989_vm11, %v3159_v7, %v572_v50 }
  0xd3   : > { %v578_v36 = vsel %vm568_vm10, nan, %v577_v31  ;;  %v663_v55 = vxor.u32 2147483648, %v662_v59  ;;  %v3849_v56 = vsub.s32 %v742_v52, %v745_v41  ;;  %v769_v42 = vsel %vm684_vm4, %v768_v13, %v744_v11 }
  0xd4   : > { %v365_v38 = vsel %vm364_vm12, %v3539_v39, %v3630_v1  ;;  %v771_v0 = vsel %vm3823_vm0, 0, %v769_v42  ;;  %v995_v60 = vsel %vm988_vm13, %v991_v63, %v994_v3  ;;  %v1090_v8 = vadd.s32 3, %v668_v44 }
  0xd5   : > { %v664_v48 = vsel %vm581_vm7, %v663_v55, %v662_v59  ;;  %v748_v52 = vsub.s32 0, %v3849_v56  ;;  %v786_v61 = vmul.f32 %v578_v36, %v3626_v43  ;;  %v996_v47 = vsel %vm568_vm10, nan, %v995_v60 }
  0xd6   : > { %v667_v1 = vsel %vm3806_vm9, %v3484_v21, %v664_v48  ;;  %v1194_v7 = vadd.s32 3, %v771_v0  ;;  %v1205_v10 = vmul.f32 %v892_v17, %v3619_v58  ;;  %v1206_v14 = vmul.f32 %v996_v47, %v3626_v43 }
  0xd7   : > { %v4881_v4 = vand.u32 2147483648, %v3539_v39  ;;  %3162 = vcosq.f32 %v667_v1  ;;  %v2979_v6 = vmin.u32 %v748_v52, %v3849_v56  ;;  %v1209_v62 = vmul.f32 0.1, %v785_v18 }
  0xd8   : > { %3164 = vsinq.f32 %v667_v1  ;;  %v3878_v57 = vand.u32 3, %v668_v44  ;;  %v3880_v40 = vand.u32 3, %v1090_v8  ;;  %v4882_v46 = vmax.f32 %v3472_v16, 0.0 }
  0xd9   : > { %v3875_v53 = vsel %vm366_vm1, %v4881_v4, %v365_v38  ;;  %v738_v43 = vadd.s32 %v3790_v37, %v3798_v12  ;;  %v750_v2 = vclz %v2979_v6  ;;  %v1210_v50 = vmul.f32 0.1, %v786_v61 }
  0xda   : > { %v1242_v58 = vsub.f32 0.0, %v4882_v46  ;;  %v4883_v39 = vmax.f32 %v3479_v19, 0.0  ;;  %v3888_v11 = vand.u32 3, %v771_v0  ;;  %v3890_v51 = vand.u32 3, %v1194_v7 }
  0xdb   : > { %v3892_v3 = vmul.f32 0.1, %v1205_v10  ;;  %v3894_v44 = vmul.f32 0.1, %v1206_v14  ;;  %v2980_v9 = vadd.s32 4294967294, %v750_v2  ;;  %v3897_v59 = vadd.f32 %v1209_v62, %v3469_v15 }
  0xdc   : > { %v1243_v45 = vsub.f32 0.0, %v4883_v39  ;;  %v4885_v37 = vmax.f32 %v3482_v20, 0.0  ;;  %v4886_v41 = vmax.f32 %v3487_v22, 0.0  ;;  %vm677_vm6 = vcmp.eq.s32.totalorder %v3878_v57, 2 }
  0xdd   : > { %4884 = vst [vmem:[#allocation12_spill] sm:$0xff] %v3897_v59  ;;  %vm1096_vm7 = vcmp.eq.s32.totalorder %v3880_v40, 2  ;;  %v4887_v13 = vmax.f32 %v3490_v23, 0.0  ;;  %v4888_v18 = vmax.f32 %v3493_v30, 0.0  ;;  %v1249_v63 = vmul.f32 1.442695, %v3515_v54 }
  0xde   : > { %v1244_v12 = vsub.f32 0.0, %v4885_v37  ;;  %v1245_v19 = vsub.f32 0.0, %v4886_v41  ;;  %v1251_v15 = vmul.f32 1.442695, %v1242_v58  ;;  %vm674_vm9 = vcmp.eq.s32.totalorder %v3878_v57, 0 }
  0xdf   : > { %v1246_v31 = vsub.f32 0.0, %v4887_v13  ;;  %v1247_v17 = vsub.f32 0.0, %v4888_v18  ;;  %vm2981_vm10 = vcmp.lt.s32.totalorder %v2980_v9, 0  ;;  %vm1093_vm12 = vcmp.eq.s32.totalorder %v3880_v40, 0 }
  0xe0   : > { %v3913_v20 = vadd.f32 %v1210_v50, %v3472_v16  ;;  %v4890_v22 = vmax.f32 %v3496_v35, 0.0  ;;  %v1253_v55 = vmul.f32 1.442695, %v1243_v45  ;;  %vm673_vm14 = vcmp.lt.s32.totalorder %v3878_v57, 2 }
  0xe1   : > { %v753_v23 = vsel %vm2981_vm10, 0, %v2980_v9  ;;  %vm1092_vm15 = vcmp.lt.s32.totalorder %v3880_v40, 2  ;;  %3166 = vpow2.f32 %v1249_v63  ;;  %v1255_v30 = vmul.f32 1.442695, %v1244_v12 }
  0xe2   : > { %4889 = vst [vmem:[#allocation13_spill] sm:$0xff] %v3913_v20  ;;  %v1248_v36 = vsub.f32 0.0, %v4890_v22  ;;  %v1257_v54 = vmul.f32 1.442695, %v1245_v19  ;;  %vm671_vm1 = vweird.f32 %v3484_v21  ;;  %v754_v42 = vsub.s32 32, %v753_v23 }
  0xe3   : > { %v755_v38 = vshll.u32 %v3849_v56, %v753_v23  ;;  %v758_v16 = vsub.s32 4294967266, %v753_v23  ;;  %3168 = vpow2.f32 %v1251_v15  ;;  %v1259_v35 = vmul.f32 1.442695, %v1246_v31 }
  0xe4   : > { %3170 = vpow2.f32 %v1253_v55  ;;  %v1261_v0 = vmul.f32 1.442695, %v1247_v17  ;;  %v1270_v60 = vstv %s1265_s5  ;;  %v756_v8 = vshrl.u32 %v738_v43, %v754_v42  ;;  %v3163_v4 = vpop.eup %3162 }
  0xe5   : > { %v759_v48 = vadd.s32 127, %v758_v16  ;;  %v3923_v52 = vmul.u32 2654435761, %v3436_v24  ;;  %v3926_v61 = vmul.u32 2654435761, %v3438_v25  ;;  %3172 = vpow2.f32 %v1255_v30  ;;  %v3165_v62 = vpop.eup %3164 }
  0xe6   : > { %v1263_v47 = vmul.f32 1.442695, %v1248_v36  ;;  %v3929_v1 = vmul.u32 2654435761, %v3440_v26  ;;  %v3932_v56 = vmul.u32 2654435761, %v3442_v27  ;;  %v757_v7 = vor.u32 %v756_v8, %v755_v38 }
  0xe7   : > { %4891 = vst [vmem:[#allocation14_spill] sm:$0xff] %v3926_v61  ;;  %v760_v10 = vshll.u32 %v759_v48, 23  ;;  %3174 = vpow2.f32 %v1257_v54  ;;  %v1271_v14 = vadd.s32 %v1270_v60, %v3444_v28  ;;  %v1272_v24 = vadd.s32 %v1270_v60, %v3446_v29 }
  0xe8   : > { %4892 = vst [vmem:[#allocation15_spill] sm:$0xff] %v3929_v1  ;;  %4893 = vst [vmem:[#allocation16_spill] sm:$0xff] %v3932_v56  ;;  %3176 = vpow2.f32 %v1259_v35  ;;  %v1273_v25 = vadd.s32 %v1270_v60, %v3448_v32  ;;  %v1274_v6 = vadd.s32 %v1270_v60, %v3450_v33  ;;  %v678_v46 = vxor.u32 2147483648, %v3163_v4 }
  0xe9   : > { %v761_v26 = vor.u32 4788187, %v760_v10  ;;  %v764_v58 = vcvt.s32.f32 %v757_v7  ;;  %v1275_v27 = vadd.s32 %v1270_v60, %v3923_v52  ;;  %v675_v43 = vxor.u32 2147483648, %v3165_v62 }
  0xea   : > { %v1276_v2 = vadd.s32 %v1270_v60, %v3926_v61  ;;  %v1277_v50 = vadd.s32 %v1270_v60, %v3929_v1  ;;  %v1278_v39 = vadd.s32 %v1270_v60, %v3932_v56  ;;  %v679_v45 = vsel %vm677_vm6, %v678_v46, %v3165_v62 }
  0xeb   : > { %v762_v9 = vand.u32 2147483647, %v761_v26  ;;  %v1098_v37 = vsel %vm1096_vm7, %v678_v46, %v3165_v62  ;;  %v1279_v12 = vshrl.u32 %v1271_v14, 16  ;;  %v676_v41 = vsel %vm674_vm9, %v3163_v4, %v675_v43 }
  0xec   : > { %v1095_v19 = vsel %vm1093_vm12, %v3163_v4, %v675_v43  ;;  %v1280_v13 = vshrl.u32 %v1272_v24, 16  ;;  %v1281_v31 = vshrl.u32 %v1273_v25, 16  ;;  %v680_v18 = vsel %vm673_vm14, %v676_v41, %v679_v45 }
  0xed   : > { %v765_v17 = vmul.f32 %v764_v58, %v762_v9  ;;  %v1099_v63 = vsel %vm1092_vm15, %v1095_v19, %v1098_v37  ;;  %v1282_v15 = vshrl.u32 %v1274_v6, 16  ;;  %v681_v22 = vsel %vm671_vm1, nan, %v680_v18 }
  0xee   : > { %v1100_v36 = vsel %vm671_vm1, nan, %v1099_v63  ;;  %v1283_v55 = vshrl.u32 %v1275_v27, 16  ;;  %v1284_v23 = vshrl.u32 %v1276_v2, 16  ;;  %v3958_v30 = vpop.eup %3166  ;;  %v787_v42 = vmul.f32 %v681_v22, %v3677_v5 }
  0xef   : > { %v766_v54 = vxor.u32 2147483648, %v765_v17  ;;  %3178 = vpow2.f32 %v1261_v0  ;;  %v1285_v57 = vshrl.u32 %v1277_v50, 16  ;;  %v1207_v40 = vmul.f32 %v1100_v36, %v3677_v5 }
  0xf0   : > { %v3961_v38 = vpop.eup %3168  ;;  %v1286_v16 = vshrl.u32 %v1278_v39, 16  ;;  %v1287_v35 = vxor.u32 %v1279_v12, %v1271_v14  ;;  %v1288_v60 = vxor.u32 %v1280_v13, %v1272_v24  ;;  %v1211_v48 = vmul.f32 0.1, %v787_v42  ;;  %v3186_v14 = vld [vmem:[%s3423_s28 + $0x20] sm:$0xff] }
  0xf1   : > { %v3964_v8 = vpop.eup %3170  ;;  %v767_v21 = vsel %vm684_vm4, %v766_v54, %v765_v17  ;;  %v1289_v7 = vxor.u32 %v1281_v31, %v1273_v25  ;;  %v1290_v10 = vxor.u32 %v1282_v15, %v1274_v6  ;;  %3180 = vpow2.f32 %v1263_v47  ;;  %v3187_v25 = vld [vmem:[%s3423_s28 + $0x28] sm:$0xff] }
  0xf2   : > { %v770_v0 = vsel %vm3823_vm0, %v3507_v49, %v767_v21  ;;  %v1291_v4 = vxor.u32 %v1283_v55, %v1275_v27  ;;  %v1292_v5 = vxor.u32 %v1284_v23, %v1276_v2  ;;  %v3971_v62 = vpop.eup %3172  ;;  %v3975_v24 = vadd.f32 %v3186_v14, %v3892_v3  ;;  %v3188_v2 = vld [vmem:[%s3423_s28 + $0x10] sm:$0xff] }
  0xf3   : > { %3182 = vcosq.f32 %v770_v0  ;;  %v1293_v46 = vxor.u32 %v1285_v57, %v1277_v50  ;;  %v1294_v26 = vxor.u32 %v1286_v16, %v1278_v39  ;;  %v3981_v34 = vadd.f32 %v3187_v25, %v3894_v44 }
  0xf4   : > { %4894 = vst [vmem:[#allocation17_spill] sm:$0xff] %v3975_v24  ;;  %v3977_v58 = vpop.eup %3174  ;;  %3184 = vsinq.f32 %v770_v0  ;;  %v1295_v47 = vmul.u32 2146121005, %v1287_v35  ;;  %v1296_v6 = vmul.u32 2146121005, %v1288_v60  ;;  %v3986_v45 = vadd.f32 %v3188_v2, %v1211_v48 }
  0xf5   : > { %4895 = vst [vmem:[#allocation18_spill] sm:$0xff] %v3981_v34  ;;  %v3983_v27 = vpop.eup %3176  ;;  %v1215_v43 = vmul.f32 0.1, %v1207_v40  ;;  %v1297_v9 = vmul.u32 2146121005, %v1289_v7  ;;  %vm780_vm0 = vcmp.eq.s32.totalorder %v3888_v11, 2  ;;  %vm774_vm11 = vweird.f32 %v3507_v49 }
  0xf6   : > { %4896 = vst [vmem:[#allocation19_spill] sm:$0xff] %v3986_v45  ;;  %v1298_v3 = vmul.u32 2146121005, %v1290_v10  ;;  %v1299_v37 = vmul.u32 2146121005, %v1291_v4  ;;  %v1303_v39 = vshrl.u32 %v1295_v47, 15 }
  0xf7   : > { %v1300_v50 = vmul.u32 2146121005, %v1292_v5  ;;  %v1304_v12 = vshrl.u32 %v1296_v6, 15  ;;  %v1301_v41 = vmul.u32 2146121005, %v1293_v46  ;;  %v1305_v13 = vshrl.u32 %v1297_v9, 15 }
  0xf8   : > { %v1302_v19 = vmul.u32 2146121005, %v1294_v26  ;;  %v1306_v31 = vshrl.u32 %v1298_v3, 15  ;;  %vm1200_vm2 = vcmp.eq.s32.totalorder %v3890_v51, 2  ;;  %v1307_v44 = vshrl.u32 %v1299_v37, 15 }
  0xf9   : > { %v1308_v18 = vshrl.u32 %v1300_v50, 15  ;;  %v1311_v17 = vxor.u32 %v1303_v39, %v1295_v47  ;;  %v1312_v63 = vxor.u32 %v1304_v12, %v1296_v6  ;;  %vm777_vm3 = vcmp.eq.s32.totalorder %v3888_v11, 0  ;;  %v3189_v12 = vld [vmem:[%s3423_s28 + $0x30] sm:$0xff] }
  0xfa   : > { %vm1197_vm4 = vcmp.eq.s32.totalorder %v3890_v51, 0  ;;  %v1309_v15 = vshrl.u32 %v1301_v41, 15  ;;  %v1310_v22 = vshrl.u32 %v1302_v19, 15  ;;  %v1313_v36 = vxor.u32 %v1305_v13, %v1297_v9 }
  0xfb   : > { %v1314_v55 = vxor.u32 %v1306_v31, %v1298_v3  ;;  %vm776_vm5 = vcmp.lt.s32.totalorder %v3888_v11, 2  ;;  %vm1196_vm8 = vcmp.lt.s32.totalorder %v3890_v51, 2  ;;  %v1315_v23 = vxor.u32 %v1307_v44, %v1299_v37 }
  0xfc   : > { %v1316_v54 = vxor.u32 %v1308_v18, %v1300_v50  ;;  %v1319_v42 = vmul.u32 2221713035, %v1311_v17  ;;  %v1320_v57 = vmul.u32 2221713035, %v1312_v63  ;;  %v1317_v40 = vxor.u32 %v1309_v15, %v1301_v41  ;;  %v3996_v21 = vpop.eup %3178 }
  0xfd   : > { %v1318_v16 = vxor.u32 %v1310_v22, %v1302_v19  ;;  %v1321_v35 = vmul.u32 2221713035, %v1313_v36  ;;  %v1322_v60 = vmul.u32 2221713035, %v1314_v55  ;;  %v4002_v41 = vadd.f32 %v3189_v12, %v1215_v43 }
  0xfe   : > { %v1323_v48 = vmul.u32 2221713035, %v1315_v23  ;;  %v1324_v7 = vmul.u32 2221713035, %v1316_v54  ;;  %v1327_v10 = vshrl.u32 %v1319_v42, 16  ;;  %v1328_v0 = vshrl.u32 %v1320_v57, 16  ;;  %v3999_v2 = vpop.eup %3180 }
  0xff   : > { %v1325_v4 = vmul.u32 2221713035, %v1317_v40  ;;  %v1326_v5 = vmul.u32 2221713035, %v1318_v16  ;;  %v1329_v14 = vshrl.u32 %v1321_v35, 16  ;;  %v1330_v46 = vshrl.u32 %v1322_v60, 16 }
 0x100   : > { %v1331_v26 = vshrl.u32 %v1323_v48, 16  ;;  %v1332_v25 = vshrl.u32 %v1324_v7, 16  ;;  %v1335_v47 = vxor.u32 %v1327_v10, %v1319_v42  ;;  %v1336_v6 = vxor.u32 %v1328_v0, %v1320_v57  ;;  %v3183_v39 = vpop.eup %3182  ;;  %4897 = vst [vmem:[#allocation20_spill] sm:$0xff] %v4002_v41 }
 0x101   : > { %v1333_v9 = vshrl.u32 %v1325_v4, 16  ;;  %v1334_v3 = vshrl.u32 %v1326_v5, 16  ;;  %v1337_v37 = vxor.u32 %v1329_v14, %v1321_v35  ;;  %v1338_v50 = vxor.u32 %v1330_v46, %v1322_v60  ;;  %v3185_v31 = vpop.eup %3184 }
 0x102   : > { %v1343_v19 = vshrl.u32 %v1335_v47, 8  ;;  %v4004_v13 = vstv %s1447_s6  ;;  %v781_v44 = vxor.u32 2147483648, %v3183_v39  ;;  %v1339_v18 = vxor.u32 %v1331_v26, %v1323_v48 }
 0x103   : > { %v1344_v17 = vshrl.u32 %v1336_v6, 8  ;;  %v4006_v63 = vstv %s1633_s7  ;;  %v778_v15 = vxor.u32 2147483648, %v3185_v31  ;;  %v1340_v22 = vxor.u32 %v1332_v25, %v1324_v7 }
 0x104   : > { %v1341_v36 = vxor.u32 %v1333_v9, %v1325_v4  ;;  %v1342_v55 = vxor.u32 %v1334_v3, %v1326_v5  ;;  %v782_v23 = vsel %vm780_vm0, %v781_v44, %v3185_v31  ;;  %v1202_v43 = vsel %vm1200_vm2, %v781_v44, %v3185_v31 }
 0x105   : > { %v1345_v54 = vshrl.u32 %v1337_v37, 8  ;;  %v1346_v42 = vshrl.u32 %v1338_v50, 8  ;;  %v779_v57 = vsel %vm777_vm3, %v3183_v39, %v778_v15  ;;  %v1199_v40 = vsel %vm1197_vm4, %v3183_v39, %v778_v15 }
 0x106   : > { %v1351_v16 = vshrl.u32 %v1343_v19, 16  ;;  %v1352_v35 = vand.u32 65535, %v1343_v19  ;;  %v783_v60 = vsel %vm776_vm5, %v779_v57, %v782_v23  ;;  %v1203_v48 = vsel %vm1196_vm8, %v1199_v40, %v1202_v43 }
 0x107   : > { %v1357_v7 = vshrl.u32 %v1344_v17, 16  ;;  %v1358_v10 = vand.u32 65535, %v1344_v17  ;;  %v784_v0 = vsel %vm774_vm11, nan, %v783_v60  ;;  %v1347_v4 = vshrl.u32 %v1339_v18, 8 }
 0x108   : > { %v1348_v5 = vshrl.u32 %v1340_v22, 8  ;;  %v1353_v14 = vcvt.s32.f32 %v1351_v16  ;;  %v1204_v46 = vsel %vm774_vm11, nan, %v1203_v48  ;;  %v1355_v26 = vcvt.s32.f32 %v1352_v35 }
 0x109   : > { %v1359_v25 = vcvt.s32.f32 %v1357_v7  ;;  %v1361_v47 = vcvt.s32.f32 %v1358_v10  ;;  %v1363_v11 = vshrl.u32 %v1345_v54, 16  ;;  %v1364_v9 = vand.u32 65535, %v1345_v54 }
 0x10a   : > { %v1354_v6 = vmul.f32 65536.0, %v1353_v14  ;;  %v1369_v3 = vshrl.u32 %v1346_v42, 16  ;;  %v1349_v51 = vshrl.u32 %v1341_v36, 8  ;;  %v1350_v37 = vshrl.u32 %v1342_v55, 8 }
 0x10b   : > { %v1360_v50 = vmul.f32 65536.0, %v1359_v25  ;;  %v1370_v39 = vand.u32 65535, %v1346_v42  ;;  %v788_v12 = vmul.f32 %v784_v0, %v3875_v53  ;;  %v1365_v19 = vcvt.s32.f32 %v1363_v11 }
 0x10c   : > { %v1367_v31 = vcvt.s32.f32 %v1364_v9  ;;  %v1371_v44 = vcvt.s32.f32 %v1369_v3  ;;  %v1208_v18 = vmul.f32 %v1204_v46, %v3875_v53  ;;  %v1356_v49 = vadd.f32 %v1355_v26, %v1354_v6 }
 0x10d   : > { %v1362_v17 = vadd.f32 %v1361_v47, %v1360_v50  ;;  %v1373_v15 = vcvt.s32.f32 %v1370_v39  ;;  %v1366_v22 = vmul.f32 65536.0, %v1365_v19  ;;  %v1375_v43 = vshrl.u32 %v1347_v4, 16 }
 0x10e   : > { %v1372_v23 = vmul.f32 65536.0, %v1371_v44  ;;  %v1376_v57 = vand.u32 65535, %v1347_v4  ;;  %v1381_v54 = vshrl.u32 %v1348_v5, 16  ;;  %v1382_v40 = vand.u32 65535, %v1348_v5 }
 0x10f   : > { %v1387_v36 = vshrl.u32 %v1349_v51, 16  ;;  %v1388_v55 = vand.u32 65535, %v1349_v51  ;;  %v1368_v16 = vadd.f32 %v1367_v31, %v1366_v22  ;;  %v1377_v35 = vcvt.s32.f32 %v1375_v43 }
 0x110   : > { %v1374_v42 = vadd.f32 %v1373_v15, %v1372_v23  ;;  %v1379_v60 = vcvt.s32.f32 %v1376_v57  ;;  %v1383_v48 = vcvt.s32.f32 %v1381_v54  ;;  %v1385_v7 = vcvt.s32.f32 %v1382_v40 }
 0x111   : > { %v1389_v10 = vcvt.s32.f32 %v1387_v36  ;;  %v1391_v0 = vcvt.s32.f32 %v1388_v55  ;;  %v1378_v53 = vmul.f32 65536.0, %v1377_v35  ;;  %v1393_v14 = vshrl.u32 %v1350_v37, 16 }
 0x112   : > { %v1394_v46 = vand.u32 65535, %v1350_v37  ;;  %v1399_v26 = vadd.f32 0.5, %v1356_v49  ;;  %v1384_v25 = vmul.f32 65536.0, %v1383_v48  ;;  %v1400_v6 = vadd.f32 0.5, %v1362_v17 }
 0x113   : > { %v1390_v47 = vmul.f32 65536.0, %v1389_v10  ;;  %v1401_v4 = vadd.f32 0.5, %v1368_v16  ;;  %v1380_v11 = vadd.f32 %v1379_v60, %v1378_v53  ;;  %v1395_v5 = vcvt.s32.f32 %v1393_v14 }
 0x114   : > { %v1397_v9 = vcvt.s32.f32 %v1394_v46  ;;  %v1402_v3 = vadd.f32 0.5, %v1374_v42  ;;  %v1386_v51 = vadd.f32 %v1385_v7, %v1384_v25  ;;  %v4026_v39 = vmul.f32 5.9604645e-08, %v1399_v26 }
 0x115   : > { %v1392_v50 = vadd.f32 %v1391_v0, %v1390_v47  ;;  %v4028_v19 = vmul.f32 5.9604645e-08, %v1400_v6  ;;  %v1396_v31 = vmul.f32 65536.0, %v1395_v5  ;;  %v1403_v44 = vadd.f32 0.5, %v1380_v11 }
 0x116   : > { %v4030_v15 = vmul.f32 5.9604645e-08, %v1401_v4  ;;  %v4032_v37 = vmul.f32 5.9604645e-08, %v1402_v3  ;;  %v1404_v49 = vadd.f32 0.5, %v1386_v51  ;;  %vm1415_vm13 = vcmp.gt.f32.partialorder %v4026_v39, %v3958_v30 }
 0x117   : > { %v1405_v22 = vadd.f32 0.5, %v1392_v50  ;;  %vm1416_vm6 = vcmp.gt.f32.partialorder %v4028_v19, %v3961_v38  ;;  %v1398_v17 = vadd.f32 %v1397_v9, %v1396_v31  ;;  %v4038_v23 = vmul.f32 5.9604645e-08, %v1403_v44 }
 0x118   : > { %vm1417_vm7 = vcmp.gt.f32.partialorder %v4030_v15, %v3964_v8  ;;  %vm1418_vm9 = vcmp.gt.f32.partialorder %v4032_v37, %v3971_v62  ;;  %v4044_v43 = vmul.f32 0.1, %v788_v12  ;;  %v4046_v57 = vmul.f32 0.1, %v1208_v18 }
 0x119   : > { %v4048_v54 = vmul.f32 5.9604645e-08, %v1404_v49  ;;  %v4050_v40 = vmul.f32 5.9604645e-08, %v1405_v22  ;;  %v1406_v36 = vadd.f32 0.5, %v1398_v17  ;;  %vm1419_vm10 = vcmp.gt.f32.partialorder %v4038_v23, %v3977_v58 }
 0x11a   : > { %4898 = vst [vmem:[#allocation21_spill] sm:$0xff] %v4044_v43  ;;  %4899 = vst [vmem:[#allocation22_spill] sm:$0xff] %v4046_v57  ;;  %v4834_v55 = vmov 0.0   ;;  %v1449_v35 = vadd.s32 %v4004_v13, %v3444_v28  ;;  %v1450_v7 = vadd.s32 %v4004_v13, %v3446_v29  ;;  %v1451_v10 = vadd.s32 %v4004_v13, %v3448_v32 }
 0x11b   : > { %v4055_v16 = vsel %vm1415_vm13, 1.0, %v4834_v55  ;;  %v4058_v42 = vsel %vm1416_vm6, 1.0, %v4834_v55  ;;  %vm1420_vm12 = vcmp.gt.f32.partialorder %v4048_v54, %v3983_v27  ;;  %v4063_v12 = vsel %vm1417_vm7, 1.0, %v4834_v55 }
 0x11c   : > { %v4066_v18 = vsel %vm1418_vm9, 1.0, %v4834_v55  ;;  %v4070_v60 = vmul.f32 5.9604645e-08, %v1406_v36  ;;  %vm1421_vm14 = vcmp.gt.f32.partialorder %v4050_v40, %v3996_v21  ;;  %v4075_v48 = vsel %vm1419_vm10, 1.0, %v4834_v55 }
 0x11d   : > { %v1452_v0 = vadd.s32 %v4004_v13, %v3450_v33  ;;  %v1453_v53 = vadd.s32 %v4004_v13, %v3923_v52  ;;  %v1454_v14 = vadd.s32 %v4004_v13, %v3926_v61  ;;  %v4088_v46 = vsel %vm1420_vm12, 1.0, %v4834_v55 }
 0x11e   : > { %v1455_v26 = vadd.s32 %v4004_v13, %v3929_v1  ;;  %v1456_v25 = vadd.s32 %v4004_v13, %v3932_v56  ;;  %v1457_v47 = vshrl.u32 %v1449_v35, 16  ;;  %vm1422_vm15 = vcmp.gt.f32.partialorder %v4070_v60, %v3999_v2 }
 0x11f   : > { %v1458_v6 = vshrl.u32 %v1450_v7, 16  ;;  %v1459_v4 = vshrl.u32 %v1451_v10, 16  ;;  %v1460_v11 = vshrl.u32 %v1452_v0, 16  ;;  %v1461_v5 = vshrl.u32 %v1453_v53, 16 }
 0x120   : > { %v1462_v9 = vshrl.u32 %v1454_v14, 16  ;;  %v1463_v3 = vshrl.u32 %v1455_v26, 16  ;;  %v1464_v51 = vshrl.u32 %v1456_v25, 16  ;;  %v1465_v50 = vxor.u32 %v1457_v47, %v1449_v35 }
 0x121   : > { %v1466_v31 = vxor.u32 %v1458_v6, %v1450_v7  ;;  %v1467_v44 = vxor.u32 %v1459_v4, %v1451_v10  ;;  %v1468_v49 = vxor.u32 %v1460_v11, %v1452_v0  ;;  %v1469_v22 = vxor.u32 %v1461_v5, %v1453_v53 }
 0x122   : > { %v1470_v17 = vxor.u32 %v1462_v9, %v1454_v14  ;;  %v1471_v36 = vxor.u32 %v1463_v3, %v1455_v26  ;;  %v1472_v55 = vxor.u32 %v1464_v51, %v1456_v25  ;;  %v4900_v13 = vmov 0.0  }
 0x123   : > { %v4100_v41 = vsel %vm1421_vm14, 1.0, %v4900_v13  ;;  %v4106_v34 = vsel %vm1422_vm15, 1.0, %v4900_v13  ;;  %v1473_v35 = vmul.u32 2146121005, %v1465_v50  ;;  %v1474_v7 = vmul.u32 2146121005, %v1466_v31 }
 0x124   : > { %4901 = vst [vmem:[#allocation23_spill] sm:$0xff] %v4100_v41  ;;  %4902 = vst [vmem:[#allocation24_spill] sm:$0xff] %v4106_v34  ;;  %v1475_v10 = vmul.u32 2146121005, %v1467_v44  ;;  %v1476_v0 = vmul.u32 2146121005, %v1468_v49  ;;  %v4110_v53 = vadd.s32 %v4006_v63, %v3444_v28  ;;  %v4114_v14 = vadd.s32 %v4006_v63, %v3446_v29 }
 0x125   : > { %v1477_v26 = vmul.u32 2146121005, %v1469_v22  ;;  %v1478_v25 = vmul.u32 2146121005, %v1470_v17  ;;  %v1481_v47 = vshrl.u32 %v1473_v35, 15  ;;  %v1482_v6 = vshrl.u32 %v1474_v7, 15 }
 0x126   : > { %4903 = vst [vmem:[#allocation25_spill] sm:$0xff] %v4110_v53  ;;  %4904 = vst [vmem:[#allocation26_spill] sm:$0xff] %v4114_v14  ;;  %v1479_v4 = vmul.u32 2146121005, %v1471_v36  ;;  %v1480_v11 = vmul.u32 2146121005, %v1472_v55 }
 0x127   : > { %v1483_v5 = vshrl.u32 %v1475_v10, 15  ;;  %v1484_v9 = vshrl.u32 %v1476_v0, 15  ;;  %v1485_v3 = vshrl.u32 %v1477_v26, 15  ;;  %v1486_v51 = vshrl.u32 %v1478_v25, 15 }
 0x128   : > { %v1489_v50 = vxor.u32 %v1481_v47, %v1473_v35  ;;  %v1490_v31 = vxor.u32 %v1482_v6, %v1474_v7  ;;  %v1487_v44 = vshrl.u32 %v1479_v4, 15  ;;  %v1488_v49 = vshrl.u32 %v1480_v11, 15 }
 0x129   : > { %v1491_v24 = vxor.u32 %v1483_v5, %v1475_v10  ;;  %v1492_v45 = vxor.u32 %v1484_v9, %v1476_v0  ;;  %v1493_v20 = vxor.u32 %v1485_v3, %v1477_v26  ;;  %v1494_v59 = vxor.u32 %v1486_v51, %v1478_v25 }
 0x12a   : > { %v1497_v57 = vmul.u32 2221713035, %v1489_v50  ;;  %v1498_v43 = vmul.u32 2221713035, %v1490_v31  ;;  %v1495_v22 = vxor.u32 %v1487_v44, %v1479_v4  ;;  %v1496_v17 = vxor.u32 %v1488_v49, %v1480_v11 }
 0x12b   : > { %v1499_v29 = vmul.u32 2221713035, %v1491_v24  ;;  %v1500_v28 = vmul.u32 2221713035, %v1492_v45 }
 0x12c   : > { %v1501_v36 = vmul.u32 2221713035, %v1493_v20  ;;  %v1502_v55 = vmul.u32 2221713035, %v1494_v59  ;;  %v1505_v34 = vshrl.u32 %v1497_v57, 16  ;;  %v1506_v41 = vshrl.u32 %v1498_v43, 16 }
 0x12d   : > { %v1503_v14 = vmul.u32 2221713035, %v1495_v22  ;;  %v1504_v53 = vmul.u32 2221713035, %v1496_v17  ;;  %v1507_v35 = vshrl.u32 %v1499_v29, 16  ;;  %v1508_v7 = vshrl.u32 %v1500_v28, 16 }
 0x12e   : > { %v1509_v47 = vshrl.u32 %v1501_v36, 16  ;;  %v1510_v6 = vshrl.u32 %v1502_v55, 16  ;;  %v1513_v10 = vxor.u32 %v1505_v34, %v1497_v57  ;;  %v1514_v0 = vxor.u32 %v1506_v41, %v1498_v43 }
 0x12f   : > { %v1511_v26 = vshrl.u32 %v1503_v14, 16  ;;  %v1512_v25 = vshrl.u32 %v1504_v53, 16  ;;  %v1515_v5 = vxor.u32 %v1507_v35, %v1499_v29  ;;  %v1516_v9 = vxor.u32 %v1508_v7, %v1500_v28 }
 0x130   : > { %v1517_v4 = vxor.u32 %v1509_v47, %v1501_v36  ;;  %v1518_v11 = vxor.u32 %v1510_v6, %v1502_v55  ;;  %v1521_v24 = vshrl.u32 %v1513_v10, 8  ;;  %v1522_v45 = vshrl.u32 %v1514_v0, 8 }
 0x131   : > { %v1519_v20 = vxor.u32 %v1511_v26, %v1503_v14  ;;  %v1520_v59 = vxor.u32 %v1512_v25, %v1504_v53  ;;  %v1523_v3 = vshrl.u32 %v1515_v5, 8  ;;  %v1524_v51 = vshrl.u32 %v1516_v9, 8 }
 0x132   : > { %v1525_v50 = vshrl.u32 %v1517_v4, 8  ;;  %v1526_v31 = vshrl.u32 %v1518_v11, 8  ;;  %v1529_v44 = vshrl.u32 %v1521_v24, 16  ;;  %v1530_v49 = vand.u32 65535, %v1521_v24 }
 0x133   : > { %v1527_v22 = vshrl.u32 %v1519_v20, 8  ;;  %v1528_v17 = vshrl.u32 %v1520_v59, 8  ;;  %v1535_v34 = vshrl.u32 %v1522_v45, 16  ;;  %v1536_v41 = vand.u32 65535, %v1522_v45 }
 0x134   : > { %v1531_v43 = vcvt.s32.f32 %v1529_v44  ;;  %v1533_v57 = vcvt.s32.f32 %v1530_v49  ;;  %v1541_v29 = vshrl.u32 %v1523_v3, 16  ;;  %v1542_v28 = vand.u32 65535, %v1523_v3 }
 0x135   : > { %v1537_v36 = vcvt.s32.f32 %v1535_v34  ;;  %v1539_v55 = vcvt.s32.f32 %v1536_v41  ;;  %v1547_v35 = vshrl.u32 %v1524_v51, 16  ;;  %v1548_v7 = vand.u32 65535, %v1524_v51 }
 0x136   : > { %v1532_v14 = vmul.f32 65536.0, %v1531_v43  ;;  %v1543_v53 = vcvt.s32.f32 %v1541_v29  ;;  %v1545_v47 = vcvt.s32.f32 %v1542_v28  ;;  %v1553_v6 = vshrl.u32 %v1525_v50, 16 }
 0x137   : > { %v1538_v10 = vmul.f32 65536.0, %v1537_v36  ;;  %v1549_v0 = vcvt.s32.f32 %v1547_v35  ;;  %v1551_v26 = vcvt.s32.f32 %v1548_v7  ;;  %v1554_v25 = vand.u32 65535, %v1525_v50 }
 0x138   : > { %v1534_v5 = vadd.f32 %v1533_v57, %v1532_v14  ;;  %v1544_v9 = vmul.f32 65536.0, %v1543_v53  ;;  %v1555_v4 = vcvt.s32.f32 %v1553_v6  ;;  %v1559_v11 = vshrl.u32 %v1526_v31, 16 }
 0x139   : > { %v1540_v24 = vadd.f32 %v1539_v55, %v1538_v10  ;;  %v1550_v45 = vmul.f32 65536.0, %v1549_v0  ;;  %v1557_v20 = vcvt.s32.f32 %v1554_v25  ;;  %v1560_v59 = vand.u32 65535, %v1526_v31 }
 0x13a   : > { %v1546_v3 = vadd.f32 %v1545_v47, %v1544_v9  ;;  %v1556_v44 = vmul.f32 65536.0, %v1555_v4  ;;  %v1561_v49 = vcvt.s32.f32 %v1559_v11  ;;  %v1565_v51 = vshrl.u32 %v1527_v22, 16 }
 0x13b   : > { %v1552_v34 = vadd.f32 %v1551_v26, %v1550_v45  ;;  %v1563_v41 = vcvt.s32.f32 %v1560_v59  ;;  %v1566_v43 = vand.u32 65535, %v1527_v22  ;;  %v1571_v29 = vshrl.u32 %v1528_v17, 16 }
 0x13c   : > { %v1558_v28 = vadd.f32 %v1557_v20, %v1556_v44  ;;  %v1562_v36 = vmul.f32 65536.0, %v1561_v49  ;;  %v1567_v35 = vcvt.s32.f32 %v1565_v51  ;;  %v1572_v50 = vand.u32 65535, %v1528_v17 }
 0x13d   : > { %v1569_v57 = vcvt.s32.f32 %v1566_v43  ;;  %v1573_v7 = vcvt.s32.f32 %v1571_v29  ;;  %v1577_v14 = vadd.f32 0.5, %v1534_v5  ;;  %v1578_v53 = vadd.f32 0.5, %v1540_v24 }
 0x13e   : > { %v1564_v55 = vadd.f32 %v1563_v41, %v1562_v36  ;;  %v1568_v6 = vmul.f32 65536.0, %v1567_v35  ;;  %v1575_v10 = vcvt.s32.f32 %v1572_v50  ;;  %v1579_v31 = vadd.f32 0.5, %v1546_v3 }
 0x13f   : > { %v1574_v47 = vmul.f32 65536.0, %v1573_v7  ;;  %v1580_v0 = vadd.f32 0.5, %v1552_v34  ;;  %v1581_v25 = vadd.f32 0.5, %v1558_v28  ;;  %v1585_v9 = vmul.f32 5.9604645e-08, %v1577_v14 }
 0x140   : > { %v1570_v26 = vadd.f32 %v1569_v57, %v1568_v6  ;;  %v1582_v4 = vadd.f32 0.5, %v1564_v55  ;;  %v1586_v22 = vmul.f32 5.9604645e-08, %v1578_v53  ;;  %v1587_v11 = vmul.f32 5.9604645e-08, %v1579_v31  ;;  %v4906_v31 = vld [vmem:[#allocation26_spill] sm:$0xff] }
 0x141   : > { %v1576_v45 = vadd.f32 %v1575_v10, %v1574_v47  ;;  %v1588_v20 = vmul.f32 5.9604645e-08, %v1580_v0  ;;  %v1589_v59 = vmul.f32 5.9604645e-08, %v1581_v25  ;;  %v4117_v17 = vmul.f32 %v1585_v9, %v4026_v39  ;;  %v4905_v10 = vld [vmem:[#allocation25_spill] sm:$0xff] }
 0x142   : > { %v1583_v5 = vadd.f32 0.5, %v1570_v26  ;;  %v1590_v24 = vmul.f32 5.9604645e-08, %v1582_v4  ;;  %v4120_v44 = vmul.f32 %v1586_v22, %v4028_v19  ;;  %v4123_v3 = vmul.f32 %v1587_v11, %v4030_v15 }
 0x143   : > { %v1584_v49 = vadd.f32 0.5, %v1576_v45  ;;  %v4126_v51 = vmul.f32 %v1588_v20, %v4032_v37  ;;  %v4129_v34 = vmul.f32 %v1589_v59, %v4038_v23  ;;  %vm1601_vm1 = vcmp.gt.f32.partialorder %v4117_v17, %v3958_v30 }
 0x144   : > { %v1591_v39 = vmul.f32 5.9604645e-08, %v1583_v5  ;;  %v4134_v41 = vmul.f32 %v1590_v24, %v4048_v54  ;;  %vm1602_vm0 = vcmp.gt.f32.partialorder %v4120_v44, %v3961_v38  ;;  %vm1603_vm2 = vcmp.gt.f32.partialorder %v4123_v3, %v3964_v8 }
 0x145   : > { %v1592_v19 = vmul.f32 5.9604645e-08, %v1584_v49  ;;  %vm1604_vm3 = vcmp.gt.f32.partialorder %v4126_v51, %v3971_v62  ;;  %vm1605_vm4 = vcmp.gt.f32.partialorder %v4129_v34, %v3977_v58  ;;  %v3006_v15 = vsel %vm1601_vm1, 1.0, %v4900_v13  ;;  %v4907_v49 = vld [vmem:[#allocation23_spill] sm:$0xff] }
 0x146   : > { %v4146_v37 = vmul.f32 %v1591_v39, %v4050_v40  ;;  %vm1606_vm5 = vcmp.gt.f32.partialorder %v4134_v41, %v3983_v27  ;;  %v3007_v23 = vsel %vm1602_vm0, 1.0, %v4900_v13  ;;  %v3008_v54 = vsel %vm1603_vm2, 1.0, %v4900_v13 }
 0x147   : > { %v4153_v43 = vmul.f32 %v1592_v19, %v4070_v60  ;;  %v3009_v29 = vsel %vm1604_vm3, 1.0, %v4900_v13  ;;  %v3010_v28 = vsel %vm1605_vm4, 1.0, %v4900_v13  ;;  %v1637_v36 = vadd.s32 %v4006_v63, %v3448_v32  ;;  %v4909_v19 = vld [vmem:[#allocation24_spill] sm:$0xff] }
 0x148   : > { %vm1607_vm8 = vcmp.gt.f32.partialorder %v4146_v37, %v3996_v21  ;;  %v3011_v40 = vsel %vm1606_vm5, 1.0, %v4900_v13  ;;  %v4163_v35 = vadd.f32 %v3006_v15, %v4055_v16  ;;  %v1638_v50 = vadd.s32 %v4006_v63, %v3450_v33 }
 0x149   : > { %vm1608_vm11 = vcmp.gt.f32.partialorder %v4153_v43, %v3999_v2  ;;  %v3012_v60 = vsel %vm1607_vm8, 1.0, %v4900_v13  ;;  %v4171_v57 = vadd.f32 %v3007_v23, %v4058_v42  ;;  %v4174_v7 = vadd.f32 %v3008_v54, %v4063_v12 }
 0x14a   : > { %v3013_v14 = vsel %vm1608_vm11, 1.0, %v4900_v13  ;;  %v4178_v53 = vadd.f32 %v3009_v29, %v4066_v18  ;;  %v4181_v16 = vadd.f32 %v3010_v28, %v4075_v48  ;;  %v1639_v55 = vadd.s32 %v4006_v63, %v3923_v52 }
 0x14b   : > { %v4186_v6 = vadd.f32 %v3011_v40, %v4088_v46  ;;  %v1640_v42 = vadd.s32 %v4006_v63, %v3926_v61  ;;  %v1641_v12 = vadd.s32 %v4006_v63, %v3929_v1  ;;  %v1642_v18 = vadd.s32 %v4006_v63, %v3932_v56 }
 0x14c   : > { %v1643_v48 = vshrl.u32 %v4905_v10, 16  ;;  %v1644_v47 = vshrl.u32 %v4906_v31, 16  ;;  %v1645_v0 = vshrl.u32 %v1637_v36, 16  ;;  %v1646_v25 = vshrl.u32 %v1638_v50, 16 }
 0x14d   : > { %v1647_v9 = vshrl.u32 %v1639_v55, 16  ;;  %v1648_v46 = vshrl.u32 %v1640_v42, 16  ;;  %v1649_v26 = vshrl.u32 %v1641_v12, 16  ;;  %v1650_v4 = vshrl.u32 %v1642_v18, 16 }
 0x14e   : > { %v1651_v22 = vxor.u32 %v1643_v48, %v4905_v10  ;;  %v1652_v11 = vxor.u32 %v1644_v47, %v4906_v31  ;;  %v1653_v45 = vxor.u32 %v1645_v0, %v1637_v36  ;;  %v1654_v20 = vxor.u32 %v1646_v25, %v1638_v50 }
 0x14f   : > { %v1655_v59 = vxor.u32 %v1647_v9, %v1639_v55  ;;  %v1656_v63 = vxor.u32 %v1648_v46, %v1640_v42  ;;  %v1657_v5 = vxor.u32 %v1649_v26, %v1641_v12  ;;  %v1658_v24 = vxor.u32 %v1650_v4, %v1642_v18 }
 0x150   : > { %v4201_v39 = vadd.f32 %v3012_v60, %v4907_v49  ;;  %v4204_v15 = vadd.f32 %v3013_v14, %v4909_v19  ;;  %v1659_v23 = vmul.u32 2146121005, %v1651_v22  ;;  %v1660_v54 = vmul.u32 2146121005, %v1652_v11 }
 0x151   : > { %v1661_v29 = vmul.u32 2146121005, %v1653_v45  ;;  %v1662_v28 = vmul.u32 2146121005, %v1654_v20  ;;  %v4206_v40 = vstv %s1819_s8  ;;  %v4208_v36 = vstv %s2005_s9 }
 0x152   : > { %4908 = vst [vmem:[#allocation25_spill] sm:$0xff] %v4201_v39  ;;  %4910 = vst [vmem:[#allocation26_spill] sm:$0xff] %v4204_v15  ;;  %v1663_v50 = vmul.u32 2146121005, %v1655_v59  ;;  %v1664_v10 = vmul.u32 2146121005, %v1656_v63 }
 0x153   : > { %4911 = vst [vmem:[#allocation23_spill] sm:$0xff] %v4208_v36  ;;  %v1667_v55 = vshrl.u32 %v1659_v23, 15  ;;  %v1668_v42 = vshrl.u32 %v1660_v54, 15  ;;  %v1665_v12 = vmul.u32 2146121005, %v1657_v5  ;;  %v1669_v48 = vshrl.u32 %v1661_v29, 15 }
 0x154   : > { %v1666_v18 = vmul.u32 2146121005, %v1658_v24  ;;  %v1670_v60 = vshrl.u32 %v1662_v28, 15  ;;  %v1671_v31 = vshrl.u32 %v1663_v50, 15  ;;  %v1672_v47 = vshrl.u32 %v1664_v10, 15 }
 0x155   : > { %v1675_v14 = vxor.u32 %v1667_v55, %v1659_v23  ;;  %v1676_v0 = vxor.u32 %v1668_v42, %v1660_v54  ;;  %v1673_v25 = vshrl.u32 %v1665_v12, 15  ;;  %v1677_v46 = vxor.u32 %v1669_v48, %v1661_v29 }
 0x156   : > { %v1674_v9 = vshrl.u32 %v1666_v18, 15  ;;  %v1678_v26 = vxor.u32 %v1670_v60, %v1662_v28  ;;  %v1679_v4 = vxor.u32 %v1671_v31, %v1663_v50  ;;  %v1680_v22 = vxor.u32 %v1672_v47, %v1664_v10 }
 0x157   : > { %v1683_v11 = vmul.u32 2221713035, %v1675_v14  ;;  %v1684_v45 = vmul.u32 2221713035, %v1676_v0  ;;  %v1681_v20 = vxor.u32 %v1673_v25, %v1665_v12 }
 0x158   : > { %v1682_v59 = vxor.u32 %v1674_v9, %v1666_v18  ;;  %v1685_v63 = vmul.u32 2221713035, %v1677_v46  ;;  %v1686_v49 = vmul.u32 2221713035, %v1678_v26 }
 0x159   : > { %v1687_v5 = vmul.u32 2221713035, %v1679_v4  ;;  %v1688_v24 = vmul.u32 2221713035, %v1680_v22  ;;  %v1691_v19 = vshrl.u32 %v1683_v11, 16  ;;  %v1692_v36 = vshrl.u32 %v1684_v45, 16 }
 0x15a   : > { %v1689_v15 = vmul.u32 2221713035, %v1681_v20  ;;  %v1690_v39 = vmul.u32 2221713035, %v1682_v59  ;;  %v1693_v23 = vshrl.u32 %v1685_v63, 16  ;;  %v1694_v54 = vshrl.u32 %v1686_v49, 16 }
 0x15b   : > { %v1695_v55 = vshrl.u32 %v1687_v5, 16  ;;  %v1696_v42 = vshrl.u32 %v1688_v24, 16  ;;  %v1699_v29 = vxor.u32 %v1691_v19, %v1683_v11  ;;  %v1700_v28 = vxor.u32 %v1692_v36, %v1684_v45 }
 0x15c   : > { %v1697_v50 = vshrl.u32 %v1689_v15, 16  ;;  %v1698_v10 = vshrl.u32 %v1690_v39, 16  ;;  %v1701_v48 = vxor.u32 %v1693_v23, %v1685_v63  ;;  %v1702_v60 = vxor.u32 %v1694_v54, %v1686_v49 }
 0x15d   : > { %v1703_v12 = vxor.u32 %v1695_v55, %v1687_v5  ;;  %v1704_v18 = vxor.u32 %v1696_v42, %v1688_v24  ;;  %v1707_v31 = vshrl.u32 %v1699_v29, 8  ;;  %v1708_v47 = vshrl.u32 %v1700_v28, 8 }
 0x15e   : > { %v1705_v14 = vxor.u32 %v1697_v50, %v1689_v15  ;;  %v1706_v0 = vxor.u32 %v1698_v10, %v1690_v39  ;;  %v1709_v25 = vshrl.u32 %v1701_v48, 8  ;;  %v1710_v9 = vshrl.u32 %v1702_v60, 8 }
 0x15f   : > { %v1711_v46 = vshrl.u32 %v1703_v12, 8  ;;  %v1712_v26 = vshrl.u32 %v1704_v18, 8  ;;  %v1715_v4 = vshrl.u32 %v1707_v31, 16  ;;  %v1716_v22 = vand.u32 65535, %v1707_v31 }
 0x160   : > { %v1713_v20 = vshrl.u32 %v1705_v14, 8  ;;  %v1714_v59 = vshrl.u32 %v1706_v0, 8  ;;  %v1721_v11 = vshrl.u32 %v1708_v47, 16  ;;  %v1722_v36 = vand.u32 65535, %v1708_v47 }
 0x161   : > { %v1717_v45 = vcvt.s32.f32 %v1715_v4  ;;  %v1719_v19 = vcvt.s32.f32 %v1716_v22  ;;  %v1727_v63 = vshrl.u32 %v1709_v25, 16  ;;  %v1728_v49 = vand.u32 65535, %v1709_v25 }
 0x162   : > { %v1723_v5 = vcvt.s32.f32 %v1721_v11  ;;  %v1725_v24 = vcvt.s32.f32 %v1722_v36  ;;  %v1733_v23 = vshrl.u32 %v1710_v9, 16  ;;  %v1734_v54 = vand.u32 65535, %v1710_v9 }
 0x163   : > { %v1718_v15 = vmul.f32 65536.0, %v1717_v45  ;;  %v1729_v39 = vcvt.s32.f32 %v1727_v63  ;;  %v1731_v55 = vcvt.s32.f32 %v1728_v49  ;;  %v1739_v42 = vshrl.u32 %v1711_v46, 16 }
 0x164   : > { %v1724_v29 = vmul.f32 65536.0, %v1723_v5  ;;  %v1735_v28 = vcvt.s32.f32 %v1733_v23  ;;  %v1737_v50 = vcvt.s32.f32 %v1734_v54  ;;  %v1740_v10 = vand.u32 65535, %v1711_v46 }
 0x165   : > { %v1720_v48 = vadd.f32 %v1719_v19, %v1718_v15  ;;  %v1730_v60 = vmul.f32 65536.0, %v1729_v39  ;;  %v1741_v12 = vcvt.s32.f32 %v1739_v42  ;;  %v1745_v18 = vshrl.u32 %v1712_v26, 16 }
 0x166   : > { %v1726_v31 = vadd.f32 %v1725_v24, %v1724_v29  ;;  %v1736_v47 = vmul.f32 65536.0, %v1735_v28  ;;  %v1743_v14 = vcvt.s32.f32 %v1740_v10  ;;  %v1746_v0 = vand.u32 65535, %v1712_v26 }
 0x167   : > { %v1732_v25 = vadd.f32 %v1731_v55, %v1730_v60  ;;  %v1742_v4 = vmul.f32 65536.0, %v1741_v12  ;;  %v1747_v22 = vcvt.s32.f32 %v1745_v18  ;;  %v1751_v9 = vshrl.u32 %v1713_v20, 16 }
 0x168   : > { %v1738_v11 = vadd.f32 %v1737_v50, %v1736_v47  ;;  %v1749_v36 = vcvt.s32.f32 %v1746_v0  ;;  %v1752_v45 = vand.u32 65535, %v1713_v20  ;;  %v1757_v63 = vshrl.u32 %v1714_v59, 16 }
 0x169   : > { %v1744_v49 = vadd.f32 %v1743_v14, %v1742_v4  ;;  %v1748_v5 = vmul.f32 65536.0, %v1747_v22  ;;  %v1753_v23 = vcvt.s32.f32 %v1751_v9  ;;  %v1758_v46 = vand.u32 65535, %v1714_v59 }
 0x16a   : > { %v1755_v19 = vcvt.s32.f32 %v1752_v45  ;;  %v1759_v54 = vcvt.s32.f32 %v1757_v63  ;;  %v1763_v15 = vadd.f32 0.5, %v1720_v48  ;;  %v1764_v39 = vadd.f32 0.5, %v1726_v31 }
 0x16b   : > { %v1750_v24 = vadd.f32 %v1749_v36, %v1748_v5  ;;  %v1754_v42 = vmul.f32 65536.0, %v1753_v23  ;;  %v1761_v29 = vcvt.s32.f32 %v1758_v46  ;;  %v1765_v26 = vadd.f32 0.5, %v1732_v25  ;;  %v4912_v5 = vld [vmem:[#allocation10_spill] sm:$0xff] }
 0x16c   : > { %v1760_v55 = vmul.f32 65536.0, %v1759_v54  ;;  %v1766_v28 = vadd.f32 0.5, %v1738_v11  ;;  %v1767_v10 = vadd.f32 0.5, %v1744_v49  ;;  %v1771_v60 = vmul.f32 5.9604645e-08, %v1763_v15 }
 0x16d   : > { %v1756_v50 = vadd.f32 %v1755_v19, %v1754_v42  ;;  %v1768_v12 = vadd.f32 0.5, %v1750_v24  ;;  %v1772_v20 = vmul.f32 5.9604645e-08, %v1764_v39  ;;  %v1773_v18 = vmul.f32 5.9604645e-08, %v1765_v26  ;;  %v4913_v19 = vld [vmem:[#allocation11_spill] sm:$0xff] }
 0x16e   : > { %v1762_v47 = vadd.f32 %v1761_v29, %v1760_v55  ;;  %v1774_v14 = vmul.f32 5.9604645e-08, %v1766_v28  ;;  %v1775_v0 = vmul.f32 5.9604645e-08, %v1767_v10  ;;  %v4211_v59 = vmul.f32 %v1771_v60, %v4117_v17 }
 0x16f   : > { %v1769_v48 = vadd.f32 0.5, %v1756_v50  ;;  %v1776_v31 = vmul.f32 5.9604645e-08, %v1768_v12  ;;  %v4214_v4 = vmul.f32 %v1772_v20, %v4120_v44  ;;  %v4217_v25 = vmul.f32 %v1773_v18, %v4123_v3 }
 0x170   : > { %v1770_v22 = vadd.f32 0.5, %v1762_v47  ;;  %v4220_v9 = vmul.f32 %v1774_v14, %v4126_v51  ;;  %v4223_v11 = vmul.f32 %v1775_v0, %v4129_v34  ;;  %vm1787_vm13 = vcmp.gt.f32.partialorder %v4211_v59, %v3958_v30 }
 0x171   : > { %v1777_v17 = vmul.f32 5.9604645e-08, %v1769_v48  ;;  %v4228_v36 = vmul.f32 %v1776_v31, %v4134_v41  ;;  %vm1788_vm6 = vcmp.gt.f32.partialorder %v4214_v4, %v3961_v38  ;;  %vm1789_vm7 = vcmp.gt.f32.partialorder %v4217_v25, %v3964_v8 }
 0x172   : > { %v1778_v44 = vmul.f32 5.9604645e-08, %v1770_v22  ;;  %vm1790_vm9 = vcmp.gt.f32.partialorder %v4220_v9, %v3971_v62  ;;  %vm1791_vm10 = vcmp.gt.f32.partialorder %v4223_v11, %v3977_v58  ;;  %v3014_v3 = vsel %vm1787_vm13, 1.0, %v4900_v13 }
 0x173   : > { %v4240_v51 = vmul.f32 %v1777_v17, %v4146_v37  ;;  %vm1792_vm12 = vcmp.gt.f32.partialorder %v4228_v36, %v3983_v27  ;;  %v3015_v34 = vsel %vm1788_vm6, 1.0, %v4900_v13  ;;  %v3016_v41 = vsel %vm1789_vm7, 1.0, %v4900_v13 }
 0x174   : > { %v4247_v45 = vmul.f32 %v1778_v44, %v4153_v43  ;;  %v3017_v63 = vsel %vm1790_vm9, 1.0, %v4900_v13  ;;  %v3018_v49 = vsel %vm1791_vm10, 1.0, %v4900_v13  ;;  %v1821_v23 = vadd.s32 %v4206_v40, %v4912_v5 }
 0x175   : > { %vm1793_vm14 = vcmp.gt.f32.partialorder %v4240_v51, %v3996_v21  ;;  %v3019_v37 = vsel %vm1792_vm12, 1.0, %v4900_v13  ;;  %v4257_v46 = vadd.f32 %v3014_v3, %v4163_v35  ;;  %v1822_v54 = vadd.s32 %v4206_v40, %v4913_v19 }
 0x176   : > { %vm1794_vm15 = vcmp.gt.f32.partialorder %v4247_v45, %v3999_v2  ;;  %v3020_v43 = vsel %vm1793_vm14, 1.0, %v4900_v13  ;;  %v4265_v15 = vadd.f32 %v3015_v34, %v4171_v57  ;;  %v4268_v39 = vadd.f32 %v3016_v41, %v4174_v7  ;;  %v4914_v41 = vld [vmem:[#allocation25_spill] sm:$0xff] }
 0x177   : > { %v3021_v24 = vsel %vm1794_vm15, 1.0, %v4900_v13  ;;  %v4272_v42 = vadd.f32 %v3017_v63, %v4178_v53  ;;  %v4275_v35 = vadd.f32 %v3018_v49, %v4181_v16  ;;  %v1823_v29 = vadd.s32 %v4206_v40, %v3448_v32  ;;  %v4915_v63 = vld [vmem:[#allocation26_spill] sm:$0xff] }
 0x178   : > { %v4280_v26 = vadd.f32 %v3019_v37, %v4186_v6  ;;  %v1824_v57 = vadd.s32 %v4206_v40, %v3450_v33  ;;  %v1825_v7 = vadd.s32 %v4206_v40, %v3923_v52  ;;  %v1826_v55 = vadd.s32 %v4206_v40, %v3926_v61 }
 0x179   : > { %v1827_v53 = vadd.s32 %v4206_v40, %v3929_v1  ;;  %v1828_v16 = vadd.s32 %v4206_v40, %v3932_v56  ;;  %v1829_v28 = vshrl.u32 %v1821_v23, 16  ;;  %v1830_v10 = vshrl.u32 %v1822_v54, 16 }
 0x17a   : > { %v1831_v60 = vshrl.u32 %v1823_v29, 16  ;;  %v1832_v6 = vshrl.u32 %v1824_v57, 16  ;;  %v1833_v50 = vshrl.u32 %v1825_v7, 16  ;;  %v1834_v12 = vshrl.u32 %v1826_v55, 16 }
 0x17b   : > { %v1835_v20 = vshrl.u32 %v1827_v53, 16  ;;  %v1836_v18 = vshrl.u32 %v1828_v16, 16  ;;  %v1837_v47 = vxor.u32 %v1829_v28, %v1821_v23  ;;  %v1838_v14 = vxor.u32 %v1830_v10, %v1822_v54 }
 0x17c   : > { %v1839_v0 = vxor.u32 %v1831_v60, %v1823_v29  ;;  %v1840_v48 = vxor.u32 %v1832_v6, %v1824_v57  ;;  %v1841_v31 = vxor.u32 %v1833_v50, %v1825_v7  ;;  %v1842_v22 = vxor.u32 %v1834_v12, %v1826_v55 }
 0x17d   : > { %v1843_v17 = vxor.u32 %v1835_v20, %v1827_v53  ;;  %v1844_v44 = vxor.u32 %v1836_v18, %v1828_v16  ;;  %v1845_v3 = vmul.u32 2146121005, %v1837_v47  ;;  %v1846_v34 = vmul.u32 2146121005, %v1838_v14 }
 0x17e   : > { %v4293_v40 = vadd.f32 %v3020_v43, %v4914_v41  ;;  %v4296_v49 = vadd.f32 %v3021_v24, %v4915_v63  ;;  %v1847_v37 = vmul.u32 2146121005, %v1839_v0  ;;  %v1848_v56 = vmul.u32 2146121005, %v1840_v48 }
 0x17f   : > { %v1849_v1 = vmul.u32 2146121005, %v1841_v31  ;;  %v1850_v61 = vmul.u32 2146121005, %v1842_v22  ;;  %v1853_v23 = vshrl.u32 %v1845_v3, 15  ;;  %v1854_v54 = vshrl.u32 %v1846_v34, 15 }
 0x180   : > { %v1851_v29 = vmul.u32 2146121005, %v1843_v17  ;;  %v1852_v57 = vmul.u32 2146121005, %v1844_v44  ;;  %v1855_v7 = vshrl.u32 %v1847_v37, 15  ;;  %v1856_v55 = vshrl.u32 %v1848_v56, 15 }
 0x181   : > { %v1857_v53 = vshrl.u32 %v1849_v1, 15  ;;  %v1858_v16 = vshrl.u32 %v1850_v61, 15  ;;  %v1861_v28 = vxor.u32 %v1853_v23, %v1845_v3  ;;  %v1862_v10 = vxor.u32 %v1854_v54, %v1846_v34 }
 0x182   : > { %v1859_v60 = vshrl.u32 %v1851_v29, 15  ;;  %v1860_v43 = vshrl.u32 %v1852_v57, 15  ;;  %v1863_v6 = vxor.u32 %v1855_v7, %v1847_v37  ;;  %v1864_v50 = vxor.u32 %v1856_v55, %v1848_v56 }
 0x183   : > { %v1865_v24 = vxor.u32 %v1857_v53, %v1849_v1  ;;  %v1866_v12 = vxor.u32 %v1858_v16, %v1850_v61  ;;  %v1869_v20 = vmul.u32 2221713035, %v1861_v28  ;;  %v1870_v18 = vmul.u32 2221713035, %v1862_v10 }
 0x184   : > { %v1867_v47 = vxor.u32 %v1859_v60, %v1851_v29  ;;  %v1868_v14 = vxor.u32 %v1860_v43, %v1852_v57  ;;  %v1871_v0 = vmul.u32 2221713035, %v1863_v6  ;;  %v1872_v48 = vmul.u32 2221713035, %v1864_v50 }
 0x185   : > { %v1873_v31 = vmul.u32 2221713035, %v1865_v24  ;;  %v1874_v22 = vmul.u32 2221713035, %v1866_v12  ;;  %v1877_v17 = vshrl.u32 %v1869_v20, 16  ;;  %v1878_v44 = vshrl.u32 %v1870_v18, 16 }
 0x186   : > { %v1875_v41 = vmul.u32 2221713035, %v1867_v47  ;;  %v1876_v63 = vmul.u32 2221713035, %v1868_v14  ;;  %v1879_v3 = vshrl.u32 %v1871_v0, 16  ;;  %v1880_v34 = vshrl.u32 %v1872_v48, 16 }
 0x187   : > { %v1881_v23 = vshrl.u32 %v1873_v31, 16  ;;  %v1882_v54 = vshrl.u32 %v1874_v22, 16  ;;  %v1885_v37 = vxor.u32 %v1877_v17, %v1869_v20  ;;  %v1886_v56 = vxor.u32 %v1878_v44, %v1870_v18 }
 0x188   : > { %v1883_v1 = vshrl.u32 %v1875_v41, 16  ;;  %v1884_v61 = vshrl.u32 %v1876_v63, 16  ;;  %v1887_v7 = vxor.u32 %v1879_v3, %v1871_v0  ;;  %v1888_v55 = vxor.u32 %v1880_v34, %v1872_v48 }
 0x189   : > { %v1889_v29 = vxor.u32 %v1881_v23, %v1873_v31  ;;  %v1890_v57 = vxor.u32 %v1882_v54, %v1874_v22  ;;  %v1893_v53 = vshrl.u32 %v1885_v37, 8  ;;  %v1894_v16 = vshrl.u32 %v1886_v56, 8 }
 0x18a   : > { %v1891_v28 = vxor.u32 %v1883_v1, %v1875_v41  ;;  %v1892_v10 = vxor.u32 %v1884_v61, %v1876_v63  ;;  %v1895_v60 = vshrl.u32 %v1887_v7, 8  ;;  %v1896_v43 = vshrl.u32 %v1888_v55, 8 }
 0x18b   : > { %v1897_v6 = vshrl.u32 %v1889_v29, 8  ;;  %v1898_v50 = vshrl.u32 %v1890_v57, 8  ;;  %v1901_v24 = vshrl.u32 %v1893_v53, 16  ;;  %v1902_v12 = vand.u32 65535, %v1893_v53 }
 0x18c   : > { %v1899_v47 = vshrl.u32 %v1891_v28, 8  ;;  %v1900_v14 = vshrl.u32 %v1892_v10, 8  ;;  %v1907_v20 = vshrl.u32 %v1894_v16, 16  ;;  %v1908_v18 = vand.u32 65535, %v1894_v16 }
 0x18d   : > { %v1903_v17 = vcvt.s32.f32 %v1901_v24  ;;  %v1905_v44 = vcvt.s32.f32 %v1902_v12  ;;  %v1913_v0 = vshrl.u32 %v1895_v60, 16  ;;  %v1914_v48 = vand.u32 65535, %v1895_v60 }
 0x18e   : > { %v1909_v31 = vcvt.s32.f32 %v1907_v20  ;;  %v1911_v22 = vcvt.s32.f32 %v1908_v18  ;;  %v1919_v3 = vshrl.u32 %v1896_v43, 16  ;;  %v1920_v34 = vand.u32 65535, %v1896_v43 }
 0x18f   : > { %v1904_v41 = vmul.f32 65536.0, %v1903_v17  ;;  %v1915_v63 = vcvt.s32.f32 %v1913_v0  ;;  %v1917_v23 = vcvt.s32.f32 %v1914_v48  ;;  %v1925_v54 = vshrl.u32 %v1897_v6, 16 }
 0x190   : > { %v1910_v37 = vmul.f32 65536.0, %v1909_v31  ;;  %v1921_v56 = vcvt.s32.f32 %v1919_v3  ;;  %v1923_v1 = vcvt.s32.f32 %v1920_v34  ;;  %v1926_v61 = vand.u32 65535, %v1897_v6 }
 0x191   : > { %v1906_v7 = vadd.f32 %v1905_v44, %v1904_v41  ;;  %v1916_v55 = vmul.f32 65536.0, %v1915_v63  ;;  %v1927_v29 = vcvt.s32.f32 %v1925_v54  ;;  %v1931_v57 = vshrl.u32 %v1898_v50, 16 }
 0x192   : > { %v1912_v53 = vadd.f32 %v1911_v22, %v1910_v37  ;;  %v1922_v16 = vmul.f32 65536.0, %v1921_v56  ;;  %v1929_v28 = vcvt.s32.f32 %v1926_v61  ;;  %v1932_v10 = vand.u32 65535, %v1898_v50 }
 0x193   : > { %v1918_v60 = vadd.f32 %v1917_v23, %v1916_v55  ;;  %v1928_v24 = vmul.f32 65536.0, %v1927_v29  ;;  %v1933_v12 = vcvt.s32.f32 %v1931_v57  ;;  %v1937_v43 = vshrl.u32 %v1899_v47, 16 }
 0x194   : > { %v1924_v20 = vadd.f32 %v1923_v1, %v1922_v16  ;;  %v1935_v18 = vcvt.s32.f32 %v1932_v10  ;;  %v1938_v17 = vand.u32 65535, %v1899_v47  ;;  %v1943_v0 = vshrl.u32 %v1900_v14, 16 }
 0x195   : > { %v1930_v48 = vadd.f32 %v1929_v28, %v1928_v24  ;;  %v1934_v31 = vmul.f32 65536.0, %v1933_v12  ;;  %v1939_v3 = vcvt.s32.f32 %v1937_v43  ;;  %v1944_v6 = vand.u32 65535, %v1900_v14 }
 0x196   : > { %v1941_v44 = vcvt.s32.f32 %v1938_v17  ;;  %v1945_v34 = vcvt.s32.f32 %v1943_v0  ;;  %v1949_v41 = vadd.f32 0.5, %v1906_v7  ;;  %v1950_v63 = vadd.f32 0.5, %v1912_v53 }
 0x197   : > { %v1936_v22 = vadd.f32 %v1935_v18, %v1934_v31  ;;  %v1940_v54 = vmul.f32 65536.0, %v1939_v3  ;;  %v1947_v37 = vcvt.s32.f32 %v1944_v6  ;;  %v1951_v50 = vadd.f32 0.5, %v1918_v60  ;;  %v4916_v31 = vld [vmem:[#allocation23_spill] sm:$0xff] }
 0x198   : > { %v1946_v23 = vmul.f32 65536.0, %v1945_v34  ;;  %v1952_v56 = vadd.f32 0.5, %v1924_v20  ;;  %v1953_v61 = vadd.f32 0.5, %v1930_v48  ;;  %v1957_v55 = vmul.f32 5.9604645e-08, %v1949_v41 }
 0x199   : > { %v1942_v1 = vadd.f32 %v1941_v44, %v1940_v54  ;;  %v1954_v29 = vadd.f32 0.5, %v1936_v22  ;;  %v1958_v47 = vmul.f32 5.9604645e-08, %v1950_v63  ;;  %v1959_v57 = vmul.f32 5.9604645e-08, %v1951_v50  ;;  %v4917_v50 = vld [vmem:[#allocation14_spill] sm:$0xff] }
 0x19a   : > { %v1948_v16 = vadd.f32 %v1947_v37, %v1946_v23  ;;  %v1960_v28 = vmul.f32 5.9604645e-08, %v1952_v56  ;;  %v1961_v10 = vmul.f32 5.9604645e-08, %v1953_v61  ;;  %v4299_v14 = vmul.f32 %v1957_v55, %v4211_v59 }
 0x19b   : > { %v1955_v7 = vadd.f32 0.5, %v1942_v1  ;;  %v1962_v53 = vmul.f32 5.9604645e-08, %v1954_v29  ;;  %v4302_v24 = vmul.f32 %v1958_v47, %v4214_v4  ;;  %v4305_v60 = vmul.f32 %v1959_v57, %v4217_v25 }
 0x19c   : > { %v1956_v12 = vadd.f32 0.5, %v1948_v16  ;;  %v4308_v43 = vmul.f32 %v1960_v28, %v4220_v9  ;;  %v4311_v20 = vmul.f32 %v1961_v10, %v4223_v11  ;;  %vm1973_vm1 = vcmp.gt.f32.partialorder %v4299_v14, %v3958_v30 }
 0x19d   : > { %v1963_v59 = vmul.f32 5.9604645e-08, %v1955_v7  ;;  %v4316_v18 = vmul.f32 %v1962_v53, %v4228_v36  ;;  %vm1974_vm0 = vcmp.gt.f32.partialorder %v4302_v24, %v3961_v38  ;;  %vm1975_vm2 = vcmp.gt.f32.partialorder %v4305_v60, %v3964_v8 }
 0x19e   : > { %v1964_v4 = vmul.f32 5.9604645e-08, %v1956_v12  ;;  %vm1976_vm3 = vcmp.gt.f32.partialorder %v4308_v43, %v3971_v62  ;;  %vm1977_vm4 = vcmp.gt.f32.partialorder %v4311_v20, %v3977_v58  ;;  %v3022_v25 = vsel %vm1973_vm1, 1.0, %v4900_v13 }
 0x19f   : > { %v4328_v9 = vmul.f32 %v1963_v59, %v4240_v51  ;;  %vm1978_vm5 = vcmp.gt.f32.partialorder %v4316_v18, %v3983_v27  ;;  %v3023_v11 = vsel %vm1974_vm0, 1.0, %v4900_v13  ;;  %v3024_v36 = vsel %vm1975_vm2, 1.0, %v4900_v13 }
 0x1a0   : > { %v4335_v17 = vmul.f32 %v1964_v4, %v4247_v45  ;;  %v3025_v0 = vsel %vm1976_vm3, 1.0, %v4900_v13  ;;  %v3026_v48 = vsel %vm1977_vm4, 1.0, %v4900_v13  ;;  %v2007_v3 = vadd.s32 %v4916_v31, %v4912_v5 }
 0x1a1   : > { %vm1979_vm8 = vcmp.gt.f32.partialorder %v4328_v9, %v3996_v21  ;;  %v3027_v51 = vsel %vm1978_vm5, 1.0, %v4900_v13  ;;  %v4345_v6 = vadd.f32 %v3022_v25, %v4257_v46  ;;  %v2008_v44 = vadd.s32 %v4916_v31, %v4913_v19 }
 0x1a2   : > { %vm1980_vm11 = vcmp.gt.f32.partialorder %v4335_v17, %v3999_v2  ;;  %v3028_v45 = vsel %vm1979_vm8, 1.0, %v4900_v13  ;;  %v4353_v34 = vadd.f32 %v3023_v11, %v4265_v15  ;;  %v4356_v41 = vadd.f32 %v3024_v36, %v4268_v39 }
 0x1a3   : > { %v3029_v63 = vsel %vm1980_vm11, 1.0, %v4900_v13  ;;  %v4360_v22 = vadd.f32 %v3025_v0, %v4272_v42  ;;  %v4363_v46 = vadd.f32 %v3026_v48, %v4275_v35  ;;  %v2009_v54 = vadd.s32 %v4916_v31, %v3448_v32  ;;  %v4918_v42 = vld [vmem:[#allocation15_spill] sm:$0xff]  ;;  %v4919_v35 = vld [vmem:[#allocation16_spill] sm:$0xff] }
 0x1a4   : > { %v4368_v37 = vadd.f32 %v3027_v51, %v4280_v26  ;;  %v2010_v15 = vadd.s32 %v4916_v31, %v3450_v33  ;;  %v2011_v39 = vadd.s32 %v4916_v31, %v3923_v52  ;;  %v2012_v23 = vadd.s32 %v4916_v31, %v4917_v50 }
 0x1a5   : > { %v2013_v56 = vadd.s32 %v4916_v31, %v4918_v42  ;;  %v2014_v61 = vadd.s32 %v4916_v31, %v4919_v35  ;;  %v2015_v55 = vshrl.u32 %v2007_v3, 16  ;;  %v2016_v1 = vshrl.u32 %v2008_v44, 16 }
 0x1a6   : > { %v2017_v29 = vshrl.u32 %v2009_v54, 16  ;;  %v2018_v26 = vshrl.u32 %v2010_v15, 16  ;;  %v2019_v47 = vshrl.u32 %v2011_v39, 16  ;;  %v2020_v57 = vshrl.u32 %v2012_v23, 16 }
 0x1a7   : > { %v2021_v16 = vshrl.u32 %v2013_v56, 16  ;;  %v2022_v28 = vshrl.u32 %v2014_v61, 16  ;;  %v2023_v10 = vxor.u32 %v2015_v55, %v2007_v3  ;;  %v2024_v7 = vxor.u32 %v2016_v1, %v2008_v44 }
 0x1a8   : > { %v2025_v53 = vxor.u32 %v2017_v29, %v2009_v54  ;;  %v2026_v12 = vxor.u32 %v2018_v26, %v2010_v15  ;;  %v2027_v59 = vxor.u32 %v2019_v47, %v2011_v39  ;;  %v2028_v4 = vxor.u32 %v2020_v57, %v2012_v23 }
 0x1a9   : > { %v2029_v25 = vxor.u32 %v2021_v16, %v2013_v56  ;;  %v2030_v11 = vxor.u32 %v2022_v28, %v2014_v61  ;;  %v2031_v36 = vmul.u32 2146121005, %v2023_v10  ;;  %v2032_v0 = vmul.u32 2146121005, %v2024_v7 }
 0x1aa   : > { %v4381_v48 = vadd.f32 %v3028_v45, %v4293_v40  ;;  %v4384_v31 = vadd.f32 %v3029_v63, %v4296_v49  ;;  %v2033_v51 = vmul.u32 2146121005, %v2025_v53  ;;  %v2034_v35 = vmul.u32 2146121005, %v2026_v12 }
 0x1ab   : > { %v2035_v42 = vmul.u32 2146121005, %v2027_v59  ;;  %v2036_v50 = vmul.u32 2146121005, %v2028_v4  ;;  %v2039_v3 = vshrl.u32 %v2031_v36, 15  ;;  %v2040_v44 = vshrl.u32 %v2032_v0, 15 }
 0x1ac   : > { %v2037_v54 = vmul.u32 2146121005, %v2029_v25  ;;  %v2038_v15 = vmul.u32 2146121005, %v2030_v11  ;;  %v2041_v39 = vshrl.u32 %v2033_v51, 15  ;;  %v2042_v23 = vshrl.u32 %v2034_v35, 15 }
 0x1ad   : > { %v2043_v56 = vshrl.u32 %v2035_v42, 15  ;;  %v2044_v61 = vshrl.u32 %v2036_v50, 15  ;;  %v2047_v55 = vxor.u32 %v2039_v3, %v2031_v36  ;;  %v2048_v1 = vxor.u32 %v2040_v44, %v2032_v0 }
 0x1ae   : > { %v2045_v29 = vshrl.u32 %v2037_v54, 15  ;;  %v2046_v40 = vshrl.u32 %v2038_v15, 15  ;;  %v2049_v45 = vxor.u32 %v2041_v39, %v2033_v51  ;;  %v2050_v26 = vxor.u32 %v2042_v23, %v2034_v35 }
 0x1af   : > { %v2051_v49 = vxor.u32 %v2043_v56, %v2035_v42  ;;  %v2052_v63 = vxor.u32 %v2044_v61, %v2036_v50  ;;  %v2055_v47 = vmul.u32 2221713035, %v2047_v55  ;;  %v2056_v57 = vmul.u32 2221713035, %v2048_v1 }
 0x1b0   : > { %v2053_v16 = vxor.u32 %v2045_v29, %v2037_v54  ;;  %v2054_v28 = vxor.u32 %v2046_v40, %v2038_v15  ;;  %v2057_v10 = vmul.u32 2221713035, %v2049_v45  ;;  %v2058_v7 = vmul.u32 2221713035, %v2050_v26 }
 0x1b1   : > { %v2059_v53 = vmul.u32 2221713035, %v2051_v49  ;;  %v2060_v12 = vmul.u32 2221713035, %v2052_v63  ;;  %v2063_v59 = vshrl.u32 %v2055_v47, 16  ;;  %v2064_v4 = vshrl.u32 %v2056_v57, 16 }
 0x1b2   : > { %v2061_v25 = vmul.u32 2221713035, %v2053_v16  ;;  %v2062_v11 = vmul.u32 2221713035, %v2054_v28  ;;  %v2065_v36 = vshrl.u32 %v2057_v10, 16  ;;  %v2066_v0 = vshrl.u32 %v2058_v7, 16 }
 0x1b3   : > { %v2067_v3 = vshrl.u32 %v2059_v53, 16  ;;  %v2068_v44 = vshrl.u32 %v2060_v12, 16  ;;  %v2071_v51 = vxor.u32 %v2063_v59, %v2055_v47  ;;  %v2072_v35 = vxor.u32 %v2064_v4, %v2056_v57 }
 0x1b4   : > { %v2069_v42 = vshrl.u32 %v2061_v25, 16  ;;  %v2070_v50 = vshrl.u32 %v2062_v11, 16  ;;  %v2073_v39 = vxor.u32 %v2065_v36, %v2057_v10  ;;  %v2074_v23 = vxor.u32 %v2066_v0, %v2058_v7 }
 0x1b5   : > { %v2075_v54 = vxor.u32 %v2067_v3, %v2059_v53  ;;  %v2076_v15 = vxor.u32 %v2068_v44, %v2060_v12  ;;  %v2079_v56 = vshrl.u32 %v2071_v51, 8  ;;  %v2080_v61 = vshrl.u32 %v2072_v35, 8 }
 0x1b6   : > { %v2077_v55 = vxor.u32 %v2069_v42, %v2061_v25  ;;  %v2078_v1 = vxor.u32 %v2070_v50, %v2062_v11  ;;  %v2081_v29 = vshrl.u32 %v2073_v39, 8  ;;  %v2082_v40 = vshrl.u32 %v2074_v23, 8 }
 0x1b7   : > { %v2083_v45 = vshrl.u32 %v2075_v54, 8  ;;  %v2084_v26 = vshrl.u32 %v2076_v15, 8  ;;  %v2087_v49 = vshrl.u32 %v2079_v56, 16  ;;  %v2088_v63 = vand.u32 65535, %v2079_v56 }
 0x1b8   : > { %v2085_v16 = vshrl.u32 %v2077_v55, 8  ;;  %v2086_v28 = vshrl.u32 %v2078_v1, 8  ;;  %v2093_v47 = vshrl.u32 %v2080_v61, 16  ;;  %v2094_v57 = vand.u32 65535, %v2080_v61 }
 0x1b9   : > { %v2089_v59 = vcvt.s32.f32 %v2087_v49  ;;  %v2091_v4 = vcvt.s32.f32 %v2088_v63  ;;  %v2099_v10 = vshrl.u32 %v2081_v29, 16  ;;  %v2100_v7 = vand.u32 65535, %v2081_v29 }
 0x1ba   : > { %v2095_v53 = vcvt.s32.f32 %v2093_v47  ;;  %v2097_v12 = vcvt.s32.f32 %v2094_v57  ;;  %v2105_v36 = vshrl.u32 %v2082_v40, 16  ;;  %v2106_v0 = vand.u32 65535, %v2082_v40 }
 0x1bb   : > { %v2090_v25 = vmul.f32 65536.0, %v2089_v59  ;;  %v2101_v11 = vcvt.s32.f32 %v2099_v10  ;;  %v2103_v3 = vcvt.s32.f32 %v2100_v7  ;;  %v2111_v44 = vshrl.u32 %v2083_v45, 16 }
 0x1bc   : > { %v2096_v51 = vmul.f32 65536.0, %v2095_v53  ;;  %v2107_v35 = vcvt.s32.f32 %v2105_v36  ;;  %v2109_v42 = vcvt.s32.f32 %v2106_v0  ;;  %v2112_v50 = vand.u32 65535, %v2083_v45 }
 0x1bd   : > { %v2092_v39 = vadd.f32 %v2091_v4, %v2090_v25  ;;  %v2102_v23 = vmul.f32 65536.0, %v2101_v11  ;;  %v2113_v54 = vcvt.s32.f32 %v2111_v44  ;;  %v2117_v15 = vshrl.u32 %v2084_v26, 16 }
 0x1be   : > { %v2098_v56 = vadd.f32 %v2097_v12, %v2096_v51  ;;  %v2108_v61 = vmul.f32 65536.0, %v2107_v35  ;;  %v2115_v55 = vcvt.s32.f32 %v2112_v50  ;;  %v2118_v1 = vand.u32 65535, %v2084_v26 }
 0x1bf   : > { %v2104_v29 = vadd.f32 %v2103_v3, %v2102_v23  ;;  %v2114_v49 = vmul.f32 65536.0, %v2113_v54  ;;  %v2119_v63 = vcvt.s32.f32 %v2117_v15  ;;  %v2123_v40 = vshrl.u32 %v2085_v16, 16 }
 0x1c0   : > { %v2110_v47 = vadd.f32 %v2109_v42, %v2108_v61  ;;  %v2121_v57 = vcvt.s32.f32 %v2118_v1  ;;  %v2124_v59 = vand.u32 65535, %v2085_v16  ;;  %v2129_v10 = vshrl.u32 %v2086_v28, 16 }
 0x1c1   : > { %v2116_v7 = vadd.f32 %v2115_v55, %v2114_v49  ;;  %v2120_v53 = vmul.f32 65536.0, %v2119_v63  ;;  %v2125_v36 = vcvt.s32.f32 %v2123_v40  ;;  %v2130_v45 = vand.u32 65535, %v2086_v28 }
 0x1c2   : > { %v2127_v4 = vcvt.s32.f32 %v2124_v59  ;;  %v2131_v0 = vcvt.s32.f32 %v2129_v10  ;;  %v2135_v25 = vadd.f32 0.5, %v2092_v39  ;;  %v2136_v11 = vadd.f32 0.5, %v2098_v56 }
 0x1c3   : > { %v2122_v12 = vadd.f32 %v2121_v57, %v2120_v53  ;;  %v2126_v44 = vmul.f32 65536.0, %v2125_v36  ;;  %v2133_v51 = vcvt.s32.f32 %v2130_v45  ;;  %v2137_v26 = vadd.f32 0.5, %v2104_v29 }
 0x1c4   : > { %v2132_v3 = vmul.f32 65536.0, %v2131_v0  ;;  %v2138_v35 = vadd.f32 0.5, %v2110_v47  ;;  %v2139_v50 = vadd.f32 0.5, %v2116_v7  ;;  %v2143_v23 = vmul.f32 5.9604645e-08, %v2135_v25 }
 0x1c5   : > { %v2128_v42 = vadd.f32 %v2127_v4, %v2126_v44  ;;  %v2140_v54 = vadd.f32 0.5, %v2122_v12  ;;  %v2144_v16 = vmul.f32 5.9604645e-08, %v2136_v11  ;;  %v2145_v15 = vmul.f32 5.9604645e-08, %v2137_v26 }
 0x1c6   : > { %v2134_v61 = vadd.f32 %v2133_v51, %v2132_v3  ;;  %v2146_v55 = vmul.f32 5.9604645e-08, %v2138_v35  ;;  %v2147_v28 = vmul.f32 5.9604645e-08, %v2139_v50  ;;  %v4387_v1 = vmul.f32 %v2143_v23, %v4299_v14  ;;  %v4920_v3 = vld [vmem:[#allocation14_spill] sm:$0xff]  ;;  %v4922_v23 = vld [vmem:[#allocation16_spill] sm:$0xff] }
 0x1c7   : > { %v2141_v39 = vadd.f32 0.5, %v2128_v42  ;;  %v2148_v56 = vmul.f32 5.9604645e-08, %v2140_v54  ;;  %v4390_v29 = vmul.f32 %v2144_v16, %v4302_v24  ;;  %v4393_v49 = vmul.f32 %v2145_v15, %v4305_v60 }
 0x1c8   : > { %v2142_v63 = vadd.f32 0.5, %v2134_v61  ;;  %v4396_v40 = vmul.f32 %v2146_v55, %v4308_v43  ;;  %v4399_v47 = vmul.f32 %v2147_v28, %v4311_v20  ;;  %vm2159_vm13 = vcmp.gt.f32.partialorder %v4387_v1, %v3958_v30 }
 0x1c9   : > { %v2149_v14 = vmul.f32 5.9604645e-08, %v2141_v39  ;;  %v4404_v57 = vmul.f32 %v2148_v56, %v4316_v18  ;;  %vm2160_vm6 = vcmp.gt.f32.partialorder %v4390_v29, %v3961_v38  ;;  %vm2161_vm7 = vcmp.gt.f32.partialorder %v4393_v49, %v3964_v8 }
 0x1ca   : > { %v2150_v24 = vmul.f32 5.9604645e-08, %v2142_v63  ;;  %vm2162_vm9 = vcmp.gt.f32.partialorder %v4396_v40, %v3971_v62  ;;  %vm2163_vm10 = vcmp.gt.f32.partialorder %v4399_v47, %v3977_v58  ;;  %v3030_v60 = vsel %vm2159_vm13, 1.0, %v4900_v13 }
 0x1cb   : > { %v4418_v43 = vmul.f32 %v2149_v14, %v4328_v9  ;;  %vm2164_vm12 = vcmp.gt.f32.partialorder %v4404_v57, %v3983_v27  ;;  %v3031_v20 = vsel %vm2160_vm6, 1.0, %v4900_v13  ;;  %v3032_v18 = vsel %vm2161_vm7, 1.0, %v4900_v13 }
 0x1cc   : > { %v4425_v59 = vmul.f32 %v2150_v24, %v4335_v17  ;;  %v3033_v10 = vsel %vm2162_vm9, 1.0, %v4900_v13  ;;  %v3034_v7 = vsel %vm2163_vm10, 1.0, %v4900_v13  ;;  %v2192_v53 = vstv %s2191_s10 }
 0x1cd   : > { %vm2165_vm14 = vcmp.gt.f32.partialorder %v4418_v43, %v3996_v21  ;;  %v3035_v9 = vsel %vm2164_vm12, 1.0, %v4900_v13  ;;  %v4433_v36 = vadd.f32 %v3030_v60, %v4345_v6  ;;  %v4435_v45 = vstv %s2377_s15 }
 0x1ce   : > { %vm2166_vm15 = vcmp.gt.f32.partialorder %v4425_v59, %v3999_v2  ;;  %v3036_v17 = vsel %vm2165_vm14, 1.0, %v4900_v13  ;;  %v4441_v4 = vadd.f32 %v3031_v20, %v4353_v34  ;;  %v4444_v0 = vadd.f32 %v3032_v18, %v4356_v41 }
 0x1cf   : > { %v3037_v25 = vsel %vm2166_vm15, 1.0, %v4900_v13  ;;  %v4448_v11 = vadd.f32 %v3033_v10, %v4360_v22  ;;  %v4451_v6 = vadd.f32 %v3034_v7, %v4363_v46  ;;  %v2193_v12 = vadd.s32 %v2192_v53, %v4912_v5  ;;  %v4921_v22 = vld [vmem:[#allocation15_spill] sm:$0xff] }
 0x1d0   : > { %v4455_v44 = vadd.f32 %v3035_v9, %v4368_v37  ;;  %v2194_v51 = vadd.s32 %v2192_v53, %v4913_v19  ;;  %v2195_v34 = vadd.s32 %v2192_v53, %v3448_v32  ;;  %v2196_v41 = vadd.s32 %v2192_v53, %v3450_v33 }
 0x1d1   : > { %v2197_v26 = vadd.s32 %v2192_v53, %v3923_v52  ;;  %v2198_v35 = vadd.s32 %v2192_v53, %v4920_v3  ;;  %v2199_v50 = vadd.s32 %v2192_v53, %v4921_v22  ;;  %v2200_v46 = vadd.s32 %v2192_v53, %v4922_v23 }
 0x1d2   : > { %v2201_v42 = vshrl.u32 %v2193_v12, 16  ;;  %v2202_v54 = vshrl.u32 %v2194_v51, 16  ;;  %v2203_v16 = vshrl.u32 %v2195_v34, 16  ;;  %v2204_v15 = vshrl.u32 %v2196_v41, 16 }
 0x1d3   : > { %v2205_v37 = vshrl.u32 %v2197_v26, 16  ;;  %v2206_v61 = vshrl.u32 %v2198_v35, 16  ;;  %v2207_v55 = vshrl.u32 %v2199_v50, 16  ;;  %v2208_v28 = vshrl.u32 %v2200_v46, 16 }
 0x1d4   : > { %v2209_v39 = vxor.u32 %v2201_v42, %v2193_v12  ;;  %v2210_v56 = vxor.u32 %v2202_v54, %v2194_v51  ;;  %v2211_v63 = vxor.u32 %v2203_v16, %v2195_v34  ;;  %v2212_v14 = vxor.u32 %v2204_v15, %v2196_v41 }
 0x1d5   : > { %v2213_v24 = vxor.u32 %v2205_v37, %v2197_v26  ;;  %v2214_v60 = vxor.u32 %v2206_v61, %v2198_v35  ;;  %v2215_v20 = vxor.u32 %v2207_v55, %v2199_v50  ;;  %v2216_v18 = vxor.u32 %v2208_v28, %v2200_v46 }
 0x1d6   : > { %v4465_v10 = vadd.f32 %v3036_v17, %v4381_v48  ;;  %v4468_v7 = vadd.f32 %v3037_v25, %v4384_v31  ;;  %v2217_v53 = vmul.u32 2146121005, %v2209_v39  ;;  %v2218_v9 = vmul.u32 2146121005, %v2210_v56 }
 0x1d7   : > { %v2219_v23 = vmul.u32 2146121005, %v2211_v63  ;;  %v2220_v22 = vmul.u32 2146121005, %v2212_v14  ;;  %v4472_v12 = vadd.s32 %v4435_v45, %v4912_v5  ;;  %v4476_v51 = vadd.s32 %v4435_v45, %v4913_v19 }
 0x1d8   : > { %4923 = vst [vmem:[#allocation24_spill] sm:$0xff] %v4465_v10  ;;  %4924 = vst [vmem:[#allocation25_spill] sm:$0xff] %v4468_v7  ;;  %v2221_v34 = vmul.u32 2146121005, %v2213_v24  ;;  %v2222_v41 = vmul.u32 2146121005, %v2214_v60 }
 0x1d9   : > { %v2225_v26 = vshrl.u32 %v2217_v53, 15  ;;  %v2226_v48 = vshrl.u32 %v2218_v9, 15  ;;  %v2223_v17 = vmul.u32 2146121005, %v2215_v20  ;;  %v2224_v35 = vmul.u32 2146121005, %v2216_v18 }
 0x1da   : > { %v2227_v31 = vshrl.u32 %v2219_v23, 15  ;;  %v2228_v25 = vshrl.u32 %v2220_v22, 15  ;;  %v2229_v50 = vshrl.u32 %v2221_v34, 15  ;;  %v2230_v46 = vshrl.u32 %v2222_v41, 15 }
 0x1db   : > { %v2233_v42 = vxor.u32 %v2225_v26, %v2217_v53  ;;  %v2234_v54 = vxor.u32 %v2226_v48, %v2218_v9  ;;  %v2231_v16 = vshrl.u32 %v2223_v17, 15  ;;  %v2232_v15 = vshrl.u32 %v2224_v35, 15 }
 0x1dc   : > { %v2235_v37 = vxor.u32 %v2227_v31, %v2219_v23  ;;  %v2236_v61 = vxor.u32 %v2228_v25, %v2220_v22  ;;  %v2237_v55 = vxor.u32 %v2229_v50, %v2221_v34  ;;  %v2238_v28 = vxor.u32 %v2230_v46, %v2222_v41 }
 0x1dd   : > { %v2241_v39 = vmul.u32 2221713035, %v2233_v42  ;;  %v2242_v56 = vmul.u32 2221713035, %v2234_v54  ;;  %v2239_v63 = vxor.u32 %v2231_v16, %v2223_v17  ;;  %v2240_v14 = vxor.u32 %v2232_v15, %v2224_v35 }
 0x1de   : > { %v2243_v24 = vmul.u32 2221713035, %v2235_v37  ;;  %v2244_v60 = vmul.u32 2221713035, %v2236_v61 }
 0x1df   : > { %v2245_v20 = vmul.u32 2221713035, %v2237_v55  ;;  %v2246_v18 = vmul.u32 2221713035, %v2238_v28  ;;  %v2249_v19 = vshrl.u32 %v2241_v39, 16  ;;  %v2250_v5 = vshrl.u32 %v2242_v56, 16 }
 0x1e0   : > { %v2247_v7 = vmul.u32 2221713035, %v2239_v63  ;;  %v2248_v10 = vmul.u32 2221713035, %v2240_v14  ;;  %v2251_v53 = vshrl.u32 %v2243_v24, 16  ;;  %v2252_v9 = vshrl.u32 %v2244_v60, 16 }
 0x1e1   : > { %v2253_v26 = vshrl.u32 %v2245_v20, 16  ;;  %v2254_v48 = vshrl.u32 %v2246_v18, 16  ;;  %v2257_v23 = vxor.u32 %v2249_v19, %v2241_v39  ;;  %v2258_v22 = vxor.u32 %v2250_v5, %v2242_v56 }
 0x1e2   : > { %v2255_v34 = vshrl.u32 %v2247_v7, 16  ;;  %v2256_v41 = vshrl.u32 %v2248_v10, 16  ;;  %v2259_v31 = vxor.u32 %v2251_v53, %v2243_v24  ;;  %v2260_v25 = vxor.u32 %v2252_v9, %v2244_v60 }
 0x1e3   : > { %v2261_v17 = vxor.u32 %v2253_v26, %v2245_v20  ;;  %v2262_v35 = vxor.u32 %v2254_v48, %v2246_v18  ;;  %v2265_v50 = vshrl.u32 %v2257_v23, 8  ;;  %v2266_v46 = vshrl.u32 %v2258_v22, 8 }
 0x1e4   : > { %v2263_v42 = vxor.u32 %v2255_v34, %v2247_v7  ;;  %v2264_v54 = vxor.u32 %v2256_v41, %v2248_v10  ;;  %v2267_v16 = vshrl.u32 %v2259_v31, 8  ;;  %v2268_v15 = vshrl.u32 %v2260_v25, 8 }
 0x1e5   : > { %v2269_v37 = vshrl.u32 %v2261_v17, 8  ;;  %v2270_v61 = vshrl.u32 %v2262_v35, 8  ;;  %v2273_v55 = vshrl.u32 %v2265_v50, 16  ;;  %v2274_v28 = vand.u32 65535, %v2265_v50 }
 0x1e6   : > { %v2271_v63 = vshrl.u32 %v2263_v42, 8  ;;  %v2272_v14 = vshrl.u32 %v2264_v54, 8  ;;  %v2279_v19 = vshrl.u32 %v2266_v46, 16  ;;  %v2280_v5 = vand.u32 65535, %v2266_v46 }
 0x1e7   : > { %v2275_v39 = vcvt.s32.f32 %v2273_v55  ;;  %v2277_v56 = vcvt.s32.f32 %v2274_v28  ;;  %v2285_v24 = vshrl.u32 %v2267_v16, 16  ;;  %v2286_v60 = vand.u32 65535, %v2267_v16 }
 0x1e8   : > { %v2281_v20 = vcvt.s32.f32 %v2279_v19  ;;  %v2283_v18 = vcvt.s32.f32 %v2280_v5  ;;  %v2291_v53 = vshrl.u32 %v2268_v15, 16  ;;  %v2292_v9 = vand.u32 65535, %v2268_v15 }
 0x1e9   : > { %v2276_v7 = vmul.f32 65536.0, %v2275_v39  ;;  %v2287_v10 = vcvt.s32.f32 %v2285_v24  ;;  %v2289_v26 = vcvt.s32.f32 %v2286_v60  ;;  %v2297_v48 = vshrl.u32 %v2269_v37, 16 }
 0x1ea   : > { %v2282_v23 = vmul.f32 65536.0, %v2281_v20  ;;  %v2293_v22 = vcvt.s32.f32 %v2291_v53  ;;  %v2295_v34 = vcvt.s32.f32 %v2292_v9  ;;  %v2298_v41 = vand.u32 65535, %v2269_v37 }
 0x1eb   : > { %v2278_v31 = vadd.f32 %v2277_v56, %v2276_v7  ;;  %v2288_v25 = vmul.f32 65536.0, %v2287_v10  ;;  %v2299_v17 = vcvt.s32.f32 %v2297_v48  ;;  %v2303_v35 = vshrl.u32 %v2270_v61, 16 }
 0x1ec   : > { %v2284_v50 = vadd.f32 %v2283_v18, %v2282_v23  ;;  %v2294_v46 = vmul.f32 65536.0, %v2293_v22  ;;  %v2301_v42 = vcvt.s32.f32 %v2298_v41  ;;  %v2304_v54 = vand.u32 65535, %v2270_v61 }
 0x1ed   : > { %v2290_v16 = vadd.f32 %v2289_v26, %v2288_v25  ;;  %v2300_v55 = vmul.f32 65536.0, %v2299_v17  ;;  %v2305_v28 = vcvt.s32.f32 %v2303_v35  ;;  %v2309_v15 = vshrl.u32 %v2271_v63, 16 }
 0x1ee   : > { %v2296_v19 = vadd.f32 %v2295_v34, %v2294_v46  ;;  %v2307_v5 = vcvt.s32.f32 %v2304_v54  ;;  %v2310_v39 = vand.u32 65535, %v2271_v63  ;;  %v2315_v24 = vshrl.u32 %v2272_v14, 16 }
 0x1ef   : > { %v2302_v60 = vadd.f32 %v2301_v42, %v2300_v55  ;;  %v2306_v20 = vmul.f32 65536.0, %v2305_v28  ;;  %v2311_v53 = vcvt.s32.f32 %v2309_v15  ;;  %v2316_v37 = vand.u32 65535, %v2272_v14 }
 0x1f0   : > { %v2313_v56 = vcvt.s32.f32 %v2310_v39  ;;  %v2317_v9 = vcvt.s32.f32 %v2315_v24  ;;  %v2321_v7 = vadd.f32 0.5, %v2278_v31  ;;  %v2322_v10 = vadd.f32 0.5, %v2284_v50 }
 0x1f1   : > { %v2308_v18 = vadd.f32 %v2307_v5, %v2306_v20  ;;  %v2312_v48 = vmul.f32 65536.0, %v2311_v53  ;;  %v2319_v23 = vcvt.s32.f32 %v2316_v37  ;;  %v2323_v61 = vadd.f32 0.5, %v2290_v16 }
 0x1f2   : > { %v2318_v26 = vmul.f32 65536.0, %v2317_v9  ;;  %v2324_v22 = vadd.f32 0.5, %v2296_v19  ;;  %v2325_v41 = vadd.f32 0.5, %v2302_v60  ;;  %v2329_v25 = vmul.f32 5.9604645e-08, %v2321_v7 }
 0x1f3   : > { %v2314_v34 = vadd.f32 %v2313_v56, %v2312_v48  ;;  %v2326_v17 = vadd.f32 0.5, %v2308_v18  ;;  %v2330_v63 = vmul.f32 5.9604645e-08, %v2322_v10  ;;  %v2331_v35 = vmul.f32 5.9604645e-08, %v2323_v61  ;;  %v4926_v61 = vld [vmem:[#allocation16_spill] sm:$0xff] }
 0x1f4   : > { %v2320_v46 = vadd.f32 %v2319_v23, %v2318_v26  ;;  %v2332_v42 = vmul.f32 5.9604645e-08, %v2324_v22  ;;  %v2333_v54 = vmul.f32 5.9604645e-08, %v2325_v41  ;;  %v4479_v14 = vmul.f32 %v2329_v25, %v4387_v1 }
 0x1f5   : > { %v2327_v31 = vadd.f32 0.5, %v2314_v34  ;;  %v2334_v50 = vmul.f32 5.9604645e-08, %v2326_v17  ;;  %v4482_v55 = vmul.f32 %v2330_v63, %v4390_v29  ;;  %v4485_v16 = vmul.f32 %v2331_v35, %v4393_v49 }
 0x1f6   : > { %v2328_v28 = vadd.f32 0.5, %v2320_v46  ;;  %v4488_v15 = vmul.f32 %v2332_v42, %v4396_v40  ;;  %v4491_v19 = vmul.f32 %v2333_v54, %v4399_v47  ;;  %vm2345_vm1 = vcmp.gt.f32.partialorder %v4479_v14, %v3958_v30 }
 0x1f7   : > { %v2335_v1 = vmul.f32 5.9604645e-08, %v2327_v31  ;;  %v4496_v5 = vmul.f32 %v2334_v50, %v4404_v57  ;;  %vm2346_vm0 = vcmp.gt.f32.partialorder %v4482_v55, %v3961_v38  ;;  %vm2347_vm2 = vcmp.gt.f32.partialorder %v4485_v16, %v3964_v8 }
 0x1f8   : > { %v2336_v29 = vmul.f32 5.9604645e-08, %v2328_v28  ;;  %vm2348_vm3 = vcmp.gt.f32.partialorder %v4488_v15, %v3971_v62  ;;  %vm2349_vm4 = vcmp.gt.f32.partialorder %v4491_v19, %v3977_v58  ;;  %v3038_v49 = vsel %vm2345_vm1, 1.0, %v4900_v13  ;;  %v4927_v28 = vld [vmem:[#allocation24_spill] sm:$0xff] }
 0x1f9   : > { %v4508_v40 = vmul.f32 %v2335_v1, %v4418_v43  ;;  %vm2350_vm5 = vcmp.gt.f32.partialorder %v4496_v5, %v3983_v27  ;;  %v3039_v47 = vsel %vm2346_vm0, 1.0, %v4900_v13  ;;  %v3040_v57 = vsel %vm2347_vm2, 1.0, %v4900_v13 }
 0x1fa   : > { %v4515_v39 = vmul.f32 %v2336_v29, %v4425_v59  ;;  %v3041_v24 = vsel %vm2348_vm3, 1.0, %v4900_v13  ;;  %v3042_v60 = vsel %vm2349_vm4, 1.0, %v4900_v13  ;;  %v2381_v20 = vadd.s32 %v4435_v45, %v3448_v32  ;;  %v4929_v29 = vld [vmem:[#allocation25_spill] sm:$0xff] }
 0x1fb   : > { %vm2351_vm8 = vcmp.gt.f32.partialorder %v4508_v40, %v3996_v21  ;;  %v3043_v43 = vsel %vm2350_vm5, 1.0, %v4900_v13  ;;  %v4525_v53 = vadd.f32 %v3038_v49, %v4433_v36  ;;  %v2382_v37 = vadd.s32 %v4435_v45, %v3450_v33 }
 0x1fc   : > { %vm2352_vm11 = vcmp.gt.f32.partialorder %v4515_v39, %v3999_v2  ;;  %v3044_v59 = vsel %vm2351_vm8, 1.0, %v4900_v13  ;;  %v4533_v56 = vadd.f32 %v3039_v47, %v4441_v4  ;;  %v4536_v9 = vadd.f32 %v3040_v57, %v4444_v0  ;;  %v4925_v0 = vld [vmem:[#allocation15_spill] sm:$0xff] }
 0x1fd   : > { %v3045_v7 = vsel %vm2352_vm11, 1.0, %v4900_v13  ;;  %v4540_v10 = vadd.f32 %v3041_v24, %v4448_v11  ;;  %v4543_v36 = vadd.f32 %v3042_v60, %v4451_v6  ;;  %v2383_v18 = vadd.s32 %v4435_v45, %v3923_v52 }
 0x1fe   : > { %v4548_v48 = vadd.f32 %v3043_v43, %v4455_v44  ;;  %v2384_v4 = vadd.s32 %v4435_v45, %v4920_v3  ;;  %v2385_v23 = vadd.s32 %v4435_v45, %v4925_v0  ;;  %v2386_v11 = vadd.s32 %v4435_v45, %v4926_v61 }
 0x1ff   : > { %v2387_v6 = vshrl.u32 %v4472_v12, 16  ;;  %v2388_v26 = vshrl.u32 %v4476_v51, 16  ;;  %v2389_v22 = vshrl.u32 %v2381_v20, 16  ;;  %v2390_v41 = vshrl.u32 %v2382_v37, 16 }
 0x200   : > { %v2391_v25 = vshrl.u32 %v2383_v18, 16  ;;  %v2392_v44 = vshrl.u32 %v2384_v4, 16  ;;  %v2393_v34 = vshrl.u32 %v2385_v23, 16  ;;  %v2394_v17 = vshrl.u32 %v2386_v11, 16 }
 0x201   : > { %v2395_v63 = vxor.u32 %v2387_v6, %v4472_v12  ;;  %v2396_v35 = vxor.u32 %v2388_v26, %v4476_v51  ;;  %v2397_v46 = vxor.u32 %v2389_v22, %v2381_v20  ;;  %v2398_v42 = vxor.u32 %v2390_v41, %v2382_v37 }
 0x202   : > { %v2399_v54 = vxor.u32 %v2391_v25, %v2383_v18  ;;  %v2400_v45 = vxor.u32 %v2392_v44, %v2384_v4  ;;  %v2401_v31 = vxor.u32 %v2393_v34, %v2385_v23  ;;  %v2402_v50 = vxor.u32 %v2394_v17, %v2386_v11 }
 0x203   : > { %v4563_v1 = vadd.f32 %v3044_v59, %v4927_v28  ;;  %v4566_v49 = vadd.f32 %v3045_v7, %v4929_v29  ;;  %v2403_v47 = vmul.u32 2146121005, %v2395_v63  ;;  %v2404_v57 = vmul.u32 2146121005, %v2396_v35 }
 0x204   : > { %v2405_v24 = vmul.u32 2146121005, %v2397_v46  ;;  %v2406_v12 = vmul.u32 2146121005, %v2398_v42  ;;  %v4568_v60 = vstv %s2563_s17  ;;  %v4570_v51 = vstv %s2757_s18 }
 0x205   : > { %4928 = vst [vmem:[#allocation26_spill] sm:$0xff] %v4563_v1  ;;  %4930 = vst [vmem:[#allocation23_spill] sm:$0xff] %v4566_v49  ;;  %v2407_v20 = vmul.u32 2146121005, %v2399_v54  ;;  %v2408_v43 = vmul.u32 2146121005, %v2400_v45 }
 0x206   : > { %4931 = vst [vmem:[#allocation24_spill] sm:$0xff] %v4570_v51  ;;  %v2411_v37 = vshrl.u32 %v2403_v47, 15  ;;  %v2412_v18 = vshrl.u32 %v2404_v57, 15  ;;  %v2409_v4 = vmul.u32 2146121005, %v2401_v31  ;;  %v2413_v11 = vshrl.u32 %v2405_v24, 15 }
 0x207   : > { %v2410_v23 = vmul.u32 2146121005, %v2402_v50  ;;  %v2414_v59 = vshrl.u32 %v2406_v12, 15  ;;  %v2415_v6 = vshrl.u32 %v2407_v20, 15  ;;  %v2416_v26 = vshrl.u32 %v2408_v43, 15 }
 0x208   : > { %v2419_v7 = vxor.u32 %v2411_v37, %v2403_v47  ;;  %v2420_v22 = vxor.u32 %v2412_v18, %v2404_v57  ;;  %v2417_v41 = vshrl.u32 %v2409_v4, 15  ;;  %v2421_v44 = vxor.u32 %v2413_v11, %v2405_v24 }
 0x209   : > { %v2418_v25 = vshrl.u32 %v2410_v23, 15  ;;  %v2422_v34 = vxor.u32 %v2414_v59, %v2406_v12  ;;  %v2423_v17 = vxor.u32 %v2415_v6, %v2407_v20  ;;  %v2424_v63 = vxor.u32 %v2416_v26, %v2408_v43 }
 0x20a   : > { %v2427_v35 = vmul.u32 2221713035, %v2419_v7  ;;  %v2428_v46 = vmul.u32 2221713035, %v2420_v22  ;;  %v2425_v42 = vxor.u32 %v2417_v41, %v2409_v4 }
 0x20b   : > { %v2426_v54 = vxor.u32 %v2418_v25, %v2410_v23  ;;  %v2429_v45 = vmul.u32 2221713035, %v2421_v44  ;;  %v2430_v28 = vmul.u32 2221713035, %v2422_v34 }
 0x20c   : > { %v2431_v31 = vmul.u32 2221713035, %v2423_v17  ;;  %v2432_v50 = vmul.u32 2221713035, %v2424_v63  ;;  %v2435_v29 = vshrl.u32 %v2427_v35, 16  ;;  %v2436_v51 = vshrl.u32 %v2428_v46, 16 }
 0x20d   : > { %v2433_v49 = vmul.u32 2221713035, %v2425_v42  ;;  %v2434_v1 = vmul.u32 2221713035, %v2426_v54  ;;  %v2437_v47 = vshrl.u32 %v2429_v45, 16  ;;  %v2438_v57 = vshrl.u32 %v2430_v28, 16 }
 0x20e   : > { %v2439_v37 = vshrl.u32 %v2431_v31, 16  ;;  %v2440_v18 = vshrl.u32 %v2432_v50, 16  ;;  %v2443_v24 = vxor.u32 %v2435_v29, %v2427_v35  ;;  %v2444_v12 = vxor.u32 %v2436_v51, %v2428_v46 }
 0x20f   : > { %v2441_v20 = vshrl.u32 %v2433_v49, 16  ;;  %v2442_v43 = vshrl.u32 %v2434_v1, 16  ;;  %v2445_v11 = vxor.u32 %v2437_v47, %v2429_v45  ;;  %v2446_v59 = vxor.u32 %v2438_v57, %v2430_v28 }
 0x210   : > { %v2447_v4 = vxor.u32 %v2439_v37, %v2431_v31  ;;  %v2448_v23 = vxor.u32 %v2440_v18, %v2432_v50  ;;  %v2451_v6 = vshrl.u32 %v2443_v24, 8  ;;  %v2452_v26 = vshrl.u32 %v2444_v12, 8 }
 0x211   : > { %v2449_v7 = vxor.u32 %v2441_v20, %v2433_v49  ;;  %v2450_v22 = vxor.u32 %v2442_v43, %v2434_v1  ;;  %v2453_v41 = vshrl.u32 %v2445_v11, 8  ;;  %v2454_v25 = vshrl.u32 %v2446_v59, 8 }
 0x212   : > { %v2455_v44 = vshrl.u32 %v2447_v4, 8  ;;  %v2456_v34 = vshrl.u32 %v2448_v23, 8  ;;  %v2459_v17 = vshrl.u32 %v2451_v6, 16  ;;  %v2460_v63 = vand.u32 65535, %v2451_v6 }
 0x213   : > { %v2457_v42 = vshrl.u32 %v2449_v7, 8  ;;  %v2458_v54 = vshrl.u32 %v2450_v22, 8  ;;  %v2465_v35 = vshrl.u32 %v2452_v26, 16  ;;  %v2466_v51 = vand.u32 65535, %v2452_v26 }
 0x214   : > { %v2461_v46 = vcvt.s32.f32 %v2459_v17  ;;  %v2463_v29 = vcvt.s32.f32 %v2460_v63  ;;  %v2471_v45 = vshrl.u32 %v2453_v41, 16  ;;  %v2472_v28 = vand.u32 65535, %v2453_v41 }
 0x215   : > { %v2467_v31 = vcvt.s32.f32 %v2465_v35  ;;  %v2469_v50 = vcvt.s32.f32 %v2466_v51  ;;  %v2477_v47 = vshrl.u32 %v2454_v25, 16  ;;  %v2478_v57 = vand.u32 65535, %v2454_v25 }
 0x216   : > { %v2462_v49 = vmul.f32 65536.0, %v2461_v46  ;;  %v2473_v1 = vcvt.s32.f32 %v2471_v45  ;;  %v2475_v37 = vcvt.s32.f32 %v2472_v28  ;;  %v2483_v18 = vshrl.u32 %v2455_v44, 16 }
 0x217   : > { %v2468_v24 = vmul.f32 65536.0, %v2467_v31  ;;  %v2479_v12 = vcvt.s32.f32 %v2477_v47  ;;  %v2481_v20 = vcvt.s32.f32 %v2478_v57  ;;  %v2484_v43 = vand.u32 65535, %v2455_v44 }
 0x218   : > { %v2464_v11 = vadd.f32 %v2463_v29, %v2462_v49  ;;  %v2474_v59 = vmul.f32 65536.0, %v2473_v1  ;;  %v2485_v4 = vcvt.s32.f32 %v2483_v18  ;;  %v2489_v23 = vshrl.u32 %v2456_v34, 16 }
 0x219   : > { %v2470_v6 = vadd.f32 %v2469_v50, %v2468_v24  ;;  %v2480_v26 = vmul.f32 65536.0, %v2479_v12  ;;  %v2487_v7 = vcvt.s32.f32 %v2484_v43  ;;  %v2490_v22 = vand.u32 65535, %v2456_v34 }
 0x21a   : > { %v2476_v41 = vadd.f32 %v2475_v37, %v2474_v59  ;;  %v2486_v17 = vmul.f32 65536.0, %v2485_v4  ;;  %v2491_v63 = vcvt.s32.f32 %v2489_v23  ;;  %v2495_v25 = vshrl.u32 %v2457_v42, 16 }
 0x21b   : > { %v2482_v35 = vadd.f32 %v2481_v20, %v2480_v26  ;;  %v2493_v51 = vcvt.s32.f32 %v2490_v22  ;;  %v2496_v46 = vand.u32 65535, %v2457_v42  ;;  %v2501_v45 = vshrl.u32 %v2458_v54, 16 }
 0x21c   : > { %v2488_v28 = vadd.f32 %v2487_v7, %v2486_v17  ;;  %v2492_v31 = vmul.f32 65536.0, %v2491_v63  ;;  %v2497_v47 = vcvt.s32.f32 %v2495_v25  ;;  %v2502_v44 = vand.u32 65535, %v2458_v54 }
 0x21d   : > { %v2499_v29 = vcvt.s32.f32 %v2496_v46  ;;  %v2503_v57 = vcvt.s32.f32 %v2501_v45  ;;  %v2507_v49 = vadd.f32 0.5, %v2464_v11  ;;  %v2508_v1 = vadd.f32 0.5, %v2470_v6 }
 0x21e   : > { %v2494_v50 = vadd.f32 %v2493_v51, %v2492_v31  ;;  %v2498_v18 = vmul.f32 65536.0, %v2497_v47  ;;  %v2505_v24 = vcvt.s32.f32 %v2502_v44  ;;  %v2509_v34 = vadd.f32 0.5, %v2476_v41  ;;  %v4932_v31 = vld [vmem:[#allocation10_spill] sm:$0xff] }
 0x21f   : > { %v2504_v37 = vmul.f32 65536.0, %v2503_v57  ;;  %v2510_v12 = vadd.f32 0.5, %v2482_v35  ;;  %v2511_v43 = vadd.f32 0.5, %v2488_v28  ;;  %v2515_v59 = vmul.f32 5.9604645e-08, %v2507_v49 }
 0x220   : > { %v2500_v20 = vadd.f32 %v2499_v29, %v2498_v18  ;;  %v2512_v4 = vadd.f32 0.5, %v2494_v50  ;;  %v2516_v42 = vmul.f32 5.9604645e-08, %v2508_v1  ;;  %v2517_v23 = vmul.f32 5.9604645e-08, %v2509_v34  ;;  %v4933_v29 = vld [vmem:[#allocation11_spill] sm:$0xff] }
 0x221   : > { %v2506_v26 = vadd.f32 %v2505_v24, %v2504_v37  ;;  %v2518_v7 = vmul.f32 5.9604645e-08, %v2510_v12  ;;  %v2519_v22 = vmul.f32 5.9604645e-08, %v2511_v43  ;;  %v4573_v54 = vmul.f32 %v2515_v59, %v4479_v14 }
 0x222   : > { %v2513_v11 = vadd.f32 0.5, %v2500_v20  ;;  %v2520_v6 = vmul.f32 5.9604645e-08, %v2512_v4  ;;  %v4576_v17 = vmul.f32 %v2516_v42, %v4482_v55  ;;  %v4579_v41 = vmul.f32 %v2517_v23, %v4485_v16 }
 0x223   : > { %v2514_v63 = vadd.f32 0.5, %v2506_v26  ;;  %v4582_v25 = vmul.f32 %v2518_v7, %v4488_v15  ;;  %v4585_v35 = vmul.f32 %v2519_v22, %v4491_v19  ;;  %vm2531_vm13 = vcmp.gt.f32.partialorder %v4573_v54, %v3958_v30 }
 0x224   : > { %v2521_v14 = vmul.f32 5.9604645e-08, %v2513_v11  ;;  %v4590_v51 = vmul.f32 %v2520_v6, %v4496_v5  ;;  %vm2532_vm6 = vcmp.gt.f32.partialorder %v4576_v17, %v3961_v38  ;;  %vm2533_vm7 = vcmp.gt.f32.partialorder %v4579_v41, %v3964_v8 }
 0x225   : > { %v2522_v55 = vmul.f32 5.9604645e-08, %v2514_v63  ;;  %vm2534_vm9 = vcmp.gt.f32.partialorder %v4582_v25, %v3971_v62  ;;  %vm2535_vm10 = vcmp.gt.f32.partialorder %v4585_v35, %v3977_v58  ;;  %v3046_v16 = vsel %vm2531_vm13, 1.0, %v4900_v13 }
 0x226   : > { %v4602_v15 = vmul.f32 %v2521_v14, %v4508_v40  ;;  %vm2536_vm12 = vcmp.gt.f32.partialorder %v4590_v51, %v3983_v27  ;;  %v3047_v19 = vsel %vm2532_vm6, 1.0, %v4900_v13  ;;  %v3048_v5 = vsel %vm2533_vm7, 1.0, %v4900_v13 }
 0x227   : > { %v4609_v46 = vmul.f32 %v2522_v55, %v4515_v39  ;;  %v3049_v45 = vsel %vm2534_vm9, 1.0, %v4900_v13  ;;  %v3050_v28 = vsel %vm2535_vm10, 1.0, %v4900_v13  ;;  %v2565_v47 = vadd.s32 %v4568_v60, %v4932_v31 }
 0x228   : > { %vm2537_vm14 = vcmp.gt.f32.partialorder %v4602_v15, %v3996_v21  ;;  %v3051_v40 = vsel %vm2536_vm12, 1.0, %v4900_v13  ;;  %v4619_v44 = vadd.f32 %v3046_v16, %v4525_v53  ;;  %v2566_v57 = vadd.s32 %v4568_v60, %v4933_v29 }
 0x229   : > { %vm2538_vm15 = vcmp.gt.f32.partialorder %v4609_v46, %v3999_v2  ;;  %v3052_v39 = vsel %vm2537_vm14, 1.0, %v4900_v13  ;;  %v4627_v49 = vadd.f32 %v3047_v19, %v4533_v56  ;;  %v4630_v1 = vadd.f32 %v3048_v5, %v4536_v9  ;;  %v4934_v5 = vld [vmem:[#allocation26_spill] sm:$0xff] }
 0x22a   : > { %v3053_v50 = vsel %vm2538_vm15, 1.0, %v4900_v13  ;;  %v4634_v18 = vadd.f32 %v3049_v45, %v4540_v10  ;;  %v4637_v53 = vadd.f32 %v3050_v28, %v4543_v36  ;;  %v2567_v24 = vadd.s32 %v4568_v60, %v3448_v32  ;;  %v4935_v45 = vld [vmem:[#allocation23_spill] sm:$0xff] }
 0x22b   : > { %v4642_v34 = vadd.f32 %v3051_v40, %v4548_v48  ;;  %v2568_v56 = vadd.s32 %v4568_v60, %v3450_v33  ;;  %v2569_v9 = vadd.s32 %v4568_v60, %v3923_v52  ;;  %v2570_v37 = vadd.s32 %v4568_v60, %v4920_v3 }
 0x22c   : > { %v2571_v10 = vadd.s32 %v4568_v60, %v4925_v0  ;;  %v2572_v36 = vadd.s32 %v4568_v60, %v4926_v61  ;;  %v2573_v12 = vshrl.u32 %v2565_v47, 16  ;;  %v2574_v43 = vshrl.u32 %v2566_v57, 16 }
 0x22d   : > { %v2575_v59 = vshrl.u32 %v2567_v24, 16  ;;  %v2576_v48 = vshrl.u32 %v2568_v56, 16  ;;  %v2577_v20 = vshrl.u32 %v2569_v9, 16  ;;  %v2578_v4 = vshrl.u32 %v2570_v37, 16 }
 0x22e   : > { %v2579_v42 = vshrl.u32 %v2571_v10, 16  ;;  %v2580_v23 = vshrl.u32 %v2572_v36, 16  ;;  %v2581_v26 = vxor.u32 %v2573_v12, %v2565_v47  ;;  %v2582_v7 = vxor.u32 %v2574_v43, %v2566_v57 }
 0x22f   : > { %v2583_v22 = vxor.u32 %v2575_v59, %v2567_v24  ;;  %v2584_v11 = vxor.u32 %v2576_v48, %v2568_v56  ;;  %v2585_v6 = vxor.u32 %v2577_v20, %v2569_v9  ;;  %v2586_v63 = vxor.u32 %v2578_v4, %v2570_v37 }
 0x230   : > { %v2587_v14 = vxor.u32 %v2579_v42, %v2571_v10  ;;  %v2588_v55 = vxor.u32 %v2580_v23, %v2572_v36  ;;  %v2589_v16 = vmul.u32 2146121005, %v2581_v26  ;;  %v2590_v19 = vmul.u32 2146121005, %v2582_v7 }
 0x231   : > { %v4655_v60 = vadd.f32 %v3052_v39, %v4934_v5  ;;  %v4658_v28 = vadd.f32 %v3053_v50, %v4935_v45  ;;  %v2591_v40 = vmul.u32 2146121005, %v2583_v22  ;;  %v2592_v61 = vmul.u32 2146121005, %v2584_v11 }
 0x232   : > { %v2593_v0 = vmul.u32 2146121005, %v2585_v6  ;;  %v2594_v3 = vmul.u32 2146121005, %v2586_v63  ;;  %v2597_v47 = vshrl.u32 %v2589_v16, 15  ;;  %v2598_v57 = vshrl.u32 %v2590_v19, 15 }
 0x233   : > { %v2595_v24 = vmul.u32 2146121005, %v2587_v14  ;;  %v2596_v56 = vmul.u32 2146121005, %v2588_v55  ;;  %v2599_v9 = vshrl.u32 %v2591_v40, 15  ;;  %v2600_v37 = vshrl.u32 %v2592_v61, 15 }
 0x234   : > { %v2601_v10 = vshrl.u32 %v2593_v0, 15  ;;  %v2602_v36 = vshrl.u32 %v2594_v3, 15  ;;  %v2605_v12 = vxor.u32 %v2597_v47, %v2589_v16  ;;  %v2606_v43 = vxor.u32 %v2598_v57, %v2590_v19 }
 0x235   : > { %v2603_v59 = vshrl.u32 %v2595_v24, 15  ;;  %v2604_v39 = vshrl.u32 %v2596_v56, 15  ;;  %v2607_v48 = vxor.u32 %v2599_v9, %v2591_v40  ;;  %v2608_v20 = vxor.u32 %v2600_v37, %v2592_v61 }
 0x236   : > { %v2609_v50 = vxor.u32 %v2601_v10, %v2593_v0  ;;  %v2610_v4 = vxor.u32 %v2602_v36, %v2594_v3  ;;  %v2613_v42 = vmul.u32 2221713035, %v2605_v12  ;;  %v2614_v23 = vmul.u32 2221713035, %v2606_v43 }
 0x237   : > { %v2611_v26 = vxor.u32 %v2603_v59, %v2595_v24  ;;  %v2612_v7 = vxor.u32 %v2604_v39, %v2596_v56  ;;  %v2615_v22 = vmul.u32 2221713035, %v2607_v48  ;;  %v2616_v11 = vmul.u32 2221713035, %v2608_v20 }
 0x238   : > { %v2617_v6 = vmul.u32 2221713035, %v2609_v50  ;;  %v2618_v63 = vmul.u32 2221713035, %v2610_v4  ;;  %v2621_v14 = vshrl.u32 %v2613_v42, 16  ;;  %v2622_v55 = vshrl.u32 %v2614_v23, 16 }
 0x239   : > { %v2619_v5 = vmul.u32 2221713035, %v2611_v26  ;;  %v2620_v45 = vmul.u32 2221713035, %v2612_v7  ;;  %v2623_v16 = vshrl.u32 %v2615_v22, 16  ;;  %v2624_v19 = vshrl.u32 %v2616_v11, 16 }
 0x23a   : > { %v2625_v47 = vshrl.u32 %v2617_v6, 16  ;;  %v2626_v57 = vshrl.u32 %v2618_v63, 16  ;;  %v2629_v40 = vxor.u32 %v2621_v14, %v2613_v42  ;;  %v2630_v61 = vxor.u32 %v2622_v55, %v2614_v23 }
 0x23b   : > { %v2627_v0 = vshrl.u32 %v2619_v5, 16  ;;  %v2628_v3 = vshrl.u32 %v2620_v45, 16  ;;  %v2631_v9 = vxor.u32 %v2623_v16, %v2615_v22  ;;  %v2632_v37 = vxor.u32 %v2624_v19, %v2616_v11 }
 0x23c   : > { %v2633_v24 = vxor.u32 %v2625_v47, %v2617_v6  ;;  %v2634_v56 = vxor.u32 %v2626_v57, %v2618_v63  ;;  %v2637_v10 = vshrl.u32 %v2629_v40, 8  ;;  %v2638_v36 = vshrl.u32 %v2630_v61, 8 }
 0x23d   : > { %v2635_v12 = vxor.u32 %v2627_v0, %v2619_v5  ;;  %v2636_v43 = vxor.u32 %v2628_v3, %v2620_v45  ;;  %v2639_v59 = vshrl.u32 %v2631_v9, 8  ;;  %v2640_v39 = vshrl.u32 %v2632_v37, 8 }
 0x23e   : > { %v2641_v48 = vshrl.u32 %v2633_v24, 8  ;;  %v2642_v20 = vshrl.u32 %v2634_v56, 8  ;;  %v2645_v50 = vshrl.u32 %v2637_v10, 16  ;;  %v2646_v4 = vand.u32 65535, %v2637_v10 }
 0x23f   : > { %v2643_v26 = vshrl.u32 %v2635_v12, 8  ;;  %v2644_v7 = vshrl.u32 %v2636_v43, 8  ;;  %v2651_v42 = vshrl.u32 %v2638_v36, 16  ;;  %v2652_v23 = vand.u32 65535, %v2638_v36 }
 0x240   : > { %v2647_v14 = vcvt.s32.f32 %v2645_v50  ;;  %v2649_v55 = vcvt.s32.f32 %v2646_v4  ;;  %v2657_v22 = vshrl.u32 %v2639_v59, 16  ;;  %v2658_v11 = vand.u32 65535, %v2639_v59 }
 0x241   : > { %v2653_v6 = vcvt.s32.f32 %v2651_v42  ;;  %v2655_v63 = vcvt.s32.f32 %v2652_v23  ;;  %v2663_v16 = vshrl.u32 %v2640_v39, 16  ;;  %v2664_v19 = vand.u32 65535, %v2640_v39 }
 0x242   : > { %v2648_v5 = vmul.f32 65536.0, %v2647_v14  ;;  %v2659_v45 = vcvt.s32.f32 %v2657_v22  ;;  %v2661_v47 = vcvt.s32.f32 %v2658_v11  ;;  %v2669_v57 = vshrl.u32 %v2641_v48, 16 }
 0x243   : > { %v2654_v40 = vmul.f32 65536.0, %v2653_v6  ;;  %v2665_v61 = vcvt.s32.f32 %v2663_v16  ;;  %v2667_v0 = vcvt.s32.f32 %v2664_v19  ;;  %v2670_v3 = vand.u32 65535, %v2641_v48 }
 0x244   : > { %v2650_v9 = vadd.f32 %v2649_v55, %v2648_v5  ;;  %v2660_v37 = vmul.f32 65536.0, %v2659_v45  ;;  %v2671_v24 = vcvt.s32.f32 %v2669_v57  ;;  %v2675_v56 = vshrl.u32 %v2642_v20, 16 }
 0x245   : > { %v2656_v10 = vadd.f32 %v2655_v63, %v2654_v40  ;;  %v2666_v36 = vmul.f32 65536.0, %v2665_v61  ;;  %v2673_v12 = vcvt.s32.f32 %v2670_v3  ;;  %v2676_v43 = vand.u32 65535, %v2642_v20 }
 0x246   : > { %v2662_v59 = vadd.f32 %v2661_v47, %v2660_v37  ;;  %v2672_v50 = vmul.f32 65536.0, %v2671_v24  ;;  %v2677_v4 = vcvt.s32.f32 %v2675_v56  ;;  %v2681_v39 = vshrl.u32 %v2643_v26, 16 }
 0x247   : > { %v2668_v42 = vadd.f32 %v2667_v0, %v2666_v36  ;;  %v2679_v23 = vcvt.s32.f32 %v2676_v43  ;;  %v2682_v14 = vand.u32 65535, %v2643_v26  ;;  %v2687_v22 = vshrl.u32 %v2644_v7, 16 }
 0x248   : > { %v2674_v11 = vadd.f32 %v2673_v12, %v2672_v50  ;;  %v2678_v6 = vmul.f32 65536.0, %v2677_v4  ;;  %v2683_v16 = vcvt.s32.f32 %v2681_v39  ;;  %v2688_v48 = vand.u32 65535, %v2644_v7 }
 0x249   : > { %v2685_v55 = vcvt.s32.f32 %v2682_v14  ;;  %v2689_v19 = vcvt.s32.f32 %v2687_v22  ;;  %v2693_v5 = vadd.f32 0.5, %v2650_v9  ;;  %v2694_v45 = vadd.f32 0.5, %v2656_v10  ;;  %v4936_v22 = vld [vmem:[#allocation21_spill] sm:$0xff] }
 0x24a   : > { %v2680_v63 = vadd.f32 %v2679_v23, %v2678_v6  ;;  %v2684_v57 = vmul.f32 65536.0, %v2683_v16  ;;  %v2691_v40 = vcvt.s32.f32 %v2688_v48  ;;  %v2695_v20 = vadd.f32 0.5, %v2662_v59  ;;  %v4693_v16 = vld [vmem:[%s3423_s28 + $0x38] sm:$0xff] }
 0x24b   : > { %v2690_v47 = vmul.f32 65536.0, %v2689_v19  ;;  %v2696_v61 = vadd.f32 0.5, %v2668_v42  ;;  %v2697_v3 = vadd.f32 0.5, %v2674_v11  ;;  %v2701_v37 = vmul.f32 5.9604645e-08, %v2693_v5  ;;  %v4939_v5 = vld [vmem:[#allocation12_spill] sm:$0xff] }
 0x24c   : > { %v2686_v0 = vadd.f32 %v2685_v55, %v2684_v57  ;;  %v2698_v24 = vadd.f32 0.5, %v2680_v63  ;;  %v2702_v26 = vmul.f32 5.9604645e-08, %v2694_v45  ;;  %v2703_v56 = vmul.f32 5.9604645e-08, %v2695_v20  ;;  %v4942_v20 = vld [vmem:[#allocation14_spill] sm:$0xff] }
 0x24d   : > { %v2692_v36 = vadd.f32 %v2691_v40, %v2690_v47  ;;  %v2704_v12 = vmul.f32 5.9604645e-08, %v2696_v61  ;;  %v2705_v43 = vmul.f32 5.9604645e-08, %v2697_v3  ;;  %v2709_v7 = vmul.f32 %v2701_v37, %v4573_v54  ;;  %v4943_v47 = vld [vmem:[#allocation15_spill] sm:$0xff]  ;;  %v4944_v3 = vld [vmem:[#allocation16_spill] sm:$0xff] }
 0x24e   : > { %v2699_v50 = vadd.f32 0.5, %v2686_v0  ;;  %v2706_v9 = vmul.f32 5.9604645e-08, %v2698_v24  ;;  %v2710_v10 = vmul.f32 %v2702_v26, %v4576_v17  ;;  %v2711_v4 = vmul.f32 %v2703_v56, %v4579_v41 }
 0x24f   : > { %v2700_v59 = vadd.f32 0.5, %v2692_v36  ;;  %v2712_v39 = vmul.f32 %v2704_v12, %v4582_v25  ;;  %v2713_v42 = vmul.f32 %v2705_v43, %v4585_v35  ;;  %vm2717_vm1 = vcmp.gt.f32.partialorder %v2709_v7, %v3958_v30 }
 0x250   : > { %v2707_v23 = vmul.f32 5.9604645e-08, %v2699_v50  ;;  %v2714_v14 = vmul.f32 %v2706_v9, %v4590_v51  ;;  %vm2718_vm0 = vcmp.gt.f32.partialorder %v2710_v10, %v3961_v38  ;;  %vm2719_vm2 = vcmp.gt.f32.partialorder %v2711_v4, %v3964_v8 }
 0x251   : > { %v2708_v54 = vmul.f32 5.9604645e-08, %v2700_v59  ;;  %vm2720_vm3 = vcmp.gt.f32.partialorder %v2712_v39, %v3971_v62  ;;  %vm2721_vm4 = vcmp.gt.f32.partialorder %v2713_v42, %v3977_v58  ;;  %v3054_v17 = vsel %vm2717_vm1, 1.0, %v4900_v13 }
 0x252   : > { %v2715_v41 = vmul.f32 %v2707_v23, %v4602_v15  ;;  %vm2722_vm5 = vcmp.gt.f32.partialorder %v2714_v14, %v3983_v27  ;;  %v3055_v30 = vsel %vm2718_vm0, 1.0, %v4900_v13  ;;  %v3056_v25 = vsel %vm2719_vm2, 1.0, %v4900_v13  ;;  %v4685_v15 = vld [vmem:[%s3423_s28 + $0x18] sm:$0xff] }
 0x253   : > { %v2716_v38 = vmul.f32 %v2708_v54, %v4609_v46  ;;  %v3057_v8 = vsel %vm2720_vm3, 1.0, %v4900_v13  ;;  %v3058_v35 = vsel %vm2721_vm4, 1.0, %v4900_v13  ;;  %v3059_v62 = vsel %vm2722_vm5, 1.0, %v4900_v13  ;;  %v4945_v23 = vld [vmem:[#allocation17_spill] sm:$0xff] }
 0x254   : > { %vm2723_vm8 = vcmp.gt.f32.partialorder %v2715_v41, %v3996_v21  ;;  %v2741_v58 = vadd.f32 %v3054_v17, %v4619_v44  ;;  %v2742_v51 = vadd.f32 %v3055_v30, %v4627_v49  ;;  %v2743_v27 = vadd.f32 %v3056_v25, %v4630_v1  ;;  %v4937_v21 = vld [vmem:[#allocation22_spill] sm:$0xff]  ;;  %v4938_v1 = vld [vmem:[#allocation24_spill] sm:$0xff] }
 0x255   : > { %v1228_v11 = vadd.f32 %v4685_v15, %v4936_v22  ;;  %vm2724_vm11 = vcmp.gt.f32.partialorder %v2716_v38, %v3999_v2  ;;  %v3060_v46 = vsel %vm2723_vm8, 1.0, %v4900_v13  ;;  %v2744_v6 = vadd.f32 %v3057_v8, %v4634_v18  ;;  %v3192_v41 = vld [vmem:[%s3423_s28] sm:$0xff] }
 0x256   : > { %v4697_v44 = vadd.f32 %v4693_v16, %v4937_v21  ;;  %v3061_v49 = vsel %vm2724_vm11, 1.0, %v4900_v13  ;;  %v2759_v48 = vadd.s32 %v4938_v1, %v4932_v31  ;;  %v2760_v55 = vadd.s32 %v4938_v1, %v4933_v29  ;;  %v4940_v13 = vld [vmem:[#allocation13_spill] sm:$0xff]  ;;  %v4941_v31 = vld [vmem:[#allocation19_spill] sm:$0xff] }
 0x257   : > { %v2745_v2 = vadd.f32 %v3058_v35, %v4637_v53  ;;  %v4706_v19 = vadd.f32 %v3059_v62, %v4642_v34  ;;  %v4709_v18 = vadd.f32 %v3060_v46, %v4655_v60  ;;  %v4712_v45 = vadd.f32 %v2741_v58, %v4939_v5 }
 0x258   : > { %v4715_v63 = vadd.f32 %v3061_v49, %v4658_v28  ;;  %v4718_v57 = vadd.f32 %v2742_v51, %v4940_v13  ;;  %v4721_v40 = vadd.f32 %v2743_v27, %v4941_v31  ;;  %v2761_v29 = vadd.s32 %v4938_v1, %v3448_v32 }
 0x259   : > { %v4725_v53 = vadd.f32 %v2744_v6, %v1228_v11  ;;  %v2762_v34 = vadd.s32 %v4938_v1, %v3450_v33  ;;  %v2763_v60 = vadd.s32 %v4938_v1, %v3923_v52  ;;  %v2764_v28 = vadd.s32 %v4938_v1, %v4942_v20 }
 0x25a   : > { %v2765_v61 = vadd.s32 %v4938_v1, %v4943_v47  ;;  %v2766_v37 = vadd.s32 %v4938_v1, %v4944_v3  ;;  %v2767_v0 = vshrl.u32 %v2759_v48, 16  ;;  %v2768_v24 = vshrl.u32 %v2760_v55, 16 }
 0x25b   : > { %v2769_v32 = vshrl.u32 %v2761_v29, 16  ;;  %v2770_v26 = vshrl.u32 %v2762_v34, 16  ;;  %v2771_v56 = vshrl.u32 %v2763_v60, 16  ;;  %v2772_v36 = vshrl.u32 %v2764_v28, 16 }
 0x25c   : > { %v2773_v33 = vshrl.u32 %v2765_v61, 16  ;;  %v2774_v12 = vshrl.u32 %v2766_v37, 16  ;;  %v2775_v43 = vxor.u32 %v2767_v0, %v2759_v48  ;;  %v2776_v52 = vxor.u32 %v2768_v24, %v2760_v55 }
 0x25d   : > { %v2777_v7 = vxor.u32 %v2769_v32, %v2761_v29  ;;  %v2778_v50 = vxor.u32 %v2770_v26, %v2762_v34  ;;  %v2779_v9 = vxor.u32 %v2771_v56, %v2763_v60  ;;  %v2780_v10 = vxor.u32 %v2772_v36, %v2764_v28 }
 0x25e   : > { %v2781_v4 = vxor.u32 %v2773_v33, %v2765_v61  ;;  %v2782_v59 = vxor.u32 %v2774_v12, %v2766_v37  ;;  %v2783_v39 = vmul.u32 2146121005, %v2775_v43  ;;  %v2784_v42 = vmul.u32 2146121005, %v2776_v52 }
 0x25f   : > { %v4738_v14 = vadd.f32 %v2745_v2, %v4945_v23  ;;  %v2785_v54 = vmul.u32 2146121005, %v2777_v7  ;;  %v2786_v17 = vmul.u32 2146121005, %v2778_v50  ;;  %v4741_v30 = vmul.f32 1.0526316, %v3192_v41 }
 0x260   : > { %v2787_v25 = vmul.u32 2146121005, %v2779_v9  ;;  %v2788_v38 = vmul.u32 2146121005, %v2780_v10  ;;  %v2791_v8 = vshrl.u32 %v2783_v39, 15  ;;  %v2792_v35 = vshrl.u32 %v2784_v42, 15 }
 0x261   : > { %v2789_v62 = vmul.u32 2146121005, %v2781_v4  ;;  %v2790_v58 = vmul.u32 2146121005, %v2782_v59  ;;  %v2793_v51 = vshrl.u32 %v2785_v54, 15  ;;  %v2794_v27 = vshrl.u32 %v2786_v17, 15 }
 0x262   : > { %v2795_v22 = vshrl.u32 %v2787_v25, 15  ;;  %v2796_v11 = vshrl.u32 %v2788_v38, 15  ;;  %v2799_v46 = vxor.u32 %v2791_v8, %v2783_v39  ;;  %v2800_v6 = vxor.u32 %v2792_v35, %v2784_v42  ;;  %v4946_v4 = vld [vmem:[#allocation18_spill] sm:$0xff]  ;;  %v3193_v39 = vld [vmem:[%s3423_s28 + $0x8] sm:$0xff]  ;;  %v4947_v23 = vld [vmem:[#allocation20_spill] sm:$0xff] }
 0x263   : > { %v2797_v21 = vshrl.u32 %v2789_v62, 15  ;;  %v2798_v49 = vshrl.u32 %v2790_v58, 15  ;;  %v2801_v1 = vxor.u32 %v2793_v51, %v2785_v54  ;;  %v2802_v48 = vxor.u32 %v2794_v27, %v2786_v17  ;;  %v3194_v17 = vld [vmem:[%s3423_s28 + $0x10] sm:$0xff]  ;;  %v3195_v8 = vld [vmem:[%s3423_s28 + $0x20] sm:$0xff]  ;;  %v3196_v35 = vld [vmem:[%s3423_s28 + $0x28] sm:$0xff] }
 0x264   : > { %v2803_v55 = vxor.u32 %v2795_v22, %v2787_v25  ;;  %v2804_v2 = vxor.u32 %v2796_v11, %v2788_v38  ;;  %v2807_v5 = vmul.u32 2221713035, %v2799_v46  ;;  %v2808_v13 = vmul.u32 2221713035, %v2800_v6 }
 0x265   : > { %v2805_v31 = vxor.u32 %v2797_v21, %v2789_v62  ;;  %v2806_v29 = vxor.u32 %v2798_v49, %v2790_v58  ;;  %v2809_v34 = vmul.u32 2221713035, %v2801_v1  ;;  %v2810_v60 = vmul.u32 2221713035, %v2802_v48  ;;  %v3197_v58 = vld [vmem:[%s3423_s28 + $0x30] sm:$0xff]  ;;  %s4777_s28 = scalar_lea.hbm %s4822_s2, %s2965_s29  ;;  %s3230_s29 = sshll.u32 %s3300_s0, 4  ;;  %s3231_s29 = int_to_ptr.vmem [resolvable:$false] %s3230_s29 }
 0x266   : > { %v2811_v20 = vmul.u32 2221713035, %v2803_v55  ;;  %v2812_v28 = vmul.u32 2221713035, %v2804_v2  ;;  %v2815_v47 = vshrl.u32 %v2807_v5, 16  ;;  %v2816_v61 = vshrl.u32 %v2808_v13, 16  ;;  %p3233_p3 = scmp.lt.s32.totalorder %s4779_s24, %s3231_s29 }
 0x267   : > { %v2813_v3 = vmul.u32 2221713035, %v2805_v31  ;;  %v2814_v37 = vmul.u32 2221713035, %v2806_v29  ;;  %v2817_v0 = vshrl.u32 %v2809_v34, 16  ;;  %v2818_v24 = vshrl.u32 %v2810_v60, 16 }
 0x268   : > { %v2819_v32 = vshrl.u32 %v2811_v20, 16  ;;  %v2820_v26 = vshrl.u32 %v2812_v28, 16  ;;  %v2823_v56 = vxor.u32 %v2815_v47, %v2807_v5  ;;  %v2824_v36 = vxor.u32 %v2816_v61, %v2808_v13  ;;  %s3232_s3 = scalar_lea.vmem %s3231_s29, 2048 }
 0x269   : > { %v2821_v33 = vshrl.u32 %v2813_v3, 16  ;;  %v2822_v12 = vshrl.u32 %v2814_v37, 16  ;;  %v2825_v43 = vxor.u32 %v2817_v0, %v2809_v34  ;;  %v2826_v52 = vxor.u32 %v2818_v24, %v2810_v60  ;;  %p3234_p5 = scmp.lt.s32.totalorder %s3232_s3, %s3226_s21 }
 0x26a   : > { %v2827_v7 = vxor.u32 %v2819_v32, %v2811_v20  ;;  %v2828_v50 = vxor.u32 %v2820_v26, %v2812_v28  ;;  %vm2831_vm13 = vcmp.ge.u32.totalorder %v2823_v56, 214748365  ;;  %vm2832_vm6 = vcmp.ge.u32.totalorder %v2824_v36, 214748365 }
 0x26b   : > { %v2829_v9 = vxor.u32 %v2821_v33, %v2813_v3  ;;  %v2830_v10 = vxor.u32 %v2822_v12, %v2814_v37  ;;  %vm2833_vm7 = vcmp.ge.u32.totalorder %v2825_v43, 214748365  ;;  %vm2834_vm9 = vcmp.ge.u32.totalorder %v2826_v52, 214748365  ;;  %p3235_p8 = por %p3234_p5, %p3233_p3 }
 0x26c   : > { %v2754_v59 = vadd.f32 %v4706_v19, %v4946_v4  ;;  %vm2835_vm10 = vcmp.ge.u32.totalorder %v2827_v7, 214748365  ;;  %vm2836_vm12 = vcmp.ge.u32.totalorder %v2828_v50, 214748365  ;;  %v2840_v42 = vmul.f32 1.0526316, %v3193_v39 }
 0x26d   : > { %v2755_v54 = vadd.f32 %v4709_v18, %v4947_v23  ;;  %vm2837_vm14 = vcmp.ge.u32.totalorder %v2829_v9, 214748365  ;;  %vm2838_vm15 = vcmp.ge.u32.totalorder %v2830_v10, 214748365  ;;  %v2841_v41 = vmul.f32 1.0526316, %v3194_v17  ;;  %p3236_p10 = pnand %p3235_p8, %p3229_p1 }
 0x26e   : > { %v2756_v25 = vadd.f32 %v4715_v63, %v4697_v44  ;;  %v2842_v38 = vmul.f32 1.0526316, %v4685_v15  ;;  %v2843_v19 = vmul.f32 1.0526316, %v3195_v8  ;;  %v2844_v62 = vmul.f32 1.0526316, %v3196_v35 }
 0x26f   : > { %v2845_v51 = vmul.f32 1.0526316, %v3197_v58  ;;  %v2846_v27 = vmul.f32 1.0526316, %v4693_v16  ;;  %v2847_v18 = vsel %vm2831_vm13, %v4741_v30, 0.0  ;;  %v2848_v22 = vsel %vm2832_vm6, %v2840_v42, 0.0 }
 0x270   : > { %v2849_v11 = vsel %vm2833_vm7, %v2841_v41, 0.0  ;;  %v2850_v46 = vsel %vm2834_vm9, %v2842_v38, 0.0  ;;  %v2851_v44 = vsel %vm2835_vm10, %v2843_v19, 0.0  ;;  %v2852_v15 = vsel %vm2836_vm12, %v2844_v62, 0.0 }
 0x271   : > { %v2853_v63 = vsel %vm2837_vm14, %v2845_v51, 0.0  ;;  %v2854_v16 = vsel %vm2838_vm15, %v2846_v27, 0.0  ;;  %v2855_v30 = vadd.f32 %v2847_v18, %v4712_v45  ;;  %v2856_v6 = vadd.f32 %v2848_v22, %v4718_v57 }
 0x272   : > { %v2857_v21 = vadd.f32 %v2849_v11, %v4721_v40  ;;  %v2858_v49 = vadd.f32 %v2850_v46, %v4725_v53  ;;  %v2859_v1 = vadd.f32 %v2851_v44, %v4738_v14  ;;  %v2860_v48 = vadd.f32 %v2852_v15, %v2754_v59 }
 0x273   : > { %v2861_v55 = vadd.f32 %v2853_v63, %v2755_v54  ;;  %v2862_v2 = vadd.f32 %v2854_v16, %v2756_v25  ;;  %2863 = vst [vmem:[%s134_s20] sm:$0xff] %v2855_v30  ;;  %2864 = vst [vmem:[%s134_s20 + $0x8] sm:$0xff] %v2856_v6 }
 0x274   : > { %2865 = vst [vmem:[%s134_s20 + $0x10] sm:$0xff] %v2857_v21  ;;  %2866 = vst [vmem:[%s134_s20 + $0x18] sm:$0xff] %v2858_v49 }
 0x275   : > { %2867 = vst [vmem:[%s134_s20 + $0x20] sm:$0xff] %v2859_v1  ;;  %2868 = vst [vmem:[%s134_s20 + $0x28] sm:$0xff] %v2860_v48 }
 0x276   : > { %2869 = vst [vmem:[%s134_s20 + $0x30] sm:$0xff] %v2861_v55  ;;  %2870 = vst [vmem:[%s134_s20 + $0x38] sm:$0xff] %v2862_v2 }
 0x277   : > { %3239 = shalt.err (!%p3236_p10)
}
 0x278   : > { %s3240_s4 = scalar_lea.hbm %s4777_s28, 1024  ;;  %s3244_s6 = scalar_lea.hbm %s4822_s2, 2048 }
 0x279   : > { %p3241_p2 = scmp.ne.s32.totalorder %s4777_s28, %s3240_s4  ;;  %p3245_p7 = scmp.lt.s32.totalorder %s4777_s28, %s4822_s2 }
 0x27a   : > { %p3246_p0 = scmp.lt.s32.totalorder %s3244_s6, %s3240_s4 }
 0x27b   : > { %p3242_p4 = pnand %p3241_p2, %p4948_p12 }
 0x27c   : > { %p3247_p6 = por %p3246_p0, %p3245_p7 }
 0x27d   : > { %p3243_p9 = pneg %p3242_p4 }
 0x27f   : > { %p3248_p11 = pnand %p3247_p6, %p3243_p9 }
 0x281   : > { %3251 = shalt.err (!%p3248_p11)
}
 0x282   : > { %3087 = dma.vmem_to_hbm [thread:$0]  (%p4948_p12), %s4779_s24, 1024, %s4777_s28, %s2872_s30  }
 0x283 PF: > { %s2898_s9 = sand.u32 1, %s3278_s11   ;;  %p4949_p13 = scmp.ne.s32.totalorder %s4858_s23, 0 }
 0x284   : > { %p4950_p1 = scmp.ge.s32.totalorder %s3290_s14, 2  ;;  %s2899_s10 = scalar_lea.sflag [#allocation6], %s2898_s9 }
 0x286   : > { %p3094_p3 = pnand %p4950_p1, %p4949_p13 }
 0x288   : > { %p3095_p5 = pneg %p3094_p3 }
 0x28a   : > { %3273 = dma.done.wait (%p3095_p5), %s2899_s10, 1024  }
 0x28b   : > { %3275 = vsyncadd (%p3095_p5), %s2899_s10, 4294966272  ;;  %p16_p8 = scmp.ge.s32.totalorder %s3344_s16, 4   ;;  %s4951_s11 = smov %s3282_s12 }
 0x28c   : > { %s4952_s12 = smov %s3286_s13  ;;  %s4953_s13 = smov %s3356_s19 }
 0x28d   : > { %s4954_s14 = smov %s3344_s16  ;;  %18 = sbr.rel (!%p16_p8) target bundleno = 7 (0x7), region = 69 }
 0x292   :  { %2904 = vsyncpa [#allocation5], 1 }
 0x293   :  { %2906 = vsyncpa [#allocation5 + $0x1], 1 }
 0x294   :  { %2907 = vsyncpa [#allocation6], 1 }
 0x295   :  { %2909 = vsyncpa [#allocation6 + $0x1], 1 }

</bundles_post_ra>
